<compile_context>
chip_gen: v5e
topology: v5e:2x2
jax: 0.10.0
libtpu: 0.0.40
codegen_flags: <defaults>
</compile_context>

<pallas_src>
import functools

import jax
import jax.numpy as jnp
from jax.experimental import pallas as pl
from jax.experimental.pallas import tpu as pltpu

IN_FEATURES = 784
HIDDEN = 1000
NUM_CLASSES = 10

# Lane/sublane aligned padded dims (all zero-padded, so results are unchanged).
IN_P = 896     # 784 -> multiple of 128: clean MXU K passes for the first matmul
HID_P = 1024   # 1000 -> multiple of 128: unmasked lanes for h and clean K for the second matmul
OUT_P = 128    # 10 -> full-lane (unmasked) output stores


def _round_up(n, m):
    return ((n + m - 1) // m) * m


def _mlp_kernel(x_ref, w1_ref, b1_ref, w2_ref, b2_ref, o_ref):
    # First layer on the MXU: bf16 inputs, f32 accumulate.  (TB, 896) @ (896, 1024)
    h = jnp.dot(x_ref[...], w1_ref[...], preferred_element_type=jnp.float32)
    h = jnp.maximum(h + b1_ref[...], 0.0)
    # Second (tiny) layer: bf16 inputs, f32 accumulate.  (TB, 1024) @ (1024, 128)
    out = jnp.dot(h.astype(jnp.bfloat16), w2_ref[...],
                  preferred_element_type=jnp.float32) + b2_ref[...]
    o_ref[...] = out.astype(o_ref.dtype)


@functools.partial(jax.jit, static_argnames=("batch_tile",))
def linear_net_forward(x_nchw, w1, b1, w2, b2, *, batch_tile=512):
    """x_nchw: (B, C, H, W) with C*H*W == 784. Returns (B, 10) f32 logits."""
    B = x_nchw.shape[0]
    x = x_nchw.reshape(B, -1)  # == torch flatten(start_dim=1)
    assert x.shape[1] == IN_FEATURES

    # Batch tile: multiple of 8 sublanes; capped at `batch_tile` (<=512) so the per-step
    # working set (x tile, h, out tile, resident weights, double buffers) fits v7x's
    # 32 MiB scoped VMEM as well as v5e/v6e.
    tb = min(batch_tile, _round_up(B, 8))
    bp = _round_up(B, tb)

    # Zero-pad once in the wrapper (padded rows/cols contribute nothing to the dots).
    x_p = jnp.zeros((bp, IN_P), jnp.bfloat16).at[:B, :IN_FEATURES].set(
        x.astype(jnp.bfloat16))
    w1_p = jnp.zeros((IN_P, HID_P), jnp.bfloat16).at[:IN_FEATURES, :HIDDEN].set(
        w1.astype(jnp.bfloat16))
    b1_p = jnp.zeros((1, HID_P), jnp.float32).at[:, :HIDDEN].set(b1.reshape(1, HIDDEN))
    w2_p = jnp.zeros((HID_P, OUT_P), jnp.bfloat16).at[:HIDDEN, :NUM_CLASSES].set(
        w2.astype(jnp.bfloat16))
    b2_p = jnp.zeros((1, OUT_P), jnp.float32).at[:, :NUM_CLASSES].set(
        b2.reshape(1, NUM_CLASSES))

    cost = pl.CostEstimate(
        flops=2 * bp * (IN_P * HID_P + HID_P * OUT_P),
        transcendentals=0,
        bytes_accessed=(x_p.size * 2 + w1_p.size * 2 + w2_p.size * 2
                        + b1_p.size * 4 + b2_p.size * 4 + bp * OUT_P * 4),
    )

    out_p = pl.pallas_call(
        _mlp_kernel,
        out_shape=jax.ShapeDtypeStruct((bp, OUT_P), jnp.float32),
        grid=(bp // tb,),
        in_specs=[
            pl.BlockSpec((tb, IN_P), lambda i: (i, 0)),      # x: streamed per batch tile
            pl.BlockSpec((IN_P, HID_P), lambda i: (0, 0)),   # w1: VMEM-resident across steps
            pl.BlockSpec((1, HID_P), lambda i: (0, 0)),      # b1
            pl.BlockSpec((HID_P, OUT_P), lambda i: (0, 0)),  # w2: VMEM-resident across steps
            pl.BlockSpec((1, OUT_P), lambda i: (0, 0)),      # b2
        ],
        out_specs=pl.BlockSpec((tb, OUT_P), lambda i: (i, 0)),
        compiler_params=pltpu.CompilerParams(
            dimension_semantics=("parallel",),  # batch tiles independent; shards across v7x TCs
        ),
        cost_estimate=cost,
    )(x_p, w1_p, b1_p, w2_p, b2_p)

    return out_p[:B, :NUM_CLASSES]


def init_params(key):
    """Deterministic init mimicking nn.Linear's U(-1/sqrt(fan_in), 1/sqrt(fan_in))."""
    k1, k2, k3, k4 = jax.random.split(key, 4)
    lim1 = 1.0 / (IN_FEATURES ** 0.5)
    lim2 = 1.0 / (HIDDEN ** 0.5)
    w1 = jax.random.uniform(k1, (IN_FEATURES, HIDDEN), jnp.float32, -lim1, lim1)
    b1 = jax.random.uniform(k2, (HIDDEN,), jnp.float32, -lim1, lim1)
    w2 = jax.random.uniform(k3, (HIDDEN, NUM_CLASSES), jnp.float32, -lim2, lim2)
    b2 = jax.random.uniform(k4, (NUM_CLASSES,), jnp.float32, -lim2, lim2)
    return w1, b1, w2, b2


if __name__ == "__main__":
    key = jax.random.PRNGKey(0)
    kx, kp = jax.random.split(key)

    # Small MNIST-like batch: (B=2, C=1, H=28, W=28) -> flatten -> 784 features.
    x = jax.random.normal(kx, (2, 1, 28, 28), jnp.float32)
    w1, b1, w2, b2 = init_params(kp)

    out = linear_net_forward(x, w1, b1, w2, b2)
    out = jax.block_until_ready(out)

    # Reference check in plain JAX (f32); tolerance loosened to cover bf16 weight/activation storage.
    xf = x.reshape(x.shape[0], -1)
    ref = jnp.maximum(xf @ w1 + b1, 0.0) @ w2 + b2
    assert out.shape == (2, NUM_CLASSES)
    assert jnp.allclose(out, ref, atol=3e-2, rtol=3e-2), float(jnp.max(jnp.abs(out - ref)))

    print("KERNEL_OK")
</pallas_src>

<mosaic_0001>
module attributes {stable_mosaic.version = 11 : i64} {
  func.func @_mlp_kernel(%arg0: i32, %arg1: memref<8x896xbf16, #tpu.memory_space<vmem>>, %arg2: memref<896x1024xbf16, #tpu.memory_space<vmem>>, %arg3: memref<1x1024xf32, #tpu.memory_space<vmem>>, %arg4: memref<1024x128xbf16, #tpu.memory_space<vmem>>, %arg5: memref<1x128xf32, #tpu.memory_space<vmem>>, %arg6: memref<8x128xf32, #tpu.memory_space<vmem>>) attributes {dimension_semantics = [#tpu.dimension_semantics<parallel>], iteration_bounds = array<i64: 1>, scalar_prefetch = 0 : i64, scratch_operands = 0 : i64, tpu.core_type = #tpu.core_type<tc>, window_params = [{transform_indices = @transform_0, window_bounds = array<i64: 8, 896>}, {pipeline_mode = #tpu.pipeline_mode<synchronous>, transform_indices = @transform_1, window_bounds = array<i64: 896, 1024>}, {pipeline_mode = #tpu.pipeline_mode<synchronous>, transform_indices = @transform_2, window_bounds = array<i64: 1, 1024>}, {pipeline_mode = #tpu.pipeline_mode<synchronous>, transform_indices = @transform_3, window_bounds = array<i64: 1024, 128>}, {pipeline_mode = #tpu.pipeline_mode<synchronous>, transform_indices = @transform_4, window_bounds = array<i64: 1, 128>}, {transform_indices = @transform_5, window_bounds = array<i64: 8, 128>}]} {
    %c0 = arith.constant 0 : index
    %c0_0 = arith.constant 0 : index
    %0 = vector.load %arg1[%c0, %c0_0] : memref<8x896xbf16, #tpu.memory_space<vmem>>, vector<8x896xbf16>
    %c0_1 = arith.constant 0 : index
    %c0_2 = arith.constant 0 : index
    %1 = vector.load %arg2[%c0_1, %c0_2] : memref<896x1024xbf16, #tpu.memory_space<vmem>>, vector<896x1024xbf16>
    %cst = arith.constant dense<0.000000e+00> : vector<8x1024xf32>
    %2 = tpu.matmul %0, %1, %cst {dimension_numbers = #tpu.dot_dimension_numbers<[1], [0], [0], [1], [0, 0, 1, 1], [], []>} : vector<8x896xbf16>, vector<896x1024xbf16>, vector<8x1024xf32> -> vector<8x1024xf32>
    %c0_3 = arith.constant 0 : index
    %c0_4 = arith.constant 0 : index
    %3 = vector.load %arg3[%c0_3, %c0_4] : memref<1x1024xf32, #tpu.memory_space<vmem>>, vector<1x1024xf32>
    %4 = vector.broadcast %3 : vector<1x1024xf32> to vector<8x1024xf32>
    %5 = arith.addf %2, %4 : vector<8x1024xf32>
    %cst_5 = arith.constant 0.000000e+00 : f32
    %6 = vector.broadcast %cst_5 : f32 to vector<8x1024xf32>
    %7 = arith.maximumf %5, %6 : vector<8x1024xf32>
    %8 = arith.truncf %7 : vector<8x1024xf32> to vector<8x1024xbf16>
    %c0_6 = arith.constant 0 : index
    %c0_7 = arith.constant 0 : index
    %9 = vector.load %arg4[%c0_6, %c0_7] : memref<1024x128xbf16, #tpu.memory_space<vmem>>, vector<1024x128xbf16>
    %cst_8 = arith.constant dense<0.000000e+00> : vector<8x128xf32>
    %10 = tpu.matmul %8, %9, %cst_8 {dimension_numbers = #tpu.dot_dimension_numbers<[1], [0], [0], [1], [0, 0, 1, 1], [], []>} : vector<8x1024xbf16>, vector<1024x128xbf16>, vector<8x128xf32> -> vector<8x128xf32>
    %c0_9 = arith.constant 0 : index
    %c0_10 = arith.constant 0 : index
    %11 = vector.load %arg5[%c0_9, %c0_10] : memref<1x128xf32, #tpu.memory_space<vmem>>, vector<1x128xf32>
    %12 = vector.broadcast %11 : vector<1x128xf32> to vector<8x128xf32>
    %13 = arith.addf %10, %12 : vector<8x128xf32>
    %c0_11 = arith.constant 0 : index
    %c0_12 = arith.constant 0 : index
    %14 = vector.load %arg6[%c0_11, %c0_12] : memref<8x128xf32, #tpu.memory_space<vmem>>, vector<8x128xf32>
    tpu.vector_store %arg6[%c0_11, %c0_12], %13 {strides = array<i32>} : memref<8x128xf32, #tpu.memory_space<vmem>>, vector<8x128xf32>,
    return
  }
  func.func @transform_0(%arg0: i32) -> (i32, i32) {
    %c0_i32 = arith.constant 0 : i32
    %c0_i32_0 = arith.constant 0 : i32
    return %arg0, %c0_i32 : i32, i32
  }
  func.func @transform_1(%arg0: i32) -> (i32, i32) {
    %c0_i32 = arith.constant 0 : i32
    %c0_i32_0 = arith.constant 0 : i32
    %c0_i32_1 = arith.constant 0 : i32
    return %c0_i32, %c0_i32_0 : i32, i32
  }
  func.func @transform_2(%arg0: i32) -> (i32, i32) {
    %c0_i32 = arith.constant 0 : i32
    %c0_i32_0 = arith.constant 0 : i32
    %c0_i32_1 = arith.constant 0 : i32
    return %c0_i32, %c0_i32_0 : i32, i32
  }
  func.func @transform_3(%arg0: i32) -> (i32, i32) {
    %c0_i32 = arith.constant 0 : i32
    %c0_i32_0 = arith.constant 0 : i32
    %c0_i32_1 = arith.constant 0 : i32
    return %c0_i32, %c0_i32_0 : i32, i32
  }
  func.func @transform_4(%arg0: i32) -> (i32, i32) {
    %c0_i32 = arith.constant 0 : i32
    %c0_i32_0 = arith.constant 0 : i32
    %c0_i32_1 = arith.constant 0 : i32
    return %c0_i32, %c0_i32_0 : i32, i32
  }
  func.func @transform_5(%arg0: i32) -> (i32, i32) {
    %c0_i32 = arith.constant 0 : i32
    %c0_i32_0 = arith.constant 0 : i32
    return %arg0, %c0_i32 : i32, i32
  }
}

</mosaic_0001>

<bundles_post_ra>
// kernel: linear_net_forward.1
= control target key start
LH: loop header
LB: loop body
LE: loop exit
PB: predicated region body
PF: predicated region fallthrough
CT: control target
= control target key end

     0   :  { %s9759_s1 = inlined_call_operand.vmem [shape: bf16[896,1024], index: 1, kind: input, shape index: {}]   ;;  %s9760_s0 = inlined_call_operand.vmem [shape: bf16[8,896], index: 0, kind: input, shape index: {}]   ;;  %s9761_s2 = inlined_call_operand.vmem [shape: f32[1,1024], index: 2, kind: input, shape index: {}]   ;;  %s9762_s3 = inlined_call_operand.vmem [shape: bf16[1024,128], index: 3, kind: input, shape index: {}]   ;;  %s9763_s4 = inlined_call_operand.vmem [shape: f32[1,128], index: 4, kind: input, shape index: {}]   ;;  %s9764_s5 = inlined_call_operand.vmem [shape: f32[8,128], index: 5, kind: output, shape index: {}]  }
   0x1   :  { %v4350_v0 = vld [vmem:[%s9759_s1 + $0x1c0] sm:$0xf] }
   0x2   :  { %v6232_v1 = vld [vmem:[%s9759_s1 + $0x1dc] sm:$0xf0] }
   0x3   :  { %v4606_v2 = vld [vmem:[%s9759_s1 + $0x3c0] sm:$0xf]  ;;  %v4351_v3 = vor.u32 %v6232_v1, %v4350_v0 }
   0x4   :  { %v6296_v4 = vld [vmem:[%s9759_s1 + $0x3dc] sm:$0xf0] }
   0x5   :  { %v4862_v5 = vld [vmem:[%s9759_s1 + $0x5c0] sm:$0xf]  ;;  %v4607_v7 = vor.u32 %v6296_v4, %v4606_v2  ;;  %2755 = vmatpush.bf16.msra.mxu0 %v4351_v3 }
   0x6   :  { %v6360_v6 = vld [vmem:[%s9759_s1 + $0x5dc] sm:$0xf0] }
   0x7   :  { %v4863_v8 = vor.u32 %v6360_v6, %v4862_v5  ;;  %v5118_v9 = vld [vmem:[%s9759_s1 + $0x7c0] sm:$0xf]  ;;  %2768 = vmatpush.bf16.msra.mxu1 %v4607_v7 }
   0x8   :  { %v6424_v10 = vld [vmem:[%s9759_s1 + $0x7dc] sm:$0xf0] }
   0x9   :  { %v4318_v11 = vld [vmem:[%s9759_s1 + $0x180] sm:$0xf]  ;;  %v5119_v12 = vor.u32 %v6424_v10, %v5118_v9  ;;  %2781 = vmatpush.bf16.msra.mxu2 %v4863_v8 }
   0xa   :  { %v6224_v13 = vld [vmem:[%s9759_s1 + $0x19c] sm:$0xf0] }
   0xb   :  { %v4574_v14 = vld [vmem:[%s9759_s1 + $0x380] sm:$0xf]  ;;  %v4319_v16 = vor.u32 %v6224_v13, %v4318_v11  ;;  %2794 = vmatpush.bf16.msra.mxu3 %v5119_v12 }
   0xc   :  { %v6288_v15 = vld [vmem:[%s9759_s1 + $0x39c] sm:$0xf0] }
   0xd   :  { %v4575_v17 = vor.u32 %v6288_v15, %v4574_v14  ;;  %v4830_v18 = vld [vmem:[%s9759_s1 + $0x580] sm:$0xf]  ;;  %2756 = vmatpush.bf16.msra.mxu0 %v4319_v16 }
   0xe   :  { %v6352_v19 = vld [vmem:[%s9759_s1 + $0x59c] sm:$0xf0] }
   0xf   :  { %v5086_v20 = vld [vmem:[%s9759_s1 + $0x780] sm:$0xf]  ;;  %v4831_v21 = vor.u32 %v6352_v19, %v4830_v18  ;;  %2769 = vmatpush.bf16.msra.mxu1 %v4575_v17 }
  0x10   :  { %v6416_v22 = vld [vmem:[%s9759_s1 + $0x79c] sm:$0xf0] }
  0x11   :  { %v4286_v23 = vld [vmem:[%s9759_s1 + $0x140] sm:$0xf]  ;;  %v5087_v25 = vor.u32 %v6416_v22, %v5086_v20  ;;  %2782 = vmatpush.bf16.msra.mxu2 %v4831_v21 }
  0x12   :  { %v6216_v24 = vld [vmem:[%s9759_s1 + $0x15c] sm:$0xf0] }
  0x13   :  { %v4542_v26 = vld [vmem:[%s9759_s1 + $0x340] sm:$0xf]  ;;  %v4287_v29 = vor.u32 %v6216_v24, %v4286_v23  ;;  %2795 = vmatpush.bf16.msra.mxu3 %v5087_v25 }
  0x14   :  { %v6280_v27 = vld [vmem:[%s9759_s1 + $0x35c] sm:$0xf0] }
  0x15   :  { %v4798_v28 = vld [vmem:[%s9759_s1 + $0x540] sm:$0xf]  ;;  %v4543_v33 = vor.u32 %v6280_v27, %v4542_v26  ;;  %2757 = vmatpush.bf16.msra.mxu0 %v4287_v29 }
  0x16   :  { %v6344_v30 = vld [vmem:[%s9759_s1 + $0x55c] sm:$0xf0] }
  0x17   :  { %v5054_v31 = vld [vmem:[%s9759_s1 + $0x740] sm:$0xf]  ;;  %v4799_v34 = vor.u32 %v6344_v30, %v4798_v28  ;;  %2770 = vmatpush.bf16.msra.mxu1 %v4543_v33 }
  0x18   :  { %v6408_v32 = vld [vmem:[%s9759_s1 + $0x75c] sm:$0xf0] }
  0x19   :  { %v4254_v35 = vld [vmem:[%s9759_s1 + $0x100] sm:$0xf]  ;;  %v5055_v38 = vor.u32 %v6408_v32, %v5054_v31  ;;  %2783 = vmatpush.bf16.msra.mxu2 %v4799_v34 }
  0x1a   :  { %v6208_v36 = vld [vmem:[%s9759_s1 + $0x11c] sm:$0xf0] }
  0x1b   :  { %v4510_v37 = vld [vmem:[%s9759_s1 + $0x300] sm:$0xf]  ;;  %v4255_v44 = vor.u32 %v6208_v36, %v4254_v35  ;;  %2796 = vmatpush.bf16.msra.mxu3 %v5055_v38  ;;  %v4352_v38 = vld [vmem:[%s9759_s1 + $0x1e0] sm:$0xf0] }
  0x1c   :  { %v6272_v39 = vld [vmem:[%s9759_s1 + $0x31c] sm:$0xf0] }
  0x1d   :  { %v4766_v40 = vld [vmem:[%s9759_s1 + $0x500] sm:$0xf]  ;;  %v4511_v45 = vor.u32 %v6272_v39, %v4510_v37  ;;  %2758 = vmatpush.bf16.msra.mxu0 %v4255_v44  ;;  %v6228_v37 = vld [vmem:[%s9759_s1 + $0x1c4] sm:$0xf] }
  0x1e   :  { %v6336_v41 = vld [vmem:[%s9759_s1 + $0x51c] sm:$0xf0] }
  0x1f   :  { %v5022_v42 = vld [vmem:[%s9759_s1 + $0x700] sm:$0xf]  ;;  %v4767_v46 = vor.u32 %v6336_v41, %v4766_v40  ;;  %2771 = vmatpush.bf16.msra.mxu1 %v4511_v45 }
  0x20   :  { %v6400_v43 = vld [vmem:[%s9759_s1 + $0x71c] sm:$0xf0] }
  0x21   :  { %v4222_v47 = vld [vmem:[%s9759_s1 + $0xc0] sm:$0xf]  ;;  %v5023_v50 = vor.u32 %v6400_v43, %v5022_v42  ;;  %2784 = vmatpush.bf16.msra.mxu2 %v4767_v46  ;;  %v4355_v46 = vor.u32 %v6228_v37, %v4352_v38 }
  0x22   :  { %v6200_v48 = vld [vmem:[%s9759_s1 + $0xdc] sm:$0xf0] }
  0x23   :  { %v4478_v49 = vld [vmem:[%s9759_s1 + $0x2c0] sm:$0xf]  ;;  %v4223_v56 = vor.u32 %v6200_v48, %v4222_v47  ;;  %2797 = vmatpush.bf16.msra.mxu3 %v5023_v50  ;;  %v6220_v50 = vld [vmem:[%s9759_s1 + $0x184] sm:$0xf] }
  0x24   :  { %v6264_v51 = vld [vmem:[%s9759_s1 + $0x2dc] sm:$0xf0] }
  0x25   :  { %v4734_v52 = vld [vmem:[%s9759_s1 + $0x4c0] sm:$0xf]  ;;  %v4479_v57 = vor.u32 %v6264_v51, %v4478_v49  ;;  %2759 = vmatpush.bf16.msra.mxu0 %v4223_v56  ;;  %v4320_v51 = vld [vmem:[%s9759_s1 + $0x1a0] sm:$0xf0] }
  0x26   :  { %v6328_v53 = vld [vmem:[%s9759_s1 + $0x4dc] sm:$0xf0] }
  0x27   :  { %v4990_v54 = vld [vmem:[%s9759_s1 + $0x6c0] sm:$0xf]  ;;  %v4735_v58 = vor.u32 %v6328_v53, %v4734_v52  ;;  %2772 = vmatpush.bf16.msra.mxu1 %v4479_v57 }
  0x28   :  { %v6392_v55 = vld [vmem:[%s9759_s1 + $0x6dc] sm:$0xf0] }
  0x29   :  { %v4190_v59 = vld [vmem:[%s9759_s1 + $0x80] sm:$0xf]  ;;  %v4991_v62 = vor.u32 %v6392_v55, %v4990_v54  ;;  %2785 = vmatpush.bf16.msra.mxu2 %v4735_v58 }
  0x2a   :  { %v6192_v60 = vld [vmem:[%s9759_s1 + $0x9c] sm:$0xf0] }
  0x2b   :  { %v4446_v61 = vld [vmem:[%s9759_s1 + $0x280] sm:$0xf]  ;;  %v4191_v4 = vor.u32 %v6192_v60, %v4190_v59  ;;  %2798 = vmatpush.bf16.msra.mxu3 %v4991_v62  ;;  %v4323_v59 = vor.u32 %v6220_v50, %v4320_v51  ;;  %v6212_v62 = vld [vmem:[%s9759_s1 + $0x144] sm:$0xf] }
  0x2c   :  { %v6256_v63 = vld [vmem:[%s9759_s1 + $0x29c] sm:$0xf0] }
  0x2d   :  { %v4702_v0 = vld [vmem:[%s9759_s1 + $0x480] sm:$0xf]  ;;  %v4447_v5 = vor.u32 %v6256_v63, %v4446_v61  ;;  %2760 = vmatpush.bf16.msra.mxu0 %v4191_v4  ;;  %v4288_v63 = vld [vmem:[%s9759_s1 + $0x160] sm:$0xf0] }
  0x2e   :  { %v6320_v1 = vld [vmem:[%s9759_s1 + $0x49c] sm:$0xf0] }
  0x2f   :  { %v4958_v2 = vld [vmem:[%s9759_s1 + $0x680] sm:$0xf]  ;;  %v4703_v6 = vor.u32 %v6320_v1, %v4702_v0  ;;  %2773 = vmatpush.bf16.msra.mxu1 %v4447_v5 }
  0x30   :  { %v6384_v3 = vld [vmem:[%s9759_s1 + $0x69c] sm:$0xf0] }
  0x31   :  { %v4158_v7 = vld [vmem:[%s9759_s1 + $0x40] sm:$0xf]  ;;  %v4959_v10 = vor.u32 %v6384_v3, %v4958_v2  ;;  %2786 = vmatpush.bf16.msra.mxu2 %v4703_v6  ;;  %v21_v2 = vld [vmem:[%s9760_s0 + $0x8] sm:$0xff] }
  0x32   :  { %v6184_v8 = vld [vmem:[%s9759_s1 + $0x5c] sm:$0xf0] }
  0x33   :  { %v4414_v9 = vld [vmem:[%s9759_s1 + $0x240] sm:$0xf]  ;;  %v4159_v16 = vor.u32 %v6184_v8, %v4158_v7  ;;  %2799 = vmatpush.bf16.msra.mxu3 %v4959_v10  ;;  %v496_v8 = vunpack.c.l.b16 %v21_v2  ;;  %v497_v10 = vunpack.c.h.b16 %v21_v2 }
  0x34   :  { %v6248_v11 = vld [vmem:[%s9759_s1 + $0x25c] sm:$0xf0] }
  0x35   :  { %v4670_v12 = vld [vmem:[%s9759_s1 + $0x440] sm:$0xf]  ;;  %v4415_v19 = vor.u32 %v6248_v11, %v4414_v9  ;;  %2761 = vmatpush.bf16.msra.mxu0 %v4159_v16  ;;  %v4291_v11 = vor.u32 %v6212_v62, %v4288_v63  ;;  %v6204_v16 = vld [vmem:[%s9759_s1 + $0x104] sm:$0xf] }
  0x36   :  { %v6312_v13 = vld [vmem:[%s9759_s1 + $0x45c] sm:$0xf0] }
  0x37   :  { %v4926_v14 = vld [vmem:[%s9759_s1 + $0x640] sm:$0xf]  ;;  %v4671_v20 = vor.u32 %v6312_v13, %v4670_v12  ;;  %2774 = vmatpush.bf16.msra.mxu1 %v4415_v19 }
  0x38   :  { %v6376_v15 = vld [vmem:[%s9759_s1 + $0x65c] sm:$0xf0] }
  0x39   :  { %v4126_v17 = vld [vmem:[%s9759_s1] sm:$0xf]  ;;  %v4927_v24 = vor.u32 %v6376_v15, %v4926_v14  ;;  %2787 = vmatpush.bf16.msra.mxu2 %v4671_v20  ;;  %v7015_v20 = vpack.c.b16 %v497_v10, %v497_v10  ;;  %v6356_v10 = vld [vmem:[%s9759_s1 + $0x5c4] sm:$0xf] }
  0x3a   :  { %v6176_v18 = vld [vmem:[%s9759_s1 + $0x1c] sm:$0xf0] }
  0x3b   :  { %v4382_v21 = vld [vmem:[%s9759_s1 + $0x200] sm:$0xf]  ;;  %v4127_v31 = vor.u32 %v6176_v18, %v4126_v17  ;;  %2800 = vmatpush.bf16.msra.mxu3 %v4927_v24  ;;  %v4256_v17 = vld [vmem:[%s9759_s1 + $0x120] sm:$0xf0]  ;;  %v7011_v18 = vpack.c.b16 %v496_v8, %v496_v8 }
  0x3c   :  { %v6240_v22 = vld [vmem:[%s9759_s1 + $0x21c] sm:$0xf0]  ;;  %v6292_v8 = vld [vmem:[%s9759_s1 + $0x3c4] sm:$0xf] }
  0x3d   :  { %v4638_v23 = vld [vmem:[%s9759_s1 + $0x400] sm:$0xf]  ;;  %v4383_v35 = vor.u32 %v6240_v22, %v4382_v21  ;;  %2762 = vmatpush.bf16.msra.mxu0 %v4127_v31 }
  0x3e   :  { %v6304_v25 = vld [vmem:[%s9759_s1 + $0x41c] sm:$0xf0] }
  0x3f   :  { %v4894_v26 = vld [vmem:[%s9759_s1 + $0x600] sm:$0xf]  ;;  %v4639_v36 = vor.u32 %v6304_v25, %v4638_v23  ;;  %2775 = vmatpush.bf16.msra.mxu1 %v4383_v35 }
  0x40   :  { %v6368_v27 = vld [vmem:[%s9759_s1 + $0x61c] sm:$0xf0] }
  0x41   :  { %v5374_v28 = vld [vmem:[%s9759_s1 + $0x9c0] sm:$0xf]  ;;  %v4895_v39 = vor.u32 %v6368_v27, %v4894_v26  ;;  %2788 = vmatpush.bf16.msra.mxu2 %v4639_v36 }
  0x42   :  { %v6488_v29 = vld [vmem:[%s9759_s1 + $0x9dc] sm:$0xf0] }
  0x43   :  { %v5630_v30 = vld [vmem:[%s9759_s1 + $0xbc0] sm:$0xf]  ;;  %v5375_v40 = vor.u32 %v6488_v29, %v5374_v28  ;;  %2801 = vmatpush.bf16.msra.mxu3 %v4895_v39  ;;  %v4259_v28 = vor.u32 %v6204_v16, %v4256_v17 }
  0x44   :  { %v6552_v32 = vld [vmem:[%s9759_s1 + $0xbdc] sm:$0xf0]  ;;  %2789 = vmatmul.bf16.vlgmr.msra.gmra.mxu2 %v7011_v18 }
  0x45   :  { %v5886_v33 = vld [vmem:[%s9759_s1 + $0xdc0] sm:$0xf]  ;;  %v5631_v41 = vor.u32 %v6552_v32, %v5630_v30  ;;  %2807 = vmatpush.bf16.msrb.mxu0 %v5375_v40  ;;  %v6196_v32 = vld [vmem:[%s9759_s1 + $0xc4] sm:$0xf] }
  0x46   :  { %v6616_v34 = vld [vmem:[%s9759_s1 + $0xddc] sm:$0xf0]  ;;  %2802 = vmatmul.bf16.vlgmr.msra.gmra.mxu3 %v7015_v20 }
  0x47   :  { %v5887_v42 = vor.u32 %v6616_v34, %v5886_v33  ;;  %v5342_v43 = vld [vmem:[%s9759_s1 + $0x980] sm:$0xf]  ;;  %2820 = vmatpush.bf16.msrb.mxu1 %v5631_v41  ;;  %2846 = vmatpush.bf16.msrb.mxu3 %v4355_v46  ;;  %v4224_v33 = vld [vmem:[%s9759_s1 + $0xe0] sm:$0xf0] }
  0x48   :  { %v6480_v44 = vld [vmem:[%s9759_s1 + $0x99c] sm:$0xf0]  ;;  %v4227_v40 = vor.u32 %v6196_v32, %v4224_v33  ;;  %v6348_v32 = vld [vmem:[%s9759_s1 + $0x584] sm:$0xf] }
  0x49   :  { %v5598_v45 = vld [vmem:[%s9759_s1 + $0xb80] sm:$0xf]  ;;  %v5343_v52 = vor.u32 %v6480_v44, %v5342_v43  ;;  %2833 = vmatpush.bf16.msrb.mxu2 %v5887_v42  ;;  %v6188_v44 = vld [vmem:[%s9759_s1 + $0x84] sm:$0xf] }
  0x4a   :  { %v6544_v47 = vld [vmem:[%s9759_s1 + $0xb9c] sm:$0xf0] }
  0x4b   :  { %v5854_v48 = vld [vmem:[%s9759_s1 + $0xd80] sm:$0xf]  ;;  %v5599_v54 = vor.u32 %v6544_v47, %v5598_v45  ;;  %2808 = vmatpush.bf16.msrb.mxu0 %v5343_v52  ;;  %2847 = vmatpush.bf16.msrb.mxu3 %v4323_v59  ;;  %v4192_v45 = vld [vmem:[%s9759_s1 + $0xa0] sm:$0xf0] }
  0x4c   :  { %v6608_v49 = vld [vmem:[%s9759_s1 + $0xd9c] sm:$0xf0]  ;;  %v4195_v52 = vor.u32 %v6188_v44, %v4192_v45  ;;  %v6276_v45 = vld [vmem:[%s9759_s1 + $0x344] sm:$0xf] }
  0x4d   :  { %v5310_v53 = vld [vmem:[%s9759_s1 + $0x940] sm:$0xf]  ;;  %v5855_v55 = vor.u32 %v6608_v49, %v5854_v48  ;;  %2821 = vmatpush.bf16.msrb.mxu1 %v5599_v54 }
  0x4e   :  { %v6472_v56 = vld [vmem:[%s9759_s1 + $0x95c] sm:$0xf0] }
  0x4f   :  { %v5566_v57 = vld [vmem:[%s9759_s1 + $0xb40] sm:$0xf]  ;;  %v5311_v0 = vor.u32 %v6472_v56, %v5310_v53  ;;  %2834 = vmatpush.bf16.msrb.mxu2 %v5855_v55  ;;  %2848 = vmatpush.bf16.msrb.mxu3 %v4291_v11  ;;  %v6180_v56 = vld [vmem:[%s9759_s1 + $0x44] sm:$0xf] }
  0x50   :  { %v6536_v58 = vld [vmem:[%s9759_s1 + $0xb5c] sm:$0xf0] }
  0x51   :  { %v5822_v60 = vld [vmem:[%s9759_s1 + $0xd40] sm:$0xf]  ;;  %v5567_v1 = vor.u32 %v6536_v58, %v5566_v57  ;;  %2809 = vmatpush.bf16.msrb.mxu0 %v5311_v0  ;;  %v4160_v57 = vld [vmem:[%s9759_s1 + $0x60] sm:$0xf0] }
  0x52   :  { %v6600_v61 = vld [vmem:[%s9759_s1 + $0xd5c] sm:$0xf0] }
  0x53   :  { %v20_v3 = vld [vmem:[%s9760_s0] sm:$0xff]  ;;  %v5823_v4 = vor.u32 %v6600_v61, %v5822_v60  ;;  %2822 = vmatpush.bf16.msrb.mxu1 %v5567_v1  ;;  %2849 = vmatpush.bf16.msrb.mxu3 %v4259_v28 }
  0x54   :  { %v5278_v5 = vld [vmem:[%s9759_s1 + $0x900] sm:$0xf]  ;;  %v494_v9 = vunpack.c.l.b16 %v20_v3  ;;  %v495_v15 = vunpack.c.h.b16 %v20_v3  ;;  %v23_v3 = vld [vmem:[%s9760_s0 + $0x18] sm:$0xf] }
  0x55   :  { %v6464_v6 = vld [vmem:[%s9759_s1 + $0x91c] sm:$0xf0]  ;;  %2835 = vmatpush.bf16.msrb.mxu2 %v5823_v4  ;;  %v4163_v4 = vor.u32 %v6180_v56, %v4160_v57  ;;  %v6268_v57 = vld [vmem:[%s9759_s1 + $0x304] sm:$0xf] }
  0x56   :  { %v5534_v7 = vld [vmem:[%s9759_s1 + $0xb00] sm:$0xf]  ;;  %v7013_v19 = vpack.c.b16 %v494_v9, %v494_v9  ;;  %v5279_v21 = vor.u32 %v6464_v6, %v5278_v5  ;;  %v7017_v22 = vpack.c.b16 %v495_v15, %v495_v15  ;;  %v6172_v5 = vld [vmem:[%s9759_s1 + $0x4] sm:$0xf]  ;;  %v500_v15 = vunpack.c.l.b16 %v23_v3 }
  0x57   :  { %v6528_v12 = vld [vmem:[%s9759_s1 + $0xb1c] sm:$0xf0]  ;;  %2850 = vmatpush.bf16.msrb.mxu3 %v4227_v40  ;;  %v4128_v6 = vld [vmem:[%s9759_s1 + $0x20] sm:$0xf0] }
  0x58   :  { %v5790_v13 = vld [vmem:[%s9759_s1 + $0xd00] sm:$0xf]  ;;  %v5535_v23 = vor.u32 %v6528_v12, %v5534_v7  ;;  %2763 = vmatmul.bf16.vlgmr.msra.gmra.mxu0 %v7013_v19  ;;  %2776 = vmatmul.bf16.vlgmr.msra.gmra.mxu1 %v7017_v22  ;;  %v22_v7 = vld [vmem:[%s9760_s0 + $0x10] sm:$0xff]  ;;  %v4608_v9 = vld [vmem:[%s9759_s1 + $0x3e0] sm:$0xf0] }
  0x59   :  { %v6592_v14 = vld [vmem:[%s9759_s1 + $0xd1c] sm:$0xf0]  ;;  %2810 = vmatpush.bf16.msrb.mxu0 %v5279_v21  ;;  %v4864_v12 = vld [vmem:[%s9759_s1 + $0x5e0] sm:$0xf0] }
  0x5a   :  { %v5791_v24 = vor.u32 %v6592_v14, %v5790_v13  ;;  %v5246_v25 = vld [vmem:[%s9759_s1 + $0x8c0] sm:$0xf]  ;;  %2823 = vmatpush.bf16.msrb.mxu1 %v5535_v23  ;;  %v6420_v13 = vld [vmem:[%s9759_s1 + $0x7c4] sm:$0xf]  ;;  %v4867_v28 = vor.u32 %v6356_v10, %v4864_v12 }
  0x5b   :  { %v6456_v26 = vld [vmem:[%s9759_s1 + $0x8dc] sm:$0xf0]  ;;  %2851 = vmatpush.bf16.msrb.mxu3 %v4195_v52  ;;  %v5120_v14 = vld [vmem:[%s9759_s1 + $0x7e0] sm:$0xf0] }
  0x5c   :  { %v5502_v27 = vld [vmem:[%s9759_s1 + $0xac0] sm:$0xf]  ;;  %v5247_v34 = vor.u32 %v6456_v26, %v5246_v25  ;;  %2836 = vmatpush.bf16.msrb.mxu2 %v5791_v24  ;;  %v6484_v21 = vld [vmem:[%s9759_s1 + $0x9c4] sm:$0xf]  ;;  %v498_v24 = vunpack.c.l.b16 %v22_v7  ;;  %v499_v25 = vunpack.c.h.b16 %v22_v7  ;;  %v4131_v26 = vor.u32 %v6172_v5, %v4128_v6 }
  0x5d   :  { %v6520_v29 = vld [vmem:[%s9759_s1 + $0xadc] sm:$0xf0]  ;;  %v5376_v23 = vld [vmem:[%s9759_s1 + $0x9e0] sm:$0xf0] }
  0x5e   :  { %v5758_v30 = vld [vmem:[%s9759_s1 + $0xcc0] sm:$0xf]  ;;  %v5503_v35 = vor.u32 %v6520_v29, %v5502_v27  ;;  %2811 = vmatpush.bf16.msrb.mxu0 %v5247_v34  ;;  %v4611_v27 = vor.u32 %v6292_v8, %v4608_v9  ;;  %v5123_v29 = vor.u32 %v6420_v13, %v5120_v14  ;;  %v5379_v33 = vor.u32 %v6484_v21, %v5376_v23  ;;  %v4832_v34 = vld [vmem:[%s9759_s1 + $0x5a0] sm:$0xf0] }
  0x5f   :  { %v6584_v31 = vld [vmem:[%s9759_s1 + $0xcdc] sm:$0xf0]  ;;  %2852 = vmatpush.bf16.msrb.mxu3 %v4163_v4  ;;  %v7175_v40 = vpack.c.b16 %v498_v24, %v498_v24  ;;  %v6468_v52 = vld [vmem:[%s9759_s1 + $0x944] sm:$0xf] }
  0x60   :  { %v5759_v36 = vor.u32 %v6584_v31, %v5758_v30  ;;  %v5214_v37 = vld [vmem:[%s9759_s1 + $0x880] sm:$0xf]  ;;  %2824 = vmatpush.bf16.msrb.mxu1 %v5503_v35  ;;  %v6284_v30 = vld [vmem:[%s9759_s1 + $0x384] sm:$0xf] }
  0x61   :  { %v6448_v38 = vld [vmem:[%s9759_s1 + $0x89c] sm:$0xf0]  ;;  %v4576_v31 = vld [vmem:[%s9759_s1 + $0x3a0] sm:$0xf0] }
  0x62   :  { %v5470_v39 = vld [vmem:[%s9759_s1 + $0xa80] sm:$0xf]  ;;  %v5215_v46 = vor.u32 %v6448_v38, %v5214_v37  ;;  %2837 = vmatpush.bf16.msrb.mxu2 %v5759_v36  ;;  %v6412_v35 = vld [vmem:[%s9759_s1 + $0x784] sm:$0xf]  ;;  %v7167_v37 = vpack.c.b16 %v500_v15, %v500_v15 }
  0x63   :  { %v6512_v41 = vld [vmem:[%s9759_s1 + $0xa9c] sm:$0xf0]  ;;  %v5088_v36 = vld [vmem:[%s9759_s1 + $0x7a0] sm:$0xf0]  ;;  %2853 = vmatpush.bf16.msrb.mxu3 %v4131_v26 }
  0x64   :  { %v5726_v42 = vld [vmem:[%s9759_s1 + $0xc80] sm:$0xf]  ;;  %v5471_v47 = vor.u32 %v6512_v41, %v5470_v39  ;;  %2812 = vmatpush.bf16.msrb.mxu0 %v5215_v46  ;;  %v6476_v38 = vld [vmem:[%s9759_s1 + $0x984] sm:$0xf]  ;;  %v7177_v41 = vpack.c.b16 %v499_v25, %v499_v25  ;;  %v5091_v44 = vor.u32 %v6412_v35, %v5088_v36 }
  0x65   :  { %v6576_v43 = vld [vmem:[%s9759_s1 + $0xc9c] sm:$0xf0]  ;;  %v5344_v39 = vld [vmem:[%s9759_s1 + $0x9a0] sm:$0xf0] }
  0x66   :  { %v5727_v48 = vor.u32 %v6576_v43, %v5726_v42  ;;  %v5182_v49 = vld [vmem:[%s9759_s1 + $0x840] sm:$0xf]  ;;  %2825 = vmatpush.bf16.msrb.mxu1 %v5471_v47  ;;  %v4579_v42 = vor.u32 %v6284_v30, %v4576_v31  ;;  %v4835_v43 = vor.u32 %v6348_v32, %v4832_v34  ;;  %v4544_v46 = vld [vmem:[%s9759_s1 + $0x360] sm:$0xf0]  ;;  %2854 = vmatmul.bf16.vlgmr.msrb.gmra.mxu3 %v7013_v19 }
  0x67   :  { %v6440_v50 = vld [vmem:[%s9759_s1 + $0x85c] sm:$0xf0]  ;;  %v6340_v47 = vld [vmem:[%s9759_s1 + $0x544] sm:$0xf]  ;;  %2898 = vmatpush.bf16.msra.mxu3 %v5379_v33 }
  0x68   :  { %v5438_v51 = vld [vmem:[%s9759_s1 + $0xa40] sm:$0xf]  ;;  %v5183_v59 = vor.u32 %v6440_v50, %v5182_v49  ;;  %2838 = vmatpush.bf16.msrb.mxu2 %v5727_v48  ;;  %v5347_v48 = vor.u32 %v6476_v38, %v5344_v39  ;;  %v4800_v49 = vld [vmem:[%s9759_s1 + $0x560] sm:$0xf0] }
  0x69   :  { %v6504_v53 = vld [vmem:[%s9759_s1 + $0xa5c] sm:$0xf0]  ;;  %v6404_v50 = vld [vmem:[%s9759_s1 + $0x744] sm:$0xf] }
  0x6a   :  { %v5694_v54 = vld [vmem:[%s9759_s1 + $0xc40] sm:$0xf]  ;;  %v5439_v63 = vor.u32 %v6504_v53, %v5438_v51  ;;  %2813 = vmatpush.bf16.msrb.mxu0 %v5183_v59  ;;  %v5056_v51 = vld [vmem:[%s9759_s1 + $0x760] sm:$0xf0] }
  0x6b   :  { %v6568_v55 = vld [vmem:[%s9759_s1 + $0xc5c] sm:$0xf0]  ;;  %v5312_v53 = vld [vmem:[%s9759_s1 + $0x960] sm:$0xf0]  ;;  %v5059_v56 = vor.u32 %v6404_v50, %v5056_v51  ;;  %2899 = vmatpush.bf16.msra.mxu3 %v5347_v48 }
  0x6c   :  { %v5150_v58 = vld [vmem:[%s9759_s1 + $0x800] sm:$0xf]  ;;  %v5695_v0 = vor.u32 %v6568_v55, %v5694_v54  ;;  %2826 = vmatpush.bf16.msrb.mxu1 %v5439_v63  ;;  %v4547_v54 = vor.u32 %v6276_v45, %v4544_v46  ;;  %v4803_v55 = vor.u32 %v6340_v47, %v4800_v49  ;;  %v6332_v59 = vld [vmem:[%s9759_s1 + $0x504] sm:$0xf] }
  0x6d   :  { %v6432_v60 = vld [vmem:[%s9759_s1 + $0x81c] sm:$0xf0]  ;;  %v5024_v63 = vld [vmem:[%s9759_s1 + $0x720] sm:$0xf0] }
  0x6e   :  { %v5406_v61 = vld [vmem:[%s9759_s1 + $0xa00] sm:$0xf]  ;;  %v5151_v11 = vor.u32 %v6432_v60, %v5150_v58  ;;  %2839 = vmatpush.bf16.msrb.mxu2 %v5695_v0  ;;  %v4512_v58 = vld [vmem:[%s9759_s1 + $0x320] sm:$0xf0]  ;;  %v5315_v60 = vor.u32 %v6468_v52, %v5312_v53 }
  0x6f   :  { %v6496_v62 = vld [vmem:[%s9759_s1 + $0xa1c] sm:$0xf0]  ;;  %v6460_v0 = vld [vmem:[%s9759_s1 + $0x904] sm:$0xf] }
  0x70   :  { %v5662_v1 = vld [vmem:[%s9759_s1 + $0xc00] sm:$0xf]  ;;  %v5407_v16 = vor.u32 %v6496_v62, %v5406_v61  ;;  %2814 = vmatpush.bf16.msrb.mxu0 %v5151_v11  ;;  %v4768_v61 = vld [vmem:[%s9759_s1 + $0x520] sm:$0xf0]  ;;  %2900 = vmatpush.bf16.msra.mxu3 %v5315_v60 }
  0x71   :  { %v6560_v2 = vld [vmem:[%s9759_s1 + $0xc1c] sm:$0xf0]  ;;  %v6396_v62 = vld [vmem:[%s9759_s1 + $0x704] sm:$0xf]  ;;  %v4771_v3 = vor.u32 %v6332_v59, %v4768_v61 }
  0x72   :  { %v5663_v17 = vor.u32 %v6560_v2, %v5662_v1  ;;  %2827 = vmatpush.bf16.msrb.mxu1 %v5407_v16  ;;  %v5280_v1 = vld [vmem:[%s9759_s1 + $0x920] sm:$0xf0]  ;;  %v4515_v2 = vor.u32 %v6268_v57, %v4512_v58  ;;  %v5027_v4 = vor.u32 %v6396_v62, %v5024_v63  ;;  %v4358_v62 = vld [vmem:[%s9759_s1 + $0x1c8] sm:$0xf] }
  0x73   :  { %2815 = vmatmul.bf16.vlgmr.msrb.gmra.mxu0 %v7175_v40  ;;  %v6260_v5 = vld [vmem:[%s9759_s1 + $0x2c4] sm:$0xf]  ;;  %v5283_v8 = vor.u32 %v6460_v0, %v5280_v1  ;;  %v6233_v63 = vld [vmem:[%s9759_s1 + $0x1e4] sm:$0xf0] }
  0x74   :  { %2840 = vmatpush.bf16.msrb.mxu2 %v5663_v17  ;;  %2859 = vmatpush.bf16.msra.mxu0 %v4611_v27  ;;  %v4480_v6 = vld [vmem:[%s9759_s1 + $0x2e0] sm:$0xf0] }
  0x75   :  { %2828 = vmatmul.bf16.vlgmr.msrb.gmra.mxu1 %v7177_v41  ;;  %v6324_v7 = vld [vmem:[%s9759_s1 + $0x4c4] sm:$0xf]  ;;  %v4483_v14 = vor.u32 %v6260_v5, %v4480_v6  ;;  %2901 = vmatpush.bf16.msra.mxu3 %v5283_v8 }
  0x76   :  { %2872 = vmatpush.bf16.msra.mxu1 %v4867_v28  ;;  %v4736_v9 = vld [vmem:[%s9759_s1 + $0x4e0] sm:$0xf0] }
  0x77   :  { %2841 = vmatmul.bf16.vlgmr.msrb.gmra.mxu2 %v7167_v37  ;;  %v6388_v10 = vld [vmem:[%s9759_s1 + $0x6c4] sm:$0xf]  ;;  %v4739_v15 = vor.u32 %v6324_v7, %v4736_v9  ;;  %v4359_v7 = vor.u32 %v6233_v63, %v4358_v62 }
  0x78   :  { %2885 = vmatpush.bf16.msra.mxu2 %v5123_v29  ;;  %2860 = vmatpush.bf16.msra.mxu0 %v4579_v42  ;;  %v4992_v11 = vld [vmem:[%s9759_s1 + $0x6e0] sm:$0xf0] }
  0x79   :  { %v6452_v12 = vld [vmem:[%s9759_s1 + $0x8c4] sm:$0xf]  ;;  %v4995_v16 = vor.u32 %v6388_v10, %v4992_v11 }
  0x7a   :  { %2873 = vmatpush.bf16.msra.mxu1 %v4835_v43  ;;  %v5248_v13 = vld [vmem:[%s9759_s1 + $0x8e0] sm:$0xf0] }
  0x7b   :  { %v6252_v17 = vld [vmem:[%s9759_s1 + $0x284] sm:$0xf]  ;;  %v5251_v24 = vor.u32 %v6452_v12, %v5248_v13  ;;  %v4326_v13 = vld [vmem:[%s9759_s1 + $0x188] sm:$0xf] }
  0x7c   :  { %2886 = vmatpush.bf16.msra.mxu2 %v5091_v44  ;;  %2861 = vmatpush.bf16.msra.mxu0 %v4547_v54  ;;  %v4448_v21 = vld [vmem:[%s9759_s1 + $0x2a0] sm:$0xf0] }
  0x7d   :  { %v6316_v23 = vld [vmem:[%s9759_s1 + $0x484] sm:$0xf]  ;;  %v4451_v30 = vor.u32 %v6252_v17, %v4448_v21  ;;  %2902 = vmatpush.bf16.msra.mxu3 %v5251_v24 }
  0x7e   :  { %2874 = vmatpush.bf16.msra.mxu1 %v4803_v55  ;;  %v4704_v25 = vld [vmem:[%s9759_s1 + $0x4a0] sm:$0xf0] }
  0x7f   :  { %v6380_v26 = vld [vmem:[%s9759_s1 + $0x684] sm:$0xf]  ;;  %v4707_v31 = vor.u32 %v6316_v23, %v4704_v25 }
  0x80   :  { %2887 = vmatpush.bf16.msra.mxu2 %v5059_v56  ;;  %2862 = vmatpush.bf16.msra.mxu0 %v4515_v2  ;;  %v4960_v27 = vld [vmem:[%s9759_s1 + $0x6a0] sm:$0xf0]  ;;  %v4614_v2 = vld [vmem:[%s9759_s1 + $0x3c8] sm:$0xf] }
  0x81   :  { %v6444_v28 = vld [vmem:[%s9759_s1 + $0x884] sm:$0xf]  ;;  %v4963_v32 = vor.u32 %v6380_v26, %v4960_v27 }
  0x82   :  { %2875 = vmatpush.bf16.msra.mxu1 %v4771_v3  ;;  %v5216_v29 = vld [vmem:[%s9759_s1 + $0x8a0] sm:$0xf0]  ;;  %v6297_v3 = vld [vmem:[%s9759_s1 + $0x3e4] sm:$0xf0] }
  0x83   :  { %v6244_v33 = vld [vmem:[%s9759_s1 + $0x244] sm:$0xf]  ;;  %v5219_v36 = vor.u32 %v6444_v28, %v5216_v29  ;;  %v4615_v11 = vor.u32 %v6297_v3, %v4614_v2  ;;  %v4294_v29 = vld [vmem:[%s9759_s1 + $0x148] sm:$0xf] }
  0x84   :  { %2888 = vmatpush.bf16.msra.mxu2 %v5027_v4  ;;  %2863 = vmatpush.bf16.msra.mxu0 %v4483_v14  ;;  %v4416_v34 = vld [vmem:[%s9759_s1 + $0x260] sm:$0xf0]  ;;  %v6225_v14 = vld [vmem:[%s9759_s1 + $0x1a4] sm:$0xf0] }
  0x85   :  { %v6308_v35 = vld [vmem:[%s9759_s1 + $0x444] sm:$0xf]  ;;  %v4419_v45 = vor.u32 %v6244_v33, %v4416_v34  ;;  %2903 = vmatpush.bf16.msra.mxu3 %v5219_v36  ;;  %v4327_v23 = vor.u32 %v6225_v14, %v4326_v13 }
  0x86   :  { %2876 = vmatpush.bf16.msra.mxu1 %v4739_v15  ;;  %v4672_v38 = vld [vmem:[%s9759_s1 + $0x460] sm:$0xf0]  ;;  %v4582_v15 = vld [vmem:[%s9759_s1 + $0x388] sm:$0xf] }
  0x87   :  { %v6372_v39 = vld [vmem:[%s9759_s1 + $0x644] sm:$0xf]  ;;  %v4675_v48 = vor.u32 %v6308_v35, %v4672_v38 }
  0x88   :  { %2889 = vmatpush.bf16.msra.mxu2 %v4995_v16  ;;  %v4928_v42 = vld [vmem:[%s9759_s1 + $0x660] sm:$0xf0]  ;;  %2864 = vmatpush.bf16.msra.mxu0 %v4451_v30  ;;  %v6289_v16 = vld [vmem:[%s9759_s1 + $0x3a4] sm:$0xf0] }
  0x89   :  { %v6436_v43 = vld [vmem:[%s9759_s1 + $0x844] sm:$0xf]  ;;  %v4931_v49 = vor.u32 %v6372_v39, %v4928_v42  ;;  %v4583_v27 = vor.u32 %v6289_v16, %v4582_v15  ;;  %v6217_v30 = vld [vmem:[%s9759_s1 + $0x164] sm:$0xf0] }
  0x8a   :  { %v5184_v44 = vld [vmem:[%s9759_s1 + $0x860] sm:$0xf0]  ;;  %2877 = vmatpush.bf16.msra.mxu1 %v4707_v31  ;;  %v4550_v31 = vld [vmem:[%s9759_s1 + $0x348] sm:$0xf]  ;;  %v4295_v35 = vor.u32 %v6217_v30, %v4294_v29 }
  0x8b   :  { %v6236_v46 = vld [vmem:[%s9759_s1 + $0x204] sm:$0xf]  ;;  %v5187_v53 = vor.u32 %v6436_v43, %v5184_v44  ;;  %v4262_v44 = vld [vmem:[%s9759_s1 + $0x108] sm:$0xf] }
  0x8c   :  { %v4384_v47 = vld [vmem:[%s9759_s1 + $0x220] sm:$0xf0]  ;;  %2890 = vmatpush.bf16.msra.mxu2 %v4963_v32  ;;  %2865 = vmatpush.bf16.msra.mxu0 %v4419_v45  ;;  %v6281_v32 = vld [vmem:[%s9759_s1 + $0x364] sm:$0xf0] }
  0x8d   :  { %v6300_v50 = vld [vmem:[%s9759_s1 + $0x404] sm:$0xf]  ;;  %v4387_v60 = vor.u32 %v6236_v46, %v4384_v47  ;;  %2904 = vmatpush.bf16.msra.mxu3 %v5187_v53  ;;  %v4551_v42 = vor.u32 %v6281_v32, %v4550_v31  ;;  %v6209_v45 = vld [vmem:[%s9759_s1 + $0x124] sm:$0xf0] }
  0x8e   :  { %v4640_v51 = vld [vmem:[%s9759_s1 + $0x420] sm:$0xf0]  ;;  %2878 = vmatpush.bf16.msra.mxu1 %v4675_v48  ;;  %v4518_v46 = vld [vmem:[%s9759_s1 + $0x308] sm:$0xf] }
  0x8f   :  { %v6364_v52 = vld [vmem:[%s9759_s1 + $0x604] sm:$0xf]  ;;  %v4643_v0 = vor.u32 %v6300_v50, %v4640_v51  ;;  %v6273_v47 = vld [vmem:[%s9759_s1 + $0x324] sm:$0xf0]  ;;  %v4263_v50 = vor.u32 %v6209_v45, %v4262_v44 }
  0x90   :  { %v4896_v54 = vld [vmem:[%s9759_s1 + $0x620] sm:$0xf0]  ;;  %2891 = vmatpush.bf16.msra.mxu2 %v4931_v49  ;;  %2866 = vmatpush.bf16.msra.mxu0 %v4387_v60  ;;  %v4166_v16 = vld [vmem:[%s9759_s1 + $0x48] sm:$0xf] }
  0x91   :  { %v6428_v55 = vld [vmem:[%s9759_s1 + $0x804] sm:$0xf]  ;;  %v4899_v1 = vor.u32 %v6364_v52, %v4896_v54  ;;  %v4519_v54 = vor.u32 %v6273_v47, %v4518_v46  ;;  %v4134_v31 = vld [vmem:[%s9759_s1 + $0x8] sm:$0xf] }
  0x92   :  { %v5152_v56 = vld [vmem:[%s9759_s1 + $0x820] sm:$0xf0]  ;;  %2879 = vmatpush.bf16.msra.mxu1 %v4643_v0  ;;  %v5382_v44 = vld [vmem:[%s9759_s1 + $0x9c8] sm:$0xf] }
  0x93   :  { %v6548_v57 = vld [vmem:[%s9759_s1 + $0xbc4] sm:$0xf]  ;;  %v5155_v4 = vor.u32 %v6428_v55, %v5152_v56  ;;  %2867 = vmatmul.bf16.vlgmr.msra.gmra.mxu0 %v7017_v22  ;;  %v4230_v56 = vld [vmem:[%s9759_s1 + $0xc8] sm:$0xf] }
  0x94   :  { %v5632_v58 = vld [vmem:[%s9759_s1 + $0xbe0] sm:$0xf0]  ;;  %2892 = vmatpush.bf16.msra.mxu2 %v4899_v1  ;;  %v6489_v45 = vld [vmem:[%s9759_s1 + $0x9e4] sm:$0xf0] }
  0x95   :  { %v6612_v59 = vld [vmem:[%s9759_s1 + $0xdc4] sm:$0xf]  ;;  %v5635_v5 = vor.u32 %v6548_v57, %v5632_v58  ;;  %2905 = vmatpush.bf16.msra.mxu3 %v5155_v4  ;;  %2880 = vmatmul.bf16.vlgmr.msra.gmra.mxu1 %v7011_v18  ;;  %v6201_v57 = vld [vmem:[%s9759_s1 + $0xe4] sm:$0xf0] }
  0x96   :  { %v5888_v61 = vld [vmem:[%s9759_s1 + $0xde0] sm:$0xf0]  ;;  %v4486_v58 = vld [vmem:[%s9759_s1 + $0x2c8] sm:$0xf]  ;;  %v4231_v62 = vor.u32 %v6201_v57, %v4230_v56 }
  0x97   :  { %v5891_v6 = vor.u32 %v6612_v59, %v5888_v61  ;;  %v6540_v8 = vld [vmem:[%s9759_s1 + $0xb84] sm:$0xf]  ;;  %2911 = vmatpush.bf16.msrb.mxu0 %v5635_v5  ;;  %2893 = vmatmul.bf16.vlgmr.msra.gmra.mxu2 %v7015_v20  ;;  %v6265_v59 = vld [vmem:[%s9759_s1 + $0x2e4] sm:$0xf0] }
  0x98   :  { %v5600_v9 = vld [vmem:[%s9759_s1 + $0xba0] sm:$0xf0]  ;;  %2937 = vmatpush.bf16.msrb.mxu2 %v4359_v7  ;;  %2906 = vmatmul.bf16.vlgmr.msra.gmra.mxu3 %v7175_v40  ;;  %v4487_v2 = vor.u32 %v6265_v59, %v4486_v58  ;;  %v4198_v4 = vld [vmem:[%s9759_s1 + $0x88] sm:$0xf] }
  0x99   :  { %v6604_v10 = vld [vmem:[%s9759_s1 + $0xd84] sm:$0xf]  ;;  %v5603_v17 = vor.u32 %v6540_v8, %v5600_v9  ;;  %2924 = vmatpush.bf16.msrb.mxu1 %v5891_v6  ;;  %2950 = vmatpush.bf16.msrb.mxu3 %v4615_v11  ;;  %v6193_v5 = vld [vmem:[%s9759_s1 + $0xa4] sm:$0xf0] }
  0x9a   :  { %v5856_v12 = vld [vmem:[%s9759_s1 + $0xda0] sm:$0xf0]  ;;  %v4454_v6 = vld [vmem:[%s9759_s1 + $0x288] sm:$0xf] }
  0x9b   :  { %v5859_v21 = vor.u32 %v6604_v10, %v5856_v12  ;;  %v6532_v24 = vld [vmem:[%s9759_s1 + $0xb44] sm:$0xf]  ;;  %2912 = vmatpush.bf16.msrb.mxu0 %v5603_v17  ;;  %v6257_v7 = vld [vmem:[%s9759_s1 + $0x2a4] sm:$0xf0]  ;;  %v4199_v10 = vor.u32 %v6193_v5, %v4198_v4 }
  0x9c   :  { %v5568_v25 = vld [vmem:[%s9759_s1 + $0xb60] sm:$0xf0]  ;;  %2938 = vmatpush.bf16.msrb.mxu2 %v4327_v23  ;;  %v4455_v14 = vor.u32 %v6257_v7, %v4454_v6  ;;  %v6185_v17 = vld [vmem:[%s9759_s1 + $0x64] sm:$0xf0] }
  0x9d   :  { %v6596_v26 = vld [vmem:[%s9759_s1 + $0xd44] sm:$0xf]  ;;  %v5571_v33 = vor.u32 %v6532_v24, %v5568_v25  ;;  %2925 = vmatpush.bf16.msrb.mxu1 %v5859_v21  ;;  %2951 = vmatpush.bf16.msrb.mxu3 %v4583_v27  ;;  %v4422_v21 = vld [vmem:[%s9759_s1 + $0x248] sm:$0xf] }
  0x9e   :  { %v5824_v28 = vld [vmem:[%s9759_s1 + $0xd60] sm:$0xf0]  ;;  %v6249_v23 = vld [vmem:[%s9759_s1 + $0x264] sm:$0xf0] }
  0x9f   :  { %v5827_v34 = vor.u32 %v6596_v26, %v5824_v28  ;;  %v6524_v36 = vld [vmem:[%s9759_s1 + $0xb04] sm:$0xf]  ;;  %2913 = vmatpush.bf16.msrb.mxu0 %v5571_v33  ;;  %v4167_v28 = vor.u32 %v6185_v17, %v4166_v16  ;;  %v4423_v32 = vor.u32 %v6249_v23, %v4422_v21  ;;  %v6177_v33 = vld [vmem:[%s9759_s1 + $0x24] sm:$0xf0] }
  0xa0   :  { %v5536_v38 = vld [vmem:[%s9759_s1 + $0xb20] sm:$0xf0]  ;;  %2939 = vmatpush.bf16.msrb.mxu2 %v4295_v35  ;;  %v6241_v35 = vld [vmem:[%s9759_s1 + $0x224] sm:$0xf0]  ;;  %v4135_v47 = vor.u32 %v6177_v33, %v4134_v31 }
  0xa1   :  { %v6588_v39 = vld [vmem:[%s9759_s1 + $0xd04] sm:$0xf]  ;;  %v5539_v48 = vor.u32 %v6524_v36, %v5536_v38  ;;  %2926 = vmatpush.bf16.msrb.mxu1 %v5827_v34  ;;  %2952 = vmatpush.bf16.msrb.mxu3 %v4551_v42  ;;  %v4390_v34 = vld [vmem:[%s9759_s1 + $0x208] sm:$0xf] }
  0xa2   :  { %v5792_v43 = vld [vmem:[%s9759_s1 + $0xd20] sm:$0xf0]  ;;  %v4870_v36 = vld [vmem:[%s9759_s1 + $0x5c8] sm:$0xf] }
  0xa3   :  { %v5795_v49 = vor.u32 %v6588_v39, %v5792_v43  ;;  %v6516_v51 = vld [vmem:[%s9759_s1 + $0xac4] sm:$0xf]  ;;  %2914 = vmatpush.bf16.msrb.mxu0 %v5539_v48  ;;  %v6361_v38 = vld [vmem:[%s9759_s1 + $0x5e4] sm:$0xf0] }
  0xa4   :  { %v5504_v52 = vld [vmem:[%s9759_s1 + $0xae0] sm:$0xf0]  ;;  %2940 = vmatpush.bf16.msrb.mxu2 %v4263_v50  ;;  %v5126_v39 = vld [vmem:[%s9759_s1 + $0x7c8] sm:$0xf]  ;;  %v4391_v50 = vor.u32 %v6241_v35, %v4390_v34 }
  0xa5   :  { %v6580_v53 = vld [vmem:[%s9759_s1 + $0xcc4] sm:$0xf]  ;;  %v5507_v60 = vor.u32 %v6516_v51, %v5504_v52  ;;  %2927 = vmatpush.bf16.msrb.mxu1 %v5795_v49  ;;  %2953 = vmatpush.bf16.msrb.mxu3 %v4519_v54  ;;  %v6425_v43 = vld [vmem:[%s9759_s1 + $0x7e4] sm:$0xf0]  ;;  %v4871_v51 = vor.u32 %v6361_v38, %v4870_v36 }
  0xa6   :  { %v5760_v55 = vld [vmem:[%s9759_s1 + $0xce0] sm:$0xf0]  ;;  %v5638_v48 = vld [vmem:[%s9759_s1 + $0xbc8] sm:$0xf]  ;;  %v5127_v52 = vor.u32 %v6425_v43, %v5126_v39 }
  0xa7   :  { %v5763_v61 = vor.u32 %v6580_v53, %v5760_v55  ;;  %v6508_v63 = vld [vmem:[%s9759_s1 + $0xa84] sm:$0xf]  ;;  %2915 = vmatpush.bf16.msrb.mxu0 %v5507_v60  ;;  %v6553_v49 = vld [vmem:[%s9759_s1 + $0xbe4] sm:$0xf0]  ;;  %v5383_v53 = vor.u32 %v6489_v45, %v5382_v44 }
  0xa8   :  { %v5472_v0 = vld [vmem:[%s9759_s1 + $0xaa0] sm:$0xf0]  ;;  %2941 = vmatpush.bf16.msrb.mxu2 %v4231_v62  ;;  %v4838_v54 = vld [vmem:[%s9759_s1 + $0x588] sm:$0xf]  ;;  %v5639_v57 = vor.u32 %v6553_v49, %v5638_v48 }
  0xa9   :  { %v6572_v1 = vld [vmem:[%s9759_s1 + $0xc84] sm:$0xf]  ;;  %v5475_v8 = vor.u32 %v6508_v63, %v5472_v0  ;;  %2928 = vmatpush.bf16.msrb.mxu1 %v5763_v61  ;;  %2954 = vmatpush.bf16.msrb.mxu3 %v4487_v2  ;;  %v6353_v55 = vld [vmem:[%s9759_s1 + $0x5a4] sm:$0xf0] }
  0xaa   :  { %v5728_v3 = vld [vmem:[%s9759_s1 + $0xca0] sm:$0xf0]  ;;  %v5094_v56 = vld [vmem:[%s9759_s1 + $0x788] sm:$0xf]  ;;  %v4839_v63 = vor.u32 %v6353_v55, %v4838_v54 }
  0xab   :  { %v5731_v9 = vor.u32 %v6572_v1, %v5728_v3  ;;  %v6500_v11 = vld [vmem:[%s9759_s1 + $0xa44] sm:$0xf]  ;;  %2916 = vmatpush.bf16.msrb.mxu0 %v5475_v8  ;;  %v6417_v58 = vld [vmem:[%s9759_s1 + $0x7a4] sm:$0xf0] }
  0xac   :  { %v5440_v12 = vld [vmem:[%s9759_s1 + $0xa60] sm:$0xf0]  ;;  %2942 = vmatpush.bf16.msrb.mxu2 %v4199_v10  ;;  %v5350_v59 = vld [vmem:[%s9759_s1 + $0x988] sm:$0xf]  ;;  %v5095_v0 = vor.u32 %v6417_v58, %v5094_v56 }
  0xad   :  { %v6564_v13 = vld [vmem:[%s9759_s1 + $0xc44] sm:$0xf]  ;;  %v5443_v24 = vor.u32 %v6500_v11, %v5440_v12  ;;  %2929 = vmatpush.bf16.msrb.mxu1 %v5731_v9  ;;  %2955 = vmatpush.bf16.msrb.mxu3 %v4455_v14  ;;  %v6481_v60 = vld [vmem:[%s9759_s1 + $0x9a4] sm:$0xf0] }
  0xae   :  { %v5696_v15 = vld [vmem:[%s9759_s1 + $0xc60] sm:$0xf0]  ;;  %v5606_v61 = vld [vmem:[%s9759_s1 + $0xb88] sm:$0xf]  ;;  %v5351_v1 = vor.u32 %v6481_v60, %v5350_v59 }
  0xaf   :  { %v6492_v25 = vld [vmem:[%s9759_s1 + $0xa04] sm:$0xf]  ;;  %v5699_v27 = vor.u32 %v6564_v13, %v5696_v15  ;;  %2917 = vmatpush.bf16.msrb.mxu0 %v5443_v24  ;;  %v6545_v62 = vld [vmem:[%s9759_s1 + $0xba4] sm:$0xf0] }
  0xb0   :  { %v5408_v26 = vld [vmem:[%s9759_s1 + $0xa20] sm:$0xf0]  ;;  %2943 = vmatpush.bf16.msrb.mxu2 %v4167_v28  ;;  %v4806_v2 = vld [vmem:[%s9759_s1 + $0x548] sm:$0xf]  ;;  %v5607_v5 = vor.u32 %v6545_v62, %v5606_v61 }
  0xb1   :  { %v6556_v29 = vld [vmem:[%s9759_s1 + $0xc04] sm:$0xf]  ;;  %v5411_v42 = vor.u32 %v6492_v25, %v5408_v26  ;;  %2930 = vmatpush.bf16.msrb.mxu1 %v5699_v27  ;;  %2956 = vmatpush.bf16.msrb.mxu3 %v4423_v32  ;;  %v6345_v3 = vld [vmem:[%s9759_s1 + $0x564] sm:$0xf0] }
  0xb2   :  { %v5664_v30 = vld [vmem:[%s9759_s1 + $0xc20] sm:$0xf0]  ;;  %v5062_v4 = vld [vmem:[%s9759_s1 + $0x748] sm:$0xf]  ;;  %v4807_v11 = vor.u32 %v6345_v3, %v4806_v2 }
  0xb3   :  { %v5667_v46 = vor.u32 %v6556_v29, %v5664_v30  ;;  %2918 = vmatpush.bf16.msrb.mxu0 %v5411_v42  ;;  %v6409_v6 = vld [vmem:[%s9759_s1 + $0x764] sm:$0xf0] }
  0xb4   :  { %2944 = vmatpush.bf16.msrb.mxu2 %v4135_v47  ;;  %v5318_v7 = vld [vmem:[%s9759_s1 + $0x948] sm:$0xf]  ;;  %v5063_v12 = vor.u32 %v6409_v6, %v5062_v4 }
  0xb5   :  { %2931 = vmatpush.bf16.msrb.mxu1 %v5667_v46  ;;  %2957 = vmatpush.bf16.msrb.mxu3 %v4391_v50  ;;  %v6473_v8 = vld [vmem:[%s9759_s1 + $0x964] sm:$0xf0] }
  0xb6   :  { %2919 = vmatmul.bf16.vlgmr.msrb.gmra.mxu0 %v7177_v41  ;;  %v5574_v9 = vld [vmem:[%s9759_s1 + $0xb48] sm:$0xf]  ;;  %v5319_v13 = vor.u32 %v6473_v8, %v5318_v7 }
  0xb7   :  { %2963 = vmatpush.bf16.msra.mxu0 %v4871_v51  ;;  %v6537_v10 = vld [vmem:[%s9759_s1 + $0xb64] sm:$0xf0]  ;;  %2945 = vmatmul.bf16.vlgmr.msrb.gmra.mxu2 %v7013_v19 }
  0xb8   :  { %2989 = vmatpush.bf16.msra.mxu2 %v5383_v53  ;;  %2932 = vmatmul.bf16.vlgmr.msrb.gmra.mxu1 %v7167_v37  ;;  %v4774_v14 = vld [vmem:[%s9759_s1 + $0x508] sm:$0xf]  ;;  %v5575_v17 = vor.u32 %v6537_v10, %v5574_v9 }
  0xb9   :  { %2976 = vmatpush.bf16.msra.mxu1 %v5127_v52  ;;  %3002 = vmatpush.bf16.msra.mxu3 %v5639_v57  ;;  %v6337_v15 = vld [vmem:[%s9759_s1 + $0x524] sm:$0xf0] }
  0xba   :  { %2958 = vmatmul.bf16.vlgmr.msrb.gmra.mxu3 %v7017_v22  ;;  %v5030_v16 = vld [vmem:[%s9759_s1 + $0x708] sm:$0xf]  ;;  %v4775_v27 = vor.u32 %v6337_v15, %v4774_v14 }
  0xbb   :  { %2964 = vmatpush.bf16.msra.mxu0 %v4839_v63  ;;  %v6401_v21 = vld [vmem:[%s9759_s1 + $0x724] sm:$0xf0] }
  0xbc   :  { %2990 = vmatpush.bf16.msra.mxu2 %v5351_v1  ;;  %v5286_v23 = vld [vmem:[%s9759_s1 + $0x908] sm:$0xf]  ;;  %v5031_v28 = vor.u32 %v6401_v21, %v5030_v16  ;;  %v6229_v16 = vld [vmem:[%s9759_s1 + $0x1cc] sm:$0xf] }
  0xbd   :  { %2977 = vmatpush.bf16.msra.mxu1 %v5095_v0  ;;  %3003 = vmatpush.bf16.msra.mxu3 %v5607_v5  ;;  %v6465_v24 = vld [vmem:[%s9759_s1 + $0x924] sm:$0xf0]  ;;  %v4360_v21 = vld [vmem:[%s9759_s1 + $0x1e8] sm:$0xf0] }
  0xbe   :  { %v5542_v25 = vld [vmem:[%s9759_s1 + $0xb08] sm:$0xf]  ;;  %v5287_v29 = vor.u32 %v6465_v24, %v5286_v23  ;;  %v6293_v23 = vld [vmem:[%s9759_s1 + $0x3cc] sm:$0xf] }
  0xbf   :  { %v6529_v26 = vld [vmem:[%s9759_s1 + $0xb24] sm:$0xf0]  ;;  %2965 = vmatpush.bf16.msra.mxu0 %v4807_v11  ;;  %v4616_v24 = vld [vmem:[%s9759_s1 + $0x3e8] sm:$0xf0] }
  0xc0   :  { %2991 = vmatpush.bf16.msra.mxu2 %v5319_v13  ;;  %v4742_v30 = vld [vmem:[%s9759_s1 + $0x4c8] sm:$0xf]  ;;  %v5543_v33 = vor.u32 %v6529_v26, %v5542_v25 }
  0xc1   :  { %2978 = vmatpush.bf16.msra.mxu1 %v5063_v12  ;;  %v6329_v31 = vld [vmem:[%s9759_s1 + $0x4e4] sm:$0xf0]  ;;  %3004 = vmatpush.bf16.msra.mxu3 %v5575_v17 }
  0xc2   :  { %v4998_v32 = vld [vmem:[%s9759_s1 + $0x6c8] sm:$0xf]  ;;  %v4743_v42 = vor.u32 %v6329_v31, %v4742_v30  ;;  %v4363_v31 = vor.u32 %v6229_v16, %v4360_v21  ;;  %v6325_v16 = vld [vmem:[%s9759_s1 + $0x4cc] sm:$0xf] }
  0xc3   :  { %v6393_v34 = vld [vmem:[%s9759_s1 + $0x6e4] sm:$0xf0]  ;;  %2966 = vmatpush.bf16.msra.mxu0 %v4775_v27  ;;  %v6357_v27 = vld [vmem:[%s9759_s1 + $0x5cc] sm:$0xf] }
  0xc4   :  { %v5254_v35 = vld [vmem:[%s9759_s1 + $0x8c8] sm:$0xf]  ;;  %2992 = vmatpush.bf16.msra.mxu2 %v5287_v29  ;;  %v4999_v43 = vor.u32 %v6393_v34, %v4998_v32  ;;  %v4619_v32 = vor.u32 %v6293_v23, %v4616_v24 }
  0xc5   :  { %v6457_v36 = vld [vmem:[%s9759_s1 + $0x8e4] sm:$0xf0]  ;;  %2979 = vmatpush.bf16.msra.mxu1 %v5031_v28  ;;  %3005 = vmatpush.bf16.msra.mxu3 %v5543_v33  ;;  %v4872_v28 = vld [vmem:[%s9759_s1 + $0x5e8] sm:$0xf0] }
  0xc6   :  { %v5510_v38 = vld [vmem:[%s9759_s1 + $0xac8] sm:$0xf]  ;;  %v5255_v44 = vor.u32 %v6457_v36, %v5254_v35  ;;  %v6221_v35 = vld [vmem:[%s9759_s1 + $0x18c] sm:$0xf]  ;;  %v4875_v36 = vor.u32 %v6357_v27, %v4872_v28 }
  0xc7   :  { %v6521_v39 = vld [vmem:[%s9759_s1 + $0xae4] sm:$0xf0]  ;;  %2967 = vmatpush.bf16.msra.mxu0 %v4743_v42  ;;  %v4584_v42 = vld [vmem:[%s9759_s1 + $0x3a8] sm:$0xf0] }
  0xc8   :  { %v4710_v45 = vld [vmem:[%s9759_s1 + $0x488] sm:$0xf]  ;;  %v5511_v48 = vor.u32 %v6521_v39, %v5510_v38  ;;  %2993 = vmatpush.bf16.msra.mxu2 %v5255_v44  ;;  %v4328_v38 = vld [vmem:[%s9759_s1 + $0x1a8] sm:$0xf0] }
  0xc9   :  { %v6321_v46 = vld [vmem:[%s9759_s1 + $0x4a4] sm:$0xf0]  ;;  %2980 = vmatpush.bf16.msra.mxu1 %v4999_v43  ;;  %v6285_v39 = vld [vmem:[%s9759_s1 + $0x38c] sm:$0xf] }
  0xca   :  { %v4966_v47 = vld [vmem:[%s9759_s1 + $0x688] sm:$0xf]  ;;  %v4711_v54 = vor.u32 %v6321_v46, %v4710_v45  ;;  %3006 = vmatpush.bf16.msra.mxu3 %v5511_v48  ;;  %v6349_v43 = vld [vmem:[%s9759_s1 + $0x58c] sm:$0xf]  ;;  %v4331_v46 = vor.u32 %v6221_v35, %v4328_v38 }
  0xcb   :  { %v6385_v49 = vld [vmem:[%s9759_s1 + $0x6a4] sm:$0xf0]  ;;  %v4840_v44 = vld [vmem:[%s9759_s1 + $0x5a8] sm:$0xf0] }
  0xcc   :  { %v5222_v50 = vld [vmem:[%s9759_s1 + $0x888] sm:$0xf]  ;;  %v4967_v55 = vor.u32 %v6385_v49, %v4966_v47  ;;  %2968 = vmatpush.bf16.msra.mxu0 %v4711_v54  ;;  %v4587_v47 = vor.u32 %v6285_v39, %v4584_v42  ;;  %v4552_v54 = vld [vmem:[%s9759_s1 + $0x368] sm:$0xf0] }
  0xcd   :  { %v6449_v51 = vld [vmem:[%s9759_s1 + $0x8a4] sm:$0xf0]  ;;  %v6189_v27 = vld [vmem:[%s9759_s1 + $0x8c] sm:$0xf] }
  0xce   :  { %v5478_v52 = vld [vmem:[%s9759_s1 + $0xa88] sm:$0xf]  ;;  %v5223_v56 = vor.u32 %v6449_v51, %v5222_v50  ;;  %2981 = vmatpush.bf16.msra.mxu1 %v4967_v55  ;;  %v6213_v50 = vld [vmem:[%s9759_s1 + $0x14c] sm:$0xf]  ;;  %v4843_v51 = vor.u32 %v6349_v43, %v4840_v44 }
  0xcf   :  { %v6513_v53 = vld [vmem:[%s9759_s1 + $0xaa4] sm:$0xf0]  ;;  %v6341_v55 = vld [vmem:[%s9759_s1 + $0x54c] sm:$0xf] }
  0xd0   :  { %v4678_v57 = vld [vmem:[%s9759_s1 + $0x448] sm:$0xf]  ;;  %v5479_v60 = vor.u32 %v6513_v53, %v5478_v52  ;;  %2994 = vmatpush.bf16.msra.mxu2 %v5223_v56  ;;  %v4296_v52 = vld [vmem:[%s9759_s1 + $0x168] sm:$0xf0] }
  0xd1   :  { %v6313_v58 = vld [vmem:[%s9759_s1 + $0x464] sm:$0xf0]  ;;  %v6277_v53 = vld [vmem:[%s9759_s1 + $0x34c] sm:$0xf] }
  0xd2   :  { %v4934_v59 = vld [vmem:[%s9759_s1 + $0x648] sm:$0xf]  ;;  %v4679_v2 = vor.u32 %v6313_v58, %v4678_v57  ;;  %3007 = vmatpush.bf16.msra.mxu3 %v5479_v60  ;;  %v4808_v56 = vld [vmem:[%s9759_s1 + $0x568] sm:$0xf0]  ;;  %v4299_v58 = vor.u32 %v6213_v50, %v4296_v52 }
  0xd3   :  { %v6377_v61 = vld [vmem:[%s9759_s1 + $0x664] sm:$0xf0]  ;;  %v6181_v44 = vld [vmem:[%s9759_s1 + $0x4c] sm:$0xf] }
  0xd4   :  { %v5190_v62 = vld [vmem:[%s9759_s1 + $0x848] sm:$0xf]  ;;  %v4935_v5 = vor.u32 %v6377_v61, %v4934_v59  ;;  %2969 = vmatpush.bf16.msra.mxu0 %v4679_v2  ;;  %v4555_v59 = vor.u32 %v6277_v53, %v4552_v54  ;;  %v4520_v2 = vld [vmem:[%s9759_s1 + $0x328] sm:$0xf0] }
  0xd5   :  { %v6441_v63 = vld [vmem:[%s9759_s1 + $0x864] sm:$0xf0]  ;;  %v4424_v50 = vld [vmem:[%s9759_s1 + $0x268] sm:$0xf0] }
  0xd6   :  { %v5446_v0 = vld [vmem:[%s9759_s1 + $0xa48] sm:$0xf]  ;;  %v5191_v6 = vor.u32 %v6441_v63, %v5190_v62  ;;  %2982 = vmatpush.bf16.msra.mxu1 %v4935_v5  ;;  %v6205_v62 = vld [vmem:[%s9759_s1 + $0x10c] sm:$0xf]  ;;  %v4811_v63 = vor.u32 %v6341_v55, %v4808_v56 }
  0xd7   :  { %v6505_v1 = vld [vmem:[%s9759_s1 + $0xa64] sm:$0xf0]  ;;  %v4680_v52 = vld [vmem:[%s9759_s1 + $0x468] sm:$0xf0] }
  0xd8   :  { %v4646_v3 = vld [vmem:[%s9759_s1 + $0x408] sm:$0xf]  ;;  %v5447_v10 = vor.u32 %v6505_v1, %v5446_v0  ;;  %2995 = vmatpush.bf16.msra.mxu2 %v5191_v6  ;;  %v4264_v0 = vld [vmem:[%s9759_s1 + $0x128] sm:$0xf0] }
  0xd9   :  { %v6305_v4 = vld [vmem:[%s9759_s1 + $0x424] sm:$0xf0]  ;;  %v6269_v1 = vld [vmem:[%s9759_s1 + $0x30c] sm:$0xf] }
  0xda   :  { %v4902_v7 = vld [vmem:[%s9759_s1 + $0x608] sm:$0xf]  ;;  %v4647_v17 = vor.u32 %v6305_v4, %v4646_v3  ;;  %3008 = vmatpush.bf16.msra.mxu3 %v5447_v10  ;;  %v6333_v3 = vld [vmem:[%s9759_s1 + $0x50c] sm:$0xf] }
  0xdb   :  { %v6369_v8 = vld [vmem:[%s9759_s1 + $0x624] sm:$0xf0]  ;;  %v4776_v4 = vld [vmem:[%s9759_s1 + $0x528] sm:$0xf0] }
  0xdc   :  { %v5158_v9 = vld [vmem:[%s9759_s1 + $0x808] sm:$0xf]  ;;  %v4903_v25 = vor.u32 %v6369_v8, %v4902_v7  ;;  %2970 = vmatpush.bf16.msra.mxu0 %v4647_v17  ;;  %v4267_v7 = vor.u32 %v6205_v62, %v4264_v0  ;;  %v4523_v8 = vor.u32 %v6269_v1, %v4520_v2  ;;  %v6197_v10 = vld [vmem:[%s9759_s1 + $0xcc] sm:$0xf]  ;;  %v2790_v62 = vpop.f32.mrf.mxu2 }
  0xdd   :  { %v6433_v11 = vld [vmem:[%s9759_s1 + $0x824] sm:$0xf0]  ;;  %v4744_v17 = vld [vmem:[%s9759_s1 + $0x4e8] sm:$0xf0] }
  0xde   :  { %v5414_v12 = vld [vmem:[%s9759_s1 + $0xa08] sm:$0xf]  ;;  %v5159_v26 = vor.u32 %v6433_v11, %v5158_v9  ;;  %2983 = vmatpush.bf16.msra.mxu1 %v4903_v25  ;;  %v4232_v11 = vld [vmem:[%s9759_s1 + $0xe8] sm:$0xf0] }
  0xdf   :  { %v6497_v13 = vld [vmem:[%s9759_s1 + $0xa24] sm:$0xf0]  ;;  %2971 = vmatmul.bf16.vlgmr.msra.gmra.mxu0 %v7011_v18  ;;  %v4235_v24 = vor.u32 %v6197_v10, %v4232_v11  ;;  %v4392_v0 = vld [vmem:[%s9759_s1 + $0x228] sm:$0xf0] }
  0xe0   :  { %v5894_v14 = vld [vmem:[%s9759_s1 + $0xdc8] sm:$0xf]  ;;  %v5415_v29 = vor.u32 %v6497_v13, %v5414_v12  ;;  %2996 = vmatpush.bf16.msra.mxu2 %v5159_v26  ;;  %v4779_v12 = vor.u32 %v6333_v3, %v4776_v4  ;;  %v6261_v13 = vld [vmem:[%s9759_s1 + $0x2cc] sm:$0xf]  ;;  %v2803_v4 = vpop.f32.mrf.mxu3 }
  0xe1   :  { %v6617_v15 = vld [vmem:[%s9759_s1 + $0xde4] sm:$0xf0]  ;;  %2984 = vmatmul.bf16.vlgmr.msra.gmra.mxu1 %v7015_v20  ;;  %v6301_v1 = vld [vmem:[%s9759_s1 + $0x40c] sm:$0xf] }
  0xe2   :  { %v5895_v30 = vor.u32 %v6617_v15, %v5894_v14  ;;  %v5862_v33 = vld [vmem:[%s9759_s1 + $0xd88] sm:$0xf]  ;;  %3009 = vmatpush.bf16.msra.mxu3 %v5415_v29  ;;  %3028 = vmatpush.bf16.msrb.mxu1 %v4363_v31  ;;  %v4488_v14 = vld [vmem:[%s9759_s1 + $0x2e8] sm:$0xf0]  ;;  %v7840_v15 = vld [vmem:[%s9761_s2] sm:$0xff]  ;;  %v4747_v29 = vor.u32 %v6325_v16, %v4744_v17 }
  0xe3   :  { %v6609_v34 = vld [vmem:[%s9759_s1 + $0xda4] sm:$0xf0]  ;;  %2997 = vmatmul.bf16.vlgmr.msra.gmra.mxu2 %v7175_v40  ;;  %v4491_v25 = vor.u32 %v6261_v13, %v4488_v14  ;;  %v474_v28 = vperm.slane %v7840_v15, 0  ;;  %v6253_v31 = vld [vmem:[%s9759_s1 + $0x28c] sm:$0xf] }
  0xe4   :  { %3015 = vmatpush.bf16.msrb.mxu0 %v5895_v30  ;;  %v5863_v45 = vor.u32 %v6609_v34, %v5862_v33  ;;  %3041 = vmatpush.bf16.msrb.mxu2 %v4619_v32  ;;  %v5830_v48 = vld [vmem:[%s9759_s1 + $0xd48] sm:$0xf]  ;;  %v4200_v30 = vld [vmem:[%s9759_s1 + $0xa8] sm:$0xf0] }
  0xe5   :  { %v6601_v49 = vld [vmem:[%s9759_s1 + $0xd64] sm:$0xf0]  ;;  %3010 = vmatmul.bf16.vlgmr.msra.gmra.mxu3 %v7177_v41  ;;  %v4456_v32 = vld [vmem:[%s9759_s1 + $0x2a8] sm:$0xf0]  ;;  %v4203_v38 = vor.u32 %v6189_v27, %v4200_v30 }
  0xe6   :  { %3054 = vmatpush.bf16.msrb.mxu3 %v4875_v36  ;;  %v5831_v57 = vor.u32 %v6601_v49, %v5830_v48  ;;  %3029 = vmatpush.bf16.msrb.mxu1 %v4331_v46  ;;  %v5798_v60 = vld [vmem:[%s9759_s1 + $0xd08] sm:$0xf]  ;;  %v6317_v33 = vld [vmem:[%s9759_s1 + $0x48c] sm:$0xf]  ;;  %v2764_v36 = vpop.f32.mrf.mxu0  ;;  %v4459_v39 = vor.u32 %v6253_v31, %v4456_v32  ;;  %v2777_v46 = vpop.f32.mrf.mxu1 }
  0xe7   :  { %v6593_v61 = vld [vmem:[%s9759_s1 + $0xd24] sm:$0xf0]  ;;  %v4712_v34 = vld [vmem:[%s9759_s1 + $0x4a8] sm:$0xf0] }
  0xe8   :  { %3016 = vmatpush.bf16.msrb.mxu0 %v5863_v45  ;;  %3042 = vmatpush.bf16.msrb.mxu2 %v4587_v47  ;;  %v5799_v5 = vor.u32 %v6593_v61, %v5798_v60  ;;  %v5766_v6 = vld [vmem:[%s9759_s1 + $0xcc8] sm:$0xf]  ;;  %v2765_v45 = vadd.f32 %v2764_v36, %v474_v28  ;;  %v4715_v47 = vor.u32 %v6317_v33, %v4712_v34  ;;  %v4168_v48 = vld [vmem:[%s9759_s1 + $0x68] sm:$0xf0] }
  0xe9   :  { %v6585_v9 = vld [vmem:[%s9759_s1 + $0xce4] sm:$0xf0]  ;;  %v6245_v49 = vld [vmem:[%s9759_s1 + $0x24c] sm:$0xf] }
  0xea   :  { %3055 = vmatpush.bf16.msrb.mxu3 %v4843_v51  ;;  %3030 = vmatpush.bf16.msrb.mxu1 %v4299_v58  ;;  %v5767_v21 = vor.u32 %v6585_v9, %v5766_v6  ;;  %v5734_v23 = vld [vmem:[%s9759_s1 + $0xc88] sm:$0xf]  ;;  %v6309_v51 = vld [vmem:[%s9759_s1 + $0x44c] sm:$0xf]  ;;  %v2778_v53 = vadd.f32 %v2777_v46, %v2765_v45  ;;  %v4427_v58 = vor.u32 %v6245_v49, %v4424_v50 }
  0xeb   :  { %v6577_v26 = vld [vmem:[%s9759_s1 + $0xca4] sm:$0xf0]  ;;  %v4136_v60 = vld [vmem:[%s9759_s1 + $0x28] sm:$0xf0] }
  0xec   :  { %3017 = vmatpush.bf16.msrb.mxu0 %v5831_v57  ;;  %3043 = vmatpush.bf16.msrb.mxu2 %v4555_v59  ;;  %v5735_v35 = vor.u32 %v6577_v26, %v5734_v23  ;;  %v5702_v42 = vld [vmem:[%s9759_s1 + $0xc48] sm:$0xf]  ;;  %v4171_v57 = vor.u32 %v6181_v44, %v4168_v48  ;;  %v6173_v59 = vld [vmem:[%s9759_s1 + $0xc] sm:$0xf]  ;;  %v2791_v3 = vadd.f32 %v2790_v62, %v2778_v53 }
  0xed   :  { %v6569_v43 = vld [vmem:[%s9759_s1 + $0xc64] sm:$0xf0]  ;;  %v6237_v61 = vld [vmem:[%s9759_s1 + $0x20c] sm:$0xf]  ;;  %v4139_v14 = vor.u32 %v6173_v59, %v4136_v60 }
  0xee   :  { %3056 = vmatpush.bf16.msrb.mxu3 %v4811_v63  ;;  %3031 = vmatpush.bf16.msrb.mxu1 %v4267_v7  ;;  %v5703_v54 = vor.u32 %v6569_v43, %v5702_v42  ;;  %v5670_v55 = vld [vmem:[%s9759_s1 + $0xc08] sm:$0xf]  ;;  %v4683_v63 = vor.u32 %v6309_v51, %v4680_v52  ;;  %v4648_v2 = vld [vmem:[%s9759_s1 + $0x428] sm:$0xf0]  ;;  %v2766_v13 = vpop.f32.mrf.mxu0  ;;  %v4395_v16 = vor.u32 %v6237_v61, %v4392_v0  ;;  %v2779_v23 = vpop.f32.mrf.mxu1 }
  0xef   :  { %v6561_v56 = vld [vmem:[%s9759_s1 + $0xc24] sm:$0xf0]  ;;  %v5128_v6 = vld [vmem:[%s9759_s1 + $0x7e8] sm:$0xf0]  ;;  %v2805_v42 = vpop.f32.mrf.mxu3 }
  0xf0   :  { %3018 = vmatpush.bf16.msrb.mxu0 %v5799_v5  ;;  %3044 = vmatpush.bf16.msrb.mxu2 %v4523_v8  ;;  %v6421_v5 = vld [vmem:[%s9759_s1 + $0x7cc] sm:$0xf]  ;;  %v5671_v8 = vor.u32 %v6561_v56, %v5670_v55 }
  0xf1   :  { %v6485_v7 = vld [vmem:[%s9759_s1 + $0x9cc] sm:$0xf] }
  0xf2   :  { %3057 = vmatpush.bf16.msrb.mxu3 %v4779_v12  ;;  %3032 = vmatpush.bf16.msrb.mxu1 %v4235_v24  ;;  %v5384_v9 = vld [vmem:[%s9759_s1 + $0x9e8] sm:$0xf0]  ;;  %v7939_v12 = vadd.f32 %v2803_v4, %v2791_v3  ;;  %v4651_v24 = vor.u32 %v6301_v1, %v4648_v2 }
  0xf3   :  { %v6549_v10 = vld [vmem:[%s9759_s1 + $0xbcc] sm:$0xf]  ;;  %v5387_v26 = vor.u32 %v6485_v7, %v5384_v9 }
  0xf4   :  { %3019 = vmatpush.bf16.msrb.mxu0 %v5767_v21  ;;  %3045 = vmatpush.bf16.msrb.mxu2 %v4491_v25  ;;  %v5640_v11 = vld [vmem:[%s9759_s1 + $0xbe8] sm:$0xf0]  ;;  %v5131_v25 = vor.u32 %v6421_v5, %v5128_v6 }
  0xf5   :  { %v6613_v17 = vld [vmem:[%s9759_s1 + $0xdcc] sm:$0xf]  ;;  %v5643_v27 = vor.u32 %v6549_v10, %v5640_v11 }
  0xf6   :  { %3058 = vmatpush.bf16.msrb.mxu3 %v4747_v29  ;;  %3033 = vmatpush.bf16.msrb.mxu1 %v4203_v38  ;;  %v5896_v21 = vld [vmem:[%s9759_s1 + $0xde8] sm:$0xf0]  ;;  %v2792_v38 = vpop.f32.mrf.mxu2  ;;  %v2816_v3 = vpop.f32.mrf.mxu0 }
  0xf7   :  { %v6413_v28 = vld [vmem:[%s9759_s1 + $0x78c] sm:$0xf]  ;;  %v5899_v31 = vor.u32 %v6613_v17, %v5896_v21  ;;  %v2829_v4 = vpop.f32.mrf.mxu1  ;;  %v2817_v10 = vadd.f32 %v2816_v3, %v7939_v12  ;;  %v8074_v38 = vpop.f32.mrf.mxu3 }
  0xf8   :  { %3020 = vmatpush.bf16.msrb.mxu0 %v5735_v35  ;;  %3046 = vmatpush.bf16.msrb.mxu2 %v4459_v39  ;;  %v5096_v29 = vld [vmem:[%s9759_s1 + $0x7a8] sm:$0xf0] }
  0xf9   :  { %v6477_v30 = vld [vmem:[%s9759_s1 + $0x98c] sm:$0xf]  ;;  %v5099_v39 = vor.u32 %v6413_v28, %v5096_v29  ;;  %v2830_v21 = vadd.f32 %v2829_v4, %v2817_v10  ;;  %v4366_v4 = vld [vmem:[%s9759_s1 + $0x1d0] sm:$0xf] }
  0xfa   :  { %3059 = vmatpush.bf16.msrb.mxu3 %v4715_v47  ;;  %3034 = vmatpush.bf16.msrb.mxu1 %v4171_v57  ;;  %v5352_v32 = vld [vmem:[%s9759_s1 + $0x9a8] sm:$0xf0]  ;;  %v4878_v10 = vld [vmem:[%s9759_s1 + $0x5d0] sm:$0xf] }
  0xfb   :  { %v6541_v33 = vld [vmem:[%s9759_s1 + $0xb8c] sm:$0xf]  ;;  %v5355_v43 = vor.u32 %v6477_v30, %v5352_v32 }
  0xfc   :  { %3021 = vmatpush.bf16.msrb.mxu0 %v5703_v54  ;;  %3047 = vmatpush.bf16.msrb.mxu2 %v4427_v58  ;;  %v5608_v34 = vld [vmem:[%s9759_s1 + $0xba8] sm:$0xf0] }
  0xfd   :  { %v6605_v35 = vld [vmem:[%s9759_s1 + $0xd8c] sm:$0xf]  ;;  %v5611_v44 = vor.u32 %v6541_v33, %v5608_v34 }
  0xfe   :  { %3060 = vmatpush.bf16.msrb.mxu3 %v4683_v63  ;;  %3035 = vmatpush.bf16.msrb.mxu1 %v4139_v14  ;;  %v5864_v36 = vld [vmem:[%s9759_s1 + $0xda8] sm:$0xf0]  ;;  %v2842_v29 = vpop.f32.mrf.mxu2  ;;  %v2818_v42 = vpop.f32.mrf.mxu0 }
  0xff   :  { %v6405_v45 = vld [vmem:[%s9759_s1 + $0x74c] sm:$0xf]  ;;  %v5867_v48 = vor.u32 %v6605_v35, %v5864_v36  ;;  %v8066_v34 = vadd.f32 %v2842_v29, %v2830_v21  ;;  %v6290_v29 = vld [vmem:[%s9759_s1 + $0x3ac] sm:$0xf0] }
 0x100   :  { %3022 = vmatpush.bf16.msrb.mxu0 %v5671_v8  ;;  %3048 = vmatpush.bf16.msrb.mxu2 %v4395_v16  ;;  %v5064_v46 = vld [vmem:[%s9759_s1 + $0x768] sm:$0xf0] }
 0x101   :  { %v6469_v47 = vld [vmem:[%s9759_s1 + $0x94c] sm:$0xf]  ;;  %v5067_v54 = vor.u32 %v6405_v45, %v5064_v46  ;;  %3036 = vmatmul.bf16.vlgmr.msrb.gmra.mxu1 %v7013_v19 }
 0x102   :  { %3061 = vmatpush.bf16.msrb.mxu3 %v4651_v24  ;;  %3080 = vmatpush.bf16.msra.mxu1 %v5387_v26  ;;  %v5320_v49 = vld [vmem:[%s9759_s1 + $0x968] sm:$0xf0] }
 0x103   :  { %3023 = vmatmul.bf16.vlgmr.msrb.gmra.mxu0 %v7167_v37  ;;  %v6533_v50 = vld [vmem:[%s9759_s1 + $0xb4c] sm:$0xf]  ;;  %3049 = vmatmul.bf16.vlgmr.msrb.gmra.mxu2 %v7017_v22  ;;  %v5323_v55 = vor.u32 %v6469_v47, %v5320_v49 }
 0x104   :  { %3067 = vmatpush.bf16.msra.mxu0 %v5131_v25  ;;  %3093 = vmatpush.bf16.msra.mxu2 %v5643_v27  ;;  %v5576_v51 = vld [vmem:[%s9759_s1 + $0xb68] sm:$0xf0] }
 0x105   :  { %v6597_v52 = vld [vmem:[%s9759_s1 + $0xd4c] sm:$0xf]  ;;  %3062 = vmatmul.bf16.vlgmr.msrb.gmra.mxu3 %v7011_v18  ;;  %v5579_v56 = vor.u32 %v6533_v50, %v5576_v51 }
 0x106   :  { %3106 = vmatpush.bf16.msra.mxu3 %v5899_v31  ;;  %v5832_v53 = vld [vmem:[%s9759_s1 + $0xd68] sm:$0xf0]  ;;  %3081 = vmatpush.bf16.msra.mxu1 %v5355_v43  ;;  %v2831_v43 = vpop.f32.mrf.mxu1 }
 0x107   :  { %v6397_v57 = vld [vmem:[%s9759_s1 + $0x70c] sm:$0xf]  ;;  %v5835_v60 = vor.u32 %v6597_v52, %v5832_v53  ;;  %v6218_v43 = vld [vmem:[%s9759_s1 + $0x16c] sm:$0xf0] }
 0x108   :  { %3068 = vmatpush.bf16.msra.mxu0 %v5099_v39  ;;  %3094 = vmatpush.bf16.msra.mxu2 %v5611_v44  ;;  %v5032_v58 = vld [vmem:[%s9759_s1 + $0x728] sm:$0xf0] }
 0x109   :  { %v6461_v59 = vld [vmem:[%s9759_s1 + $0x90c] sm:$0xf]  ;;  %v5035_v2 = vor.u32 %v6397_v57, %v5032_v58 }
 0x10a   :  { %3107 = vmatpush.bf16.msra.mxu3 %v5867_v48  ;;  %v5288_v61 = vld [vmem:[%s9759_s1 + $0x928] sm:$0xf0]  ;;  %3082 = vmatpush.bf16.msra.mxu1 %v5323_v55 }
 0x10b   :  { %v6525_v62 = vld [vmem:[%s9759_s1 + $0xb0c] sm:$0xf]  ;;  %v5291_v5 = vor.u32 %v6461_v59, %v5288_v61 }
 0x10c   :  { %v5544_v63 = vld [vmem:[%s9759_s1 + $0xb28] sm:$0xf0]  ;;  %3069 = vmatpush.bf16.msra.mxu0 %v5067_v54  ;;  %3095 = vmatpush.bf16.msra.mxu2 %v5579_v56 }
 0x10d   :  { %v6589_v0 = vld [vmem:[%s9759_s1 + $0xd0c] sm:$0xf]  ;;  %v5547_v6 = vor.u32 %v6525_v62, %v5544_v63  ;;  %v2844_v63 = vpop.f32.mrf.mxu2 }
 0x10e   :  { %v5800_v1 = vld [vmem:[%s9759_s1 + $0xd28] sm:$0xf0]  ;;  %3108 = vmatpush.bf16.msra.mxu3 %v5835_v60  ;;  %3083 = vmatpush.bf16.msra.mxu1 %v5291_v5  ;;  %v6234_v5 = vld [vmem:[%s9759_s1 + $0x1ec] sm:$0xf0] }
 0x10f   :  { %v6389_v7 = vld [vmem:[%s9759_s1 + $0x6cc] sm:$0xf]  ;;  %v5803_v11 = vor.u32 %v6589_v0, %v5800_v1  ;;  %v4367_v21 = vor.u32 %v6234_v5, %v4366_v4  ;;  %v6402_v63 = vld [vmem:[%s9759_s1 + $0x72c] sm:$0xf0] }
 0x110   :  { %v5000_v8 = vld [vmem:[%s9759_s1 + $0x6e8] sm:$0xf0]  ;;  %3070 = vmatpush.bf16.msra.mxu0 %v5035_v2  ;;  %3096 = vmatpush.bf16.msra.mxu2 %v5547_v6  ;;  %v4622_v6 = vld [vmem:[%s9759_s1 + $0x3d0] sm:$0xf] }
 0x111   :  { %v6453_v9 = vld [vmem:[%s9759_s1 + $0x8cc] sm:$0xf]  ;;  %v5003_v23 = vor.u32 %v6389_v7, %v5000_v8  ;;  %v2857_v7 = vpop.f32.mrf.mxu3  ;;  %v4238_v4 = vld [vmem:[%s9759_s1 + $0xd0] sm:$0xf] }
 0x112   :  { %v5256_v13 = vld [vmem:[%s9759_s1 + $0x8e8] sm:$0xf0]  ;;  %3109 = vmatpush.bf16.msra.mxu3 %v5803_v11  ;;  %v6362_v11 = vld [vmem:[%s9759_s1 + $0x5ec] sm:$0xf0] }
 0x113   :  { %v6517_v14 = vld [vmem:[%s9759_s1 + $0xacc] sm:$0xf]  ;;  %v5259_v24 = vor.u32 %v6453_v9, %v5256_v13  ;;  %v6298_v9 = vld [vmem:[%s9759_s1 + $0x3ec] sm:$0xf0] }
 0x114   :  { %v5512_v16 = vld [vmem:[%s9759_s1 + $0xae8] sm:$0xf0]  ;;  %3071 = vmatpush.bf16.msra.mxu0 %v5003_v23  ;;  %v4623_v23 = vor.u32 %v6298_v9, %v4622_v6  ;;  %v6202_v5 = vld [vmem:[%s9759_s1 + $0xec] sm:$0xf0] }
 0x115   :  { %v6581_v17 = vld [vmem:[%s9759_s1 + $0xccc] sm:$0xf]  ;;  %v5515_v25 = vor.u32 %v6517_v14, %v5512_v16  ;;  %3084 = vmatpush.bf16.msra.mxu1 %v5259_v24  ;;  %v5134_v16 = vld [vmem:[%s9759_s1 + $0x7d0] sm:$0xf]  ;;  %v4879_v24 = vor.u32 %v6362_v11, %v4878_v10 }
 0x116   :  { %v5768_v12 = vld [vmem:[%s9759_s1 + $0xce8] sm:$0xf0]  ;;  %v4494_v6 = vld [vmem:[%s9759_s1 + $0x2d0] sm:$0xf] }
 0x117   :  { %v6381_v26 = vld [vmem:[%s9759_s1 + $0x68c] sm:$0xf]  ;;  %v5771_v30 = vor.u32 %v6581_v17, %v5768_v12  ;;  %3097 = vmatpush.bf16.msra.mxu2 %v5515_v25  ;;  %v6426_v17 = vld [vmem:[%s9759_s1 + $0x7ec] sm:$0xf0] }
 0x118   :  { %v4968_v27 = vld [vmem:[%s9759_s1 + $0x6a8] sm:$0xf0]  ;;  %v4334_v25 = vld [vmem:[%s9759_s1 + $0x190] sm:$0xf] }
 0x119   :  { %v6445_v28 = vld [vmem:[%s9759_s1 + $0x88c] sm:$0xf]  ;;  %v4971_v39 = vor.u32 %v6381_v26, %v4968_v27  ;;  %3110 = vmatpush.bf16.msra.mxu3 %v5771_v30  ;;  %v6226_v26 = vld [vmem:[%s9759_s1 + $0x1ac] sm:$0xf0] }
 0x11a   :  { %v5224_v31 = vld [vmem:[%s9759_s1 + $0x8a8] sm:$0xf0]  ;;  %v4590_v27 = vld [vmem:[%s9759_s1 + $0x390] sm:$0xf] }
 0x11b   :  { %v6509_v32 = vld [vmem:[%s9759_s1 + $0xa8c] sm:$0xf]  ;;  %v5227_v44 = vor.u32 %v6445_v28, %v5224_v31  ;;  %3072 = vmatpush.bf16.msra.mxu0 %v4971_v39  ;;  %v5135_v28 = vor.u32 %v6426_v17, %v5134_v16  ;;  %v4846_v30 = vld [vmem:[%s9759_s1 + $0x590] sm:$0xf]  ;;  %v4591_v39 = vor.u32 %v6290_v29, %v4590_v27  ;;  %v2894_v27 = vpop.f32.mrf.mxu2 }
 0x11c   :  { %v5480_v33 = vld [vmem:[%s9759_s1 + $0xaa8] sm:$0xf0]  ;;  %v6354_v31 = vld [vmem:[%s9759_s1 + $0x5ac] sm:$0xf0] }
 0x11d   :  { %v6573_v35 = vld [vmem:[%s9759_s1 + $0xc8c] sm:$0xf]  ;;  %v5483_v45 = vor.u32 %v6509_v32, %v5480_v33  ;;  %3085 = vmatpush.bf16.msra.mxu1 %v5227_v44  ;;  %v5102_v32 = vld [vmem:[%s9759_s1 + $0x790] sm:$0xf]  ;;  %v4847_v42 = vor.u32 %v6354_v31, %v4846_v30 }
 0x11e   :  { %v5736_v36 = vld [vmem:[%s9759_s1 + $0xca8] sm:$0xf0]  ;;  %v6418_v33 = vld [vmem:[%s9759_s1 + $0x7ac] sm:$0xf0] }
 0x11f   :  { %v6373_v46 = vld [vmem:[%s9759_s1 + $0x64c] sm:$0xf]  ;;  %v5739_v49 = vor.u32 %v6573_v35, %v5736_v36  ;;  %3098 = vmatpush.bf16.msra.mxu2 %v5483_v45  ;;  %v4335_v35 = vor.u32 %v6226_v26, %v4334_v25  ;;  %v4302_v36 = vld [vmem:[%s9759_s1 + $0x150] sm:$0xf]  ;;  %v475_v45 = vperm.slane %v7840_v15, 1 }
 0x120   :  { %v4936_v47 = vld [vmem:[%s9759_s1 + $0x668] sm:$0xf0]  ;;  %v4558_v44 = vld [vmem:[%s9759_s1 + $0x350] sm:$0xf] }
 0x121   :  { %v6437_v48 = vld [vmem:[%s9759_s1 + $0x84c] sm:$0xf]  ;;  %v4939_v55 = vor.u32 %v6373_v46, %v4936_v47  ;;  %3111 = vmatpush.bf16.msra.mxu3 %v5739_v49  ;;  %v5103_v46 = vor.u32 %v6418_v33, %v5102_v32  ;;  %v6282_v47 = vld [vmem:[%s9759_s1 + $0x36c] sm:$0xf0]  ;;  %v2907_v33 = vpop.f32.mrf.mxu3 }
 0x122   :  { %v5192_v50 = vld [vmem:[%s9759_s1 + $0x868] sm:$0xf0]  ;;  %v6346_v49 = vld [vmem:[%s9759_s1 + $0x56c] sm:$0xf0] }
 0x123   :  { %v6501_v51 = vld [vmem:[%s9759_s1 + $0xa4c] sm:$0xf]  ;;  %v5195_v58 = vor.u32 %v6437_v48, %v5192_v50  ;;  %3073 = vmatpush.bf16.msra.mxu0 %v4939_v55  ;;  %v4814_v48 = vld [vmem:[%s9759_s1 + $0x550] sm:$0xf]  ;;  %v2856_v55 = vadd.f32 %v8074_v38, %v475_v45 }
 0x124   :  { %v5448_v52 = vld [vmem:[%s9759_s1 + $0xa68] sm:$0xf0]  ;;  %v5070_v50 = vld [vmem:[%s9759_s1 + $0x750] sm:$0xf] }
 0x125   :  { %v6565_v53 = vld [vmem:[%s9759_s1 + $0xc4c] sm:$0xf]  ;;  %v5451_v59 = vor.u32 %v6501_v51, %v5448_v52  ;;  %3086 = vmatpush.bf16.msra.mxu1 %v5195_v58  ;;  %v6410_v51 = vld [vmem:[%s9759_s1 + $0x76c] sm:$0xf0]  ;;  %v4303_v52 = vor.u32 %v6218_v43, %v4302_v36 }
 0x126   :  { %v5704_v54 = vld [vmem:[%s9759_s1 + $0xc68] sm:$0xf0]  ;;  %v4526_v58 = vld [vmem:[%s9759_s1 + $0x310] sm:$0xf] }
 0x127   :  { %v6365_v56 = vld [vmem:[%s9759_s1 + $0x60c] sm:$0xf]  ;;  %v5707_v0 = vor.u32 %v6565_v53, %v5704_v54  ;;  %3099 = vmatpush.bf16.msra.mxu2 %v5451_v59  ;;  %v4559_v53 = vor.u32 %v6282_v47, %v4558_v44  ;;  %v4815_v54 = vor.u32 %v6346_v49, %v4814_v48  ;;  %v5071_v59 = vor.u32 %v6410_v51, %v5070_v50  ;;  %v4782_v38 = vld [vmem:[%s9759_s1 + $0x510] sm:$0xf] }
 0x128   :  { %v4904_v57 = vld [vmem:[%s9759_s1 + $0x628] sm:$0xf0]  ;;  %v6266_v10 = vld [vmem:[%s9759_s1 + $0x2ec] sm:$0xf0] }
 0x129   :  { %v6429_v60 = vld [vmem:[%s9759_s1 + $0x80c] sm:$0xf]  ;;  %v4907_v8 = vor.u32 %v6365_v56, %v4904_v57  ;;  %3112 = vmatpush.bf16.msra.mxu3 %v5707_v0  ;;  %v4270_v56 = vld [vmem:[%s9759_s1 + $0x110] sm:$0xf] }
 0x12a   :  { %v5160_v61 = vld [vmem:[%s9759_s1 + $0x828] sm:$0xf0]  ;;  %v6210_v57 = vld [vmem:[%s9759_s1 + $0x12c] sm:$0xf0] }
 0x12b   :  { %v6493_v62 = vld [vmem:[%s9759_s1 + $0xa0c] sm:$0xf]  ;;  %v5163_v13 = vor.u32 %v6429_v60, %v5160_v61  ;;  %3074 = vmatpush.bf16.msra.mxu0 %v4907_v8  ;;  %v6274_v60 = vld [vmem:[%s9759_s1 + $0x32c] sm:$0xf0]  ;;  %v4271_v0 = vor.u32 %v6210_v57, %v4270_v56  ;;  %v2881_v8 = vpop.f32.mrf.mxu1 }
 0x12c   :  { %v5416_v1 = vld [vmem:[%s9759_s1 + $0xa28] sm:$0xf0]  ;;  %v6338_v61 = vld [vmem:[%s9759_s1 + $0x52c] sm:$0xf0] }
 0x12d   :  { %v6557_v2 = vld [vmem:[%s9759_s1 + $0xc0c] sm:$0xf]  ;;  %v5419_v14 = vor.u32 %v6493_v62, %v5416_v1  ;;  %3087 = vmatpush.bf16.msra.mxu1 %v5163_v13  ;;  %v5038_v62 = vld [vmem:[%s9759_s1 + $0x710] sm:$0xf]  ;;  %v2868_v1 = vpop.f32.mrf.mxu0 }
 0x12e   :  { %v5672_v3 = vld [vmem:[%s9759_s1 + $0xc28] sm:$0xf0]  ;;  %3075 = vmatmul.bf16.vlgmr.msra.gmra.mxu0 %v7015_v20  ;;  %v2869_v7 = vadd.f32 %v2868_v1, %v2856_v55  ;;  %v5039_v9 = vor.u32 %v6402_v63, %v5038_v62  ;;  %v4750_v11 = vld [vmem:[%s9759_s1 + $0x4d0] sm:$0xf]  ;;  %v2896_v63 = vpop.f32.mrf.mxu2 }
 0x12f   :  { %v5675_v12 = vor.u32 %v6557_v2, %v5672_v3  ;;  %3100 = vmatpush.bf16.msra.mxu2 %v5419_v14  ;;  %3119 = vmatpush.bf16.msrb.mxu0 %v4367_v21  ;;  %v4527_v2 = vor.u32 %v6274_v60, %v4526_v58  ;;  %v4783_v3 = vor.u32 %v6338_v61, %v4782_v38  ;;  %v6330_v13 = vld [vmem:[%s9759_s1 + $0x4ec] sm:$0xf0]  ;;  %v4272_v63 = vld [vmem:[%s9759_s1 + $0x130] sm:$0xf0] }
 0x130   :  { %3088 = vmatmul.bf16.vlgmr.msra.gmra.mxu1 %v7175_v40  ;;  %v5006_v14 = vld [vmem:[%s9759_s1 + $0x6d0] sm:$0xf]  ;;  %v2882_v17 = vadd.f32 %v2881_v8, %v2869_v7  ;;  %v4495_v21 = vor.u32 %v6266_v10, %v4494_v6 }
 0x131   :  { %3113 = vmatpush.bf16.msra.mxu3 %v5675_v12  ;;  %3132 = vmatpush.bf16.msrb.mxu1 %v4623_v23  ;;  %v6394_v16 = vld [vmem:[%s9759_s1 + $0x6ec] sm:$0xf0]  ;;  %v4239_v12 = vor.u32 %v6202_v5, %v4238_v4  ;;  %v4751_v23 = vor.u32 %v6330_v13, %v4750_v11  ;;  %v2909_v4 = vpop.f32.mrf.mxu3 }
 0x132   :  { %3101 = vmatmul.bf16.vlgmr.msra.gmra.mxu2 %v7177_v41  ;;  %v6194_v25 = vld [vmem:[%s9759_s1 + $0xac] sm:$0xf0]  ;;  %v2895_v32 = vadd.f32 %v2894_v27, %v2882_v17  ;;  %v4368_v17 = vld [vmem:[%s9759_s1 + $0x1f0] sm:$0xf0] }
 0x133   :  { %3145 = vmatpush.bf16.msrb.mxu2 %v4879_v24  ;;  %3120 = vmatpush.bf16.msrb.mxu0 %v4335_v35  ;;  %v4206_v24 = vld [vmem:[%s9759_s1 + $0x90] sm:$0xf]  ;;  %v2883_v49 = vpop.f32.mrf.mxu1 }
 0x134   :  { %3114 = vmatmul.bf16.vlgmr.msra.gmra.mxu3 %v7167_v37  ;;  %v4462_v26 = vld [vmem:[%s9759_s1 + $0x290] sm:$0xf] }
 0x135   :  { %3158 = vmatpush.bf16.msrb.mxu3 %v5135_v28  ;;  %3133 = vmatpush.bf16.msrb.mxu1 %v4591_v39  ;;  %v5007_v28 = vor.u32 %v6394_v16, %v5006_v14  ;;  %v6258_v29 = vld [vmem:[%s9759_s1 + $0x2ac] sm:$0xf0]  ;;  %v4207_v39 = vor.u32 %v6194_v25, %v4206_v24  ;;  %v2870_v43 = vpop.f32.mrf.mxu0  ;;  %v6230_v16 = vld [vmem:[%s9759_s1 + $0x1d4] sm:$0xf] }
 0x136   :  { %v4718_v30 = vld [vmem:[%s9759_s1 + $0x490] sm:$0xf]  ;;  %v4463_v44 = vor.u32 %v6258_v29, %v4462_v26 }
 0x137   :  { %3146 = vmatpush.bf16.msrb.mxu2 %v4847_v42  ;;  %3121 = vmatpush.bf16.msrb.mxu0 %v4303_v52  ;;  %v6322_v31 = vld [vmem:[%s9759_s1 + $0x4ac] sm:$0xf0]  ;;  %v8274_v42 = vadd.f32 %v2907_v33, %v2895_v32  ;;  %v6222_v32 = vld [vmem:[%s9759_s1 + $0x194] sm:$0xf] }
 0x138   :  { %v4974_v35 = vld [vmem:[%s9759_s1 + $0x690] sm:$0xf]  ;;  %v4719_v45 = vor.u32 %v6322_v31, %v4718_v30  ;;  %v4336_v33 = vld [vmem:[%s9759_s1 + $0x1b0] sm:$0xf0] }
 0x139   :  { %3159 = vmatpush.bf16.msrb.mxu3 %v5103_v46  ;;  %3134 = vmatpush.bf16.msrb.mxu1 %v4559_v53  ;;  %v6386_v36 = vld [vmem:[%s9759_s1 + $0x6ac] sm:$0xf0] }
 0x13a   :  { %v4174_v46 = vld [vmem:[%s9759_s1 + $0x50] sm:$0xf]  ;;  %v4975_v50 = vor.u32 %v6386_v36, %v4974_v35 }
 0x13b   :  { %3147 = vmatpush.bf16.msrb.mxu2 %v4815_v54  ;;  %3122 = vmatpush.bf16.msrb.mxu0 %v4271_v0  ;;  %v6186_v47 = vld [vmem:[%s9759_s1 + $0x6c] sm:$0xf0] }
 0x13c   :  { %v4430_v48 = vld [vmem:[%s9759_s1 + $0x250] sm:$0xf]  ;;  %v4175_v56 = vor.u32 %v6186_v47, %v4174_v46  ;;  %v4339_v46 = vor.u32 %v6222_v32, %v4336_v33 }
 0x13d   :  { %3160 = vmatpush.bf16.msrb.mxu3 %v5071_v59  ;;  %3135 = vmatpush.bf16.msrb.mxu1 %v4527_v2  ;;  %v6250_v51 = vld [vmem:[%s9759_s1 + $0x26c] sm:$0xf0]  ;;  %v2959_v33 = vpop.f32.mrf.mxu3 }
 0x13e   :  { %v4686_v52 = vld [vmem:[%s9759_s1 + $0x450] sm:$0xf]  ;;  %v4431_v59 = vor.u32 %v6250_v51, %v4430_v48  ;;  %v4304_v51 = vld [vmem:[%s9759_s1 + $0x170] sm:$0xf0] }
 0x13f   :  { %3148 = vmatpush.bf16.msrb.mxu2 %v4783_v3  ;;  %3123 = vmatpush.bf16.msrb.mxu0 %v4239_v12  ;;  %v6314_v53 = vld [vmem:[%s9759_s1 + $0x46c] sm:$0xf0] }
 0x140   :  { %v4942_v54 = vld [vmem:[%s9759_s1 + $0x650] sm:$0xf]  ;;  %v4687_v60 = vor.u32 %v6314_v53, %v4686_v52 }
 0x141   :  { %3161 = vmatpush.bf16.msrb.mxu3 %v5039_v9  ;;  %3136 = vmatpush.bf16.msrb.mxu1 %v4495_v21  ;;  %v6378_v55 = vld [vmem:[%s9759_s1 + $0x66c] sm:$0xf0] }
 0x142   :  { %v4142_v57 = vld [vmem:[%s9759_s1 + $0x10] sm:$0xf]  ;;  %v4943_v0 = vor.u32 %v6378_v55, %v4942_v54 }
 0x143   :  { %3149 = vmatpush.bf16.msrb.mxu2 %v4751_v23  ;;  %3124 = vmatpush.bf16.msrb.mxu0 %v4207_v39  ;;  %v6178_v58 = vld [vmem:[%s9759_s1 + $0x2c] sm:$0xf0] }
 0x144   :  { %v4398_v38 = vld [vmem:[%s9759_s1 + $0x210] sm:$0xf]  ;;  %v4143_v8 = vor.u32 %v6178_v58, %v4142_v57 }
 0x145   :  { %3162 = vmatpush.bf16.msrb.mxu3 %v5007_v28  ;;  %3137 = vmatpush.bf16.msrb.mxu1 %v4463_v44  ;;  %v6242_v61 = vld [vmem:[%s9759_s1 + $0x22c] sm:$0xf0]  ;;  %v4371_v28 = vor.u32 %v6230_v16, %v4368_v17  ;;  %v476_v16 = vperm.slane %v7840_v15, 2 }
 0x146   :  { %v4654_v62 = vld [vmem:[%s9759_s1 + $0x410] sm:$0xf]  ;;  %v4399_v13 = vor.u32 %v6242_v61, %v4398_v38  ;;  %v2920_v61 = vpop.f32.mrf.mxu0 }
 0x147   :  { %3150 = vmatpush.bf16.msrb.mxu2 %v4719_v45  ;;  %v6306_v1 = vld [vmem:[%s9759_s1 + $0x42c] sm:$0xf0]  ;;  %3125 = vmatpush.bf16.msrb.mxu0 %v4175_v56 }
 0x148   :  { %v4910_v2 = vld [vmem:[%s9759_s1 + $0x610] sm:$0xf]  ;;  %v4655_v14 = vor.u32 %v6306_v1, %v4654_v62  ;;  %v6206_v62 = vld [vmem:[%s9759_s1 + $0x114] sm:$0xf] }
 0x149   :  { %3163 = vmatpush.bf16.msrb.mxu3 %v4975_v50  ;;  %v6370_v3 = vld [vmem:[%s9759_s1 + $0x62c] sm:$0xf0]  ;;  %3138 = vmatpush.bf16.msrb.mxu1 %v4431_v59  ;;  %v6214_v50 = vld [vmem:[%s9759_s1 + $0x154] sm:$0xf] }
 0x14a   :  { %v5390_v5 = vld [vmem:[%s9759_s1 + $0x9d0] sm:$0xf]  ;;  %v4911_v12 = vor.u32 %v6370_v3, %v4910_v2  ;;  %v4307_v58 = vor.u32 %v6214_v50, %v4304_v51  ;;  %v2933_v2 = vpop.f32.mrf.mxu1 }
 0x14b   :  { %v6490_v6 = vld [vmem:[%s9759_s1 + $0x9ec] sm:$0xf0]  ;;  %3151 = vmatpush.bf16.msrb.mxu2 %v4687_v60  ;;  %3126 = vmatpush.bf16.msrb.mxu0 %v4143_v8 }
 0x14c   :  { %v5646_v7 = vld [vmem:[%s9759_s1 + $0xbd0] sm:$0xf]  ;;  %v5391_v21 = vor.u32 %v6490_v6, %v5390_v5 }
 0x14d   :  { %v6554_v9 = vld [vmem:[%s9759_s1 + $0xbec] sm:$0xf0]  ;;  %3164 = vmatpush.bf16.msrb.mxu3 %v4943_v0  ;;  %3139 = vmatpush.bf16.msrb.mxu1 %v4399_v13  ;;  %v2921_v0 = vadd.f32 %v2920_v61, %v8274_v42  ;;  %v4275_v42 = vor.u32 %v6206_v62, %v4272_v63  ;;  %v6198_v13 = vld [vmem:[%s9759_s1 + $0xd4] sm:$0xf] }
 0x14e   :  { %v5902_v10 = vld [vmem:[%s9759_s1 + $0xdd0] sm:$0xf]  ;;  %v5647_v23 = vor.u32 %v6554_v9, %v5646_v7  ;;  %3127 = vmatmul.bf16.vlgmr.msrb.gmra.mxu0 %v7013_v19 }
 0x14f   :  { %v6618_v11 = vld [vmem:[%s9759_s1 + $0xdec] sm:$0xf0]  ;;  %3152 = vmatpush.bf16.msrb.mxu2 %v4655_v14  ;;  %3171 = vmatpush.bf16.msra.mxu0 %v5391_v21  ;;  %v8434_v8 = vadd.f32 %v2933_v2, %v2921_v0  ;;  %v4240_v14 = vld [vmem:[%s9759_s1 + $0xf0] sm:$0xf0] }
 0x150   :  { %v5903_v24 = vor.u32 %v6618_v11, %v5902_v10  ;;  %v5358_v25 = vld [vmem:[%s9759_s1 + $0x990] sm:$0xf]  ;;  %3140 = vmatmul.bf16.vlgmr.msrb.gmra.mxu1 %v7017_v22  ;;  %v4243_v15 = vor.u32 %v6198_v13, %v4240_v14  ;;  %v6174_v0 = vld [vmem:[%s9759_s1 + $0x14] sm:$0xf] }
 0x151   :  { %v6482_v26 = vld [vmem:[%s9759_s1 + $0x9ac] sm:$0xf0]  ;;  %3165 = vmatpush.bf16.msrb.mxu3 %v4911_v12  ;;  %3184 = vmatpush.bf16.msra.mxu1 %v5647_v23  ;;  %v6486_v14 = vld [vmem:[%s9759_s1 + $0x9d4] sm:$0xf] }
 0x152   :  { %v5614_v27 = vld [vmem:[%s9759_s1 + $0xb90] sm:$0xf]  ;;  %v5359_v35 = vor.u32 %v6482_v26, %v5358_v25  ;;  %3153 = vmatmul.bf16.vlgmr.msrb.gmra.mxu2 %v7011_v18 }
 0x153   :  { %v6546_v29 = vld [vmem:[%s9759_s1 + $0xbac] sm:$0xf0]  ;;  %3197 = vmatpush.bf16.msra.mxu2 %v5903_v24 }
 0x154   :  { %v5870_v30 = vld [vmem:[%s9759_s1 + $0xd90] sm:$0xf]  ;;  %v5615_v36 = vor.u32 %v6546_v29, %v5614_v27  ;;  %3166 = vmatmul.bf16.vlgmr.msrb.gmra.mxu3 %v7015_v20  ;;  %3172 = vmatpush.bf16.msra.mxu0 %v5359_v35  ;;  %v2946_v29 = vpop.f32.mrf.mxu2  ;;  %v2922_v35 = vpop.f32.mrf.mxu0 }
 0x155   :  { %v6610_v31 = vld [vmem:[%s9759_s1 + $0xdac] sm:$0xf0]  ;;  %3210 = vmatpush.bf16.msra.mxu3 %v4371_v28  ;;  %v2947_v32 = vadd.f32 %v2946_v29, %v476_v16  ;;  %v5392_v16 = vld [vmem:[%s9759_s1 + $0x9f0] sm:$0xf0] }
 0x156   :  { %v5871_v39 = vor.u32 %v6610_v31, %v5870_v30  ;;  %v5326_v43 = vld [vmem:[%s9759_s1 + $0x950] sm:$0xf]  ;;  %3185 = vmatpush.bf16.msra.mxu1 %v5615_v36  ;;  %v6190_v30 = vld [vmem:[%s9759_s1 + $0x94] sm:$0xf] }
 0x157   :  { %v6474_v44 = vld [vmem:[%s9759_s1 + $0x96c] sm:$0xf0]  ;;  %v4208_v31 = vld [vmem:[%s9759_s1 + $0xb0] sm:$0xf0] }
 0x158   :  { %v5582_v45 = vld [vmem:[%s9759_s1 + $0xb50] sm:$0xf]  ;;  %v5327_v52 = vor.u32 %v6474_v44, %v5326_v43  ;;  %3198 = vmatpush.bf16.msra.mxu2 %v5871_v39  ;;  %v2935_v39 = vpop.f32.mrf.mxu1  ;;  %v5104_v29 = vld [vmem:[%s9759_s1 + $0x7b0] sm:$0xf0] }
 0x159   :  { %v6538_v47 = vld [vmem:[%s9759_s1 + $0xb6c] sm:$0xf0]  ;;  %3211 = vmatpush.bf16.msra.mxu3 %v4339_v46  ;;  %v4560_v39 = vld [vmem:[%s9759_s1 + $0x370] sm:$0xf0] }
 0x15a   :  { %v5838_v48 = vld [vmem:[%s9759_s1 + $0xd50] sm:$0xf]  ;;  %v5583_v53 = vor.u32 %v6538_v47, %v5582_v45  ;;  %3173 = vmatpush.bf16.msra.mxu0 %v5327_v52 }
 0x15b   :  { %v6602_v49 = vld [vmem:[%s9759_s1 + $0xd6c] sm:$0xf0] }
 0x15c   :  { %v5839_v54 = vor.u32 %v6602_v49, %v5838_v48  ;;  %v5294_v55 = vld [vmem:[%s9759_s1 + $0x910] sm:$0xf]  ;;  %3186 = vmatpush.bf16.msra.mxu1 %v5583_v53  ;;  %v8485_v48 = vadd.f32 %v2959_v33, %v2947_v32  ;;  %v4211_v49 = vor.u32 %v6190_v30, %v4208_v31  ;;  %v6182_v53 = vld [vmem:[%s9759_s1 + $0x54] sm:$0xf]  ;;  %v2948_v2 = vpop.f32.mrf.mxu2 }
 0x15d   :  { %v6466_v56 = vld [vmem:[%s9759_s1 + $0x92c] sm:$0xf0]  ;;  %3212 = vmatpush.bf16.msra.mxu3 %v4307_v58  ;;  %v6478_v30 = vld [vmem:[%s9759_s1 + $0x994] sm:$0xf] }
 0x15e   :  { %v5550_v57 = vld [vmem:[%s9759_s1 + $0xb10] sm:$0xf]  ;;  %v5295_v1 = vor.u32 %v6466_v56, %v5294_v55  ;;  %3199 = vmatpush.bf16.msra.mxu2 %v5839_v54  ;;  %v4176_v54 = vld [vmem:[%s9759_s1 + $0x70] sm:$0xf0] }
 0x15f   :  { %v6530_v59 = vld [vmem:[%s9759_s1 + $0xb2c] sm:$0xf0]  ;;  %v4179_v62 = vor.u32 %v6182_v53, %v4176_v54  ;;  %v5360_v31 = vld [vmem:[%s9759_s1 + $0x9b0] sm:$0xf0] }
 0x160   :  { %v5806_v60 = vld [vmem:[%s9759_s1 + $0xd10] sm:$0xf]  ;;  %v5551_v3 = vor.u32 %v6530_v59, %v5550_v57  ;;  %3174 = vmatpush.bf16.msra.mxu0 %v5295_v1  ;;  %v4144_v1 = vld [vmem:[%s9759_s1 + $0x30] sm:$0xf0] }
 0x161   :  { %v6594_v38 = vld [vmem:[%s9759_s1 + $0xd2c] sm:$0xf0]  ;;  %3213 = vmatpush.bf16.msra.mxu3 %v4275_v42  ;;  %v4880_v42 = vld [vmem:[%s9759_s1 + $0x5f0] sm:$0xf0] }
 0x162   :  { %v5807_v4 = vor.u32 %v6594_v38, %v5806_v60  ;;  %v5262_v5 = vld [vmem:[%s9759_s1 + $0x8d0] sm:$0xf]  ;;  %3187 = vmatpush.bf16.msra.mxu1 %v5551_v3  ;;  %v6294_v3 = vld [vmem:[%s9759_s1 + $0x3d4] sm:$0xf] }
 0x163   :  { %v6458_v6 = vld [vmem:[%s9759_s1 + $0x8ec] sm:$0xf0]  ;;  %v6270_v54 = vld [vmem:[%s9759_s1 + $0x314] sm:$0xf] }
 0x164   :  { %v5518_v7 = vld [vmem:[%s9759_s1 + $0xad0] sm:$0xf]  ;;  %v5263_v17 = vor.u32 %v6458_v6, %v5262_v5  ;;  %3200 = vmatpush.bf16.msra.mxu2 %v5807_v4  ;;  %v4624_v4 = vld [vmem:[%s9759_s1 + $0x3f0] sm:$0xf0]  ;;  %v2961_v6 = vpop.f32.mrf.mxu3 }
 0x165   :  { %v6522_v9 = vld [vmem:[%s9759_s1 + $0xaec] sm:$0xf0]  ;;  %3214 = vmatpush.bf16.msra.mxu3 %v4243_v15  ;;  %v6358_v5 = vld [vmem:[%s9759_s1 + $0x5d4] sm:$0xf]  ;;  %v2985_v6 = vpop.f32.mrf.mxu1 }
 0x166   :  { %v5774_v10 = vld [vmem:[%s9759_s1 + $0xcd0] sm:$0xf]  ;;  %v5519_v12 = vor.u32 %v6522_v9, %v5518_v7  ;;  %3175 = vmatpush.bf16.msra.mxu0 %v5263_v17  ;;  %v6422_v9 = vld [vmem:[%s9759_s1 + $0x7d4] sm:$0xf]  ;;  %v4147_v17 = vor.u32 %v6174_v0, %v4144_v1 }
 0x167   :  { %v6586_v11 = vld [vmem:[%s9759_s1 + $0xcec] sm:$0xf0]  ;;  %v6350_v15 = vld [vmem:[%s9759_s1 + $0x594] sm:$0xf] }
 0x168   :  { %v5775_v21 = vor.u32 %v6586_v11, %v5774_v10  ;;  %v5230_v23 = vld [vmem:[%s9759_s1 + $0x890] sm:$0xf]  ;;  %3188 = vmatpush.bf16.msra.mxu1 %v5519_v12  ;;  %v5136_v10 = vld [vmem:[%s9759_s1 + $0x7f0] sm:$0xf0]  ;;  %v4627_v12 = vor.u32 %v6294_v3, %v4624_v4 }
 0x169   :  { %v6450_v24 = vld [vmem:[%s9759_s1 + $0x8ac] sm:$0xf0]  ;;  %3215 = vmatpush.bf16.msra.mxu3 %v4211_v49  ;;  %v6470_v49 = vld [vmem:[%s9759_s1 + $0x954] sm:$0xf] }
 0x16a   :  { %v5486_v25 = vld [vmem:[%s9759_s1 + $0xa90] sm:$0xf]  ;;  %v5231_v36 = vor.u32 %v6450_v24, %v5230_v23  ;;  %3201 = vmatpush.bf16.msra.mxu2 %v5775_v21  ;;  %v4883_v21 = vor.u32 %v6358_v5, %v4880_v42  ;;  %v5139_v23 = vor.u32 %v6422_v9, %v5136_v10  ;;  %v6286_v24 = vld [vmem:[%s9759_s1 + $0x394] sm:$0xf] }
 0x16b   :  { %v6514_v26 = vld [vmem:[%s9759_s1 + $0xaac] sm:$0xf0]  ;;  %v6262_v2 = vld [vmem:[%s9759_s1 + $0x2d4] sm:$0xf] }
 0x16c   :  { %v5742_v27 = vld [vmem:[%s9759_s1 + $0xc90] sm:$0xf]  ;;  %v5487_v43 = vor.u32 %v6514_v26, %v5486_v25  ;;  %3176 = vmatpush.bf16.msra.mxu0 %v5231_v36  ;;  %v4592_v25 = vld [vmem:[%s9759_s1 + $0x3b0] sm:$0xf0]  ;;  %v5395_v26 = vor.u32 %v6486_v14, %v5392_v16 }
 0x16d   :  { %v6578_v28 = vld [vmem:[%s9759_s1 + $0xcac] sm:$0xf0]  ;;  %3216 = vmatpush.bf16.msra.mxu3 %v4179_v62  ;;  %v4595_v32 = vor.u32 %v6286_v24, %v4592_v25  ;;  %v6278_v36 = vld [vmem:[%s9759_s1 + $0x354] sm:$0xf]  ;;  %v2998_v24 = vpop.f32.mrf.mxu2 }
 0x16e   :  { %v5743_v44 = vor.u32 %v6578_v28, %v5742_v27  ;;  %v5198_v45 = vld [vmem:[%s9759_s1 + $0x850] sm:$0xf]  ;;  %3189 = vmatpush.bf16.msra.mxu1 %v5487_v43  ;;  %v4848_v27 = vld [vmem:[%s9759_s1 + $0x5b0] sm:$0xf0] }
 0x16f   :  { %v6442_v46 = vld [vmem:[%s9759_s1 + $0x86c] sm:$0xf0]  ;;  %v6414_v28 = vld [vmem:[%s9759_s1 + $0x794] sm:$0xf]  ;;  %v4851_v33 = vor.u32 %v6350_v15, %v4848_v27 }
 0x170   :  { %v5454_v47 = vld [vmem:[%s9759_s1 + $0xa50] sm:$0xf]  ;;  %v5199_v55 = vor.u32 %v6442_v46, %v5198_v45  ;;  %3202 = vmatpush.bf16.msra.mxu2 %v5743_v44  ;;  %v5107_v35 = vor.u32 %v6414_v28, %v5104_v29  ;;  %v6342_v43 = vld [vmem:[%s9759_s1 + $0x554] sm:$0xf]  ;;  %v5363_v44 = vor.u32 %v6478_v30, %v5360_v31  ;;  %v3011_v29 = vpop.f32.mrf.mxu3 }
 0x171   :  { %v6506_v50 = vld [vmem:[%s9759_s1 + $0xa6c] sm:$0xf0]  ;;  %3217 = vmatpush.bf16.msra.mxu3 %v4147_v17  ;;  %v4816_v45 = vld [vmem:[%s9759_s1 + $0x570] sm:$0xf0] }
 0x172   :  { %v5710_v51 = vld [vmem:[%s9759_s1 + $0xc50] sm:$0xf]  ;;  %v5455_v58 = vor.u32 %v6506_v50, %v5454_v47  ;;  %3177 = vmatpush.bf16.msra.mxu0 %v5199_v55  ;;  %v6406_v46 = vld [vmem:[%s9759_s1 + $0x754] sm:$0xf] }
 0x173   :  { %v6570_v52 = vld [vmem:[%s9759_s1 + $0xc6c] sm:$0xf0]  ;;  %v5072_v47 = vld [vmem:[%s9759_s1 + $0x770] sm:$0xf0] }
 0x174   :  { %v5166_v56 = vld [vmem:[%s9759_s1 + $0x810] sm:$0xf]  ;;  %v5711_v59 = vor.u32 %v6570_v52, %v5710_v51  ;;  %3190 = vmatpush.bf16.msra.mxu1 %v5455_v58  ;;  %v5328_v50 = vld [vmem:[%s9759_s1 + $0x970] sm:$0xf0]  ;;  %v4563_v51 = vor.u32 %v6278_v36, %v4560_v39  ;;  %3218 = vmatmul.bf16.vlgmr.msra.gmra.mxu3 %v7013_v19  ;;  %v4819_v52 = vor.u32 %v6342_v43, %v4816_v45 }
 0x175   :  { %v6434_v57 = vld [vmem:[%s9759_s1 + $0x82c] sm:$0xf0]  ;;  %3262 = vmatpush.bf16.msrb.mxu3 %v5395_v26  ;;  %v5075_v53 = vor.u32 %v6406_v46, %v5072_v47  ;;  %v4528_v55 = vld [vmem:[%s9759_s1 + $0x330] sm:$0xf0]  ;;  %v2987_v46 = vpop.f32.mrf.mxu1 }
 0x176   :  { %v5422_v60 = vld [vmem:[%s9759_s1 + $0xa10] sm:$0xf]  ;;  %v5167_v7 = vor.u32 %v6434_v57, %v5166_v56  ;;  %3203 = vmatpush.bf16.msra.mxu2 %v5711_v59  ;;  %v6334_v56 = vld [vmem:[%s9759_s1 + $0x514] sm:$0xf]  ;;  %v5331_v57 = vor.u32 %v6470_v49, %v5328_v50  ;;  %v4531_v62 = vor.u32 %v6270_v54, %v4528_v55  ;;  %v6219_v46 = vld [vmem:[%s9759_s1 + $0x174] sm:$0xf0] }
 0x177   :  { %v6498_v38 = vld [vmem:[%s9759_s1 + $0xa2c] sm:$0xf0]  ;;  %v4784_v58 = vld [vmem:[%s9759_s1 + $0x530] sm:$0xf0] }
 0x178   :  { %v5678_v61 = vld [vmem:[%s9759_s1 + $0xc10] sm:$0xf]  ;;  %v5423_v11 = vor.u32 %v6498_v38, %v5422_v60  ;;  %3178 = vmatpush.bf16.msra.mxu0 %v5167_v7  ;;  %v6398_v59 = vld [vmem:[%s9759_s1 + $0x714] sm:$0xf]  ;;  %v4787_v0 = vor.u32 %v6334_v56, %v4784_v58 }
 0x179   :  { %v6562_v63 = vld [vmem:[%s9759_s1 + $0xc2c] sm:$0xf0]  ;;  %3263 = vmatpush.bf16.msrb.mxu3 %v5363_v44  ;;  %v5040_v60 = vld [vmem:[%s9759_s1 + $0x730] sm:$0xf0] }
 0x17a   :  { %v5679_v13 = vor.u32 %v6562_v63, %v5678_v61  ;;  %3191 = vmatpush.bf16.msra.mxu1 %v5423_v11  ;;  %v6462_v38 = vld [vmem:[%s9759_s1 + $0x914] sm:$0xf]  ;;  %v2972_v63 = vpop.f32.mrf.mxu0  ;;  %v5043_v1 = vor.u32 %v6398_v59, %v5040_v60 }
 0x17b   :  { %3179 = vmatmul.bf16.vlgmr.msra.gmra.mxu0 %v7175_v40  ;;  %v5296_v61 = vld [vmem:[%s9759_s1 + $0x930] sm:$0xf0]  ;;  %v2973_v5 = vadd.f32 %v2972_v63, %v8485_v48 }
 0x17c   :  { %3204 = vmatpush.bf16.msra.mxu2 %v5679_v13  ;;  %3223 = vmatpush.bf16.msrb.mxu0 %v4627_v12  ;;  %v4496_v3 = vld [vmem:[%s9759_s1 + $0x2f0] sm:$0xf0]  ;;  %v5299_v7 = vor.u32 %v6462_v38, %v5296_v61  ;;  %v3000_v61 = vpop.f32.mrf.mxu2 }
 0x17d   :  { %3192 = vmatmul.bf16.vlgmr.msra.gmra.mxu1 %v7177_v41  ;;  %v6326_v4 = vld [vmem:[%s9759_s1 + $0x4d4] sm:$0xf]  ;;  %3264 = vmatpush.bf16.msrb.mxu3 %v5331_v57  ;;  %v2986_v13 = vadd.f32 %v2985_v6, %v2973_v5  ;;  %v4499_v14 = vor.u32 %v6262_v2, %v4496_v3  ;;  %v3013_v2 = vpop.f32.mrf.mxu3  ;;  %v6275_v61 = vld [vmem:[%s9759_s1 + $0x334] sm:$0xf0] }
 0x17e   :  { %3236 = vmatpush.bf16.msrb.mxu1 %v4883_v21  ;;  %v4752_v42 = vld [vmem:[%s9759_s1 + $0x4f0] sm:$0xf0] }
 0x17f   :  { %3205 = vmatmul.bf16.vlgmr.msra.gmra.mxu2 %v7167_v37  ;;  %v6390_v9 = vld [vmem:[%s9759_s1 + $0x6d4] sm:$0xf]  ;;  %v4755_v16 = vor.u32 %v6326_v4, %v4752_v42  ;;  %v2999_v28 = vadd.f32 %v2998_v24, %v2986_v13  ;;  %v4374_v42 = vld [vmem:[%s9759_s1 + $0x1d8] sm:$0xf] }
 0x180   :  { %3249 = vmatpush.bf16.msrb.mxu2 %v5139_v23  ;;  %3224 = vmatpush.bf16.msrb.mxu0 %v4595_v32  ;;  %v5008_v10 = vld [vmem:[%s9759_s1 + $0x6f0] sm:$0xf0]  ;;  %v6299_v13 = vld [vmem:[%s9759_s1 + $0x3f4] sm:$0xf0] }
 0x181   :  { %v6454_v11 = vld [vmem:[%s9759_s1 + $0x8d4] sm:$0xf]  ;;  %v5011_v17 = vor.u32 %v6390_v9, %v5008_v10  ;;  %3265 = vmatpush.bf16.msrb.mxu3 %v5299_v7  ;;  %v6235_v9 = vld [vmem:[%s9759_s1 + $0x1f4] sm:$0xf0] }
 0x182   :  { %3237 = vmatpush.bf16.msrb.mxu1 %v4851_v33  ;;  %v5264_v48 = vld [vmem:[%s9759_s1 + $0x8f0] sm:$0xf0]  ;;  %v8675_v33 = vadd.f32 %v3011_v29, %v2999_v28  ;;  %v4598_v28 = vld [vmem:[%s9759_s1 + $0x398] sm:$0xf] }
 0x183   :  { %v6254_v12 = vld [vmem:[%s9759_s1 + $0x294] sm:$0xf]  ;;  %v5267_v25 = vor.u32 %v6454_v11, %v5264_v48  ;;  %v4630_v48 = vld [vmem:[%s9759_s1 + $0x3d8] sm:$0xf] }
 0x184   :  { %3250 = vmatpush.bf16.msrb.mxu2 %v5107_v35  ;;  %3225 = vmatpush.bf16.msrb.mxu0 %v4563_v51  ;;  %v4464_v21 = vld [vmem:[%s9759_s1 + $0x2b0] sm:$0xf0]  ;;  %v2974_v35 = vpop.f32.mrf.mxu0  ;;  %v6291_v29 = vld [vmem:[%s9759_s1 + $0x3b4] sm:$0xf0] }
 0x185   :  { %v6318_v23 = vld [vmem:[%s9759_s1 + $0x494] sm:$0xf]  ;;  %v4467_v32 = vor.u32 %v6254_v12, %v4464_v21  ;;  %3266 = vmatpush.bf16.msrb.mxu3 %v5267_v25  ;;  %v4375_v12 = vor.u32 %v6235_v9, %v4374_v42  ;;  %v4631_v25 = vor.u32 %v6299_v13, %v4630_v48  ;;  %v4246_v9 = vld [vmem:[%s9759_s1 + $0xd8] sm:$0xf] }
 0x186   :  { %3238 = vmatpush.bf16.msrb.mxu1 %v4819_v52  ;;  %v4720_v15 = vld [vmem:[%s9759_s1 + $0x4b0] sm:$0xf0]  ;;  %v6267_v48 = vld [vmem:[%s9759_s1 + $0x2f4] sm:$0xf0] }
 0x187   :  { %v6382_v26 = vld [vmem:[%s9759_s1 + $0x694] sm:$0xf]  ;;  %v4723_v36 = vor.u32 %v6318_v23, %v4720_v15 }
 0x188   :  { %3251 = vmatpush.bf16.msrb.mxu2 %v5075_v53  ;;  %3226 = vmatpush.bf16.msrb.mxu0 %v4531_v62  ;;  %v4976_v27 = vld [vmem:[%s9759_s1 + $0x6b0] sm:$0xf0] }
 0x189   :  { %v6446_v30 = vld [vmem:[%s9759_s1 + $0x894] sm:$0xf]  ;;  %v4979_v39 = vor.u32 %v6382_v26, %v4976_v27  ;;  %v4342_v26 = vld [vmem:[%s9759_s1 + $0x198] sm:$0xf] }
 0x18a   :  { %3239 = vmatpush.bf16.msrb.mxu1 %v4787_v0  ;;  %v5232_v31 = vld [vmem:[%s9759_s1 + $0x8b0] sm:$0xf0]  ;;  %v6227_v27 = vld [vmem:[%s9759_s1 + $0x1b4] sm:$0xf0] }
 0x18b   :  { %v6246_v43 = vld [vmem:[%s9759_s1 + $0x254] sm:$0xf]  ;;  %v5235_v47 = vor.u32 %v6446_v30, %v5232_v31 }
 0x18c   :  { %3252 = vmatpush.bf16.msrb.mxu2 %v5043_v1  ;;  %3227 = vmatpush.bf16.msrb.mxu0 %v4499_v14  ;;  %v4432_v44 = vld [vmem:[%s9759_s1 + $0x270] sm:$0xf0] }
 0x18d   :  { %v6310_v45 = vld [vmem:[%s9759_s1 + $0x454] sm:$0xf]  ;;  %v4435_v54 = vor.u32 %v6246_v43, %v4432_v44  ;;  %3267 = vmatpush.bf16.msrb.mxu3 %v5235_v47  ;;  %v4599_v43 = vor.u32 %v6291_v29, %v4598_v28  ;;  %v4566_v47 = vld [vmem:[%s9759_s1 + $0x358] sm:$0xf]  ;;  %v3063_v28 = vpop.f32.mrf.mxu3 }
 0x18e   :  { %3240 = vmatpush.bf16.msrb.mxu1 %v4755_v16  ;;  %v4688_v49 = vld [vmem:[%s9759_s1 + $0x470] sm:$0xf0]  ;;  %v4470_v29 = vld [vmem:[%s9759_s1 + $0x298] sm:$0xf] }
 0x18f   :  { %v6374_v50 = vld [vmem:[%s9759_s1 + $0x654] sm:$0xf]  ;;  %v4691_v57 = vor.u32 %v6310_v45, %v4688_v49  ;;  %v4310_v45 = vld [vmem:[%s9759_s1 + $0x158] sm:$0xf] }
 0x190   :  { %3253 = vmatpush.bf16.msrb.mxu2 %v5011_v17  ;;  %v4944_v51 = vld [vmem:[%s9759_s1 + $0x670] sm:$0xf0]  ;;  %3228 = vmatpush.bf16.msrb.mxu0 %v4467_v32  ;;  %v4343_v32 = vor.u32 %v6227_v27, %v4342_v26  ;;  %v6283_v49 = vld [vmem:[%s9759_s1 + $0x374] sm:$0xf0]  ;;  %v3050_v27 = vpop.f32.mrf.mxu2 }
 0x191   :  { %v6438_v52 = vld [vmem:[%s9759_s1 + $0x854] sm:$0xf]  ;;  %v4947_v58 = vor.u32 %v6374_v50, %v4944_v51  ;;  %v6195_v26 = vld [vmem:[%s9759_s1 + $0xb4] sm:$0xf0] }
 0x192   :  { %v5200_v53 = vld [vmem:[%s9759_s1 + $0x870] sm:$0xf0]  ;;  %3241 = vmatpush.bf16.msrb.mxu1 %v4723_v36 }
 0x193   :  { %v6238_v55 = vld [vmem:[%s9759_s1 + $0x214] sm:$0xf]  ;;  %v5203_v62 = vor.u32 %v6438_v52, %v5200_v53  ;;  %v4311_v52 = vor.u32 %v6219_v46, %v4310_v45 }
 0x194   :  { %v4400_v56 = vld [vmem:[%s9759_s1 + $0x230] sm:$0xf0]  ;;  %3254 = vmatpush.bf16.msrb.mxu2 %v4979_v39  ;;  %3229 = vmatpush.bf16.msrb.mxu0 %v4435_v54 }
 0x195   :  { %v6302_v59 = vld [vmem:[%s9759_s1 + $0x414] sm:$0xf]  ;;  %v4403_v6 = vor.u32 %v6238_v55, %v4400_v56  ;;  %3268 = vmatpush.bf16.msrb.mxu3 %v5203_v62  ;;  %v4567_v56 = vor.u32 %v6283_v49, %v4566_v47  ;;  %v8828_v62 = vld [vmem:[%s9761_s2] sm:$0xff] }
 0x196   :  { %v4656_v60 = vld [vmem:[%s9759_s1 + $0x430] sm:$0xf0]  ;;  %3242 = vmatpush.bf16.msrb.mxu1 %v4691_v57 }
 0x197   :  { %v6366_v38 = vld [vmem:[%s9759_s1 + $0x614] sm:$0xf]  ;;  %v4659_v10 = vor.u32 %v6302_v59, %v4656_v60  ;;  %v6211_v59 = vld [vmem:[%s9759_s1 + $0x134] sm:$0xf0]  ;;  %v3024_v60 = vpop.f32.mrf.mxu0 }
 0x198   :  { %v4912_v63 = vld [vmem:[%s9759_s1 + $0x630] sm:$0xf0]  ;;  %3255 = vmatpush.bf16.msrb.mxu2 %v4947_v58  ;;  %3230 = vmatpush.bf16.msrb.mxu0 %v4403_v6  ;;  %v4278_v58 = vld [vmem:[%s9759_s1 + $0x118] sm:$0xf] }
 0x199   :  { %v6430_v0 = vld [vmem:[%s9759_s1 + $0x814] sm:$0xf]  ;;  %v4915_v11 = vor.u32 %v6366_v38, %v4912_v63  ;;  %v4534_v38 = vld [vmem:[%s9759_s1 + $0x318] sm:$0xf]  ;;  %v477_v63 = vperm.slane %v8828_v62, 3 }
 0x19a   :  { %v5168_v1 = vld [vmem:[%s9759_s1 + $0x830] sm:$0xf0]  ;;  %3243 = vmatpush.bf16.msrb.mxu1 %v4659_v10  ;;  %v6203_v10 = vld [vmem:[%s9759_s1 + $0xf4] sm:$0xf0] }
 0x19b   :  { %v6550_v3 = vld [vmem:[%s9759_s1 + $0xbd4] sm:$0xf]  ;;  %v5171_v14 = vor.u32 %v6430_v0, %v5168_v1  ;;  %3231 = vmatmul.bf16.vlgmr.msrb.gmra.mxu0 %v7017_v22  ;;  %v8832_v0 = vadd.f32 %v3024_v60, %v8675_v33  ;;  %v4535_v33 = vor.u32 %v6275_v61, %v4534_v38  ;;  %v4150_v61 = vld [vmem:[%s9759_s1 + $0x18] sm:$0xf] }
 0x19c   :  { %v5648_v4 = vld [vmem:[%s9759_s1 + $0xbf0] sm:$0xf0]  ;;  %3256 = vmatpush.bf16.msrb.mxu2 %v4915_v11  ;;  %v4502_v11 = vld [vmem:[%s9759_s1 + $0x2d8] sm:$0xf] }
 0x19d   :  { %v6614_v5 = vld [vmem:[%s9759_s1 + $0xdd4] sm:$0xf]  ;;  %v5651_v16 = vor.u32 %v6550_v3, %v5648_v4  ;;  %3269 = vmatpush.bf16.msrb.mxu3 %v5171_v14  ;;  %3244 = vmatmul.bf16.vlgmr.msrb.gmra.mxu1 %v7011_v18  ;;  %v4279_v3 = vor.u32 %v6211_v59, %v4278_v58 }
 0x19e   :  { %v5904_v7 = vld [vmem:[%s9759_s1 + $0xdf0] sm:$0xf0] }
 0x19f   :  { %v5907_v17 = vor.u32 %v6614_v5, %v5904_v7  ;;  %v6542_v21 = vld [vmem:[%s9759_s1 + $0xb94] sm:$0xf]  ;;  %3275 = vmatpush.bf16.msra.mxu0 %v5651_v16  ;;  %3257 = vmatmul.bf16.vlgmr.msrb.gmra.mxu2 %v7015_v20  ;;  %v3037_v7 = vpop.f32.mrf.mxu1 }
 0x1a0   :  { %v5616_v23 = vld [vmem:[%s9759_s1 + $0xbb0] sm:$0xf0]  ;;  %3301 = vmatpush.bf16.msra.mxu2 %v4375_v12  ;;  %3270 = vmatmul.bf16.vlgmr.msrb.gmra.mxu3 %v7175_v40  ;;  %v3038_v13 = vadd.f32 %v3037_v7, %v477_v63  ;;  %v6363_v7 = vld [vmem:[%s9759_s1 + $0x5f4] sm:$0xf0] }
 0x1a1   :  { %v6606_v24 = vld [vmem:[%s9759_s1 + $0xd94] sm:$0xf]  ;;  %v5619_v30 = vor.u32 %v6542_v21, %v5616_v23  ;;  %3288 = vmatpush.bf16.msra.mxu1 %v5907_v17  ;;  %3314 = vmatpush.bf16.msra.mxu3 %v4631_v25  ;;  %v4247_v17 = vor.u32 %v6203_v10, %v4246_v9  ;;  %v6427_v9 = vld [vmem:[%s9759_s1 + $0x7f4] sm:$0xf0] }
 0x1a2   :  { %v5872_v15 = vld [vmem:[%s9759_s1 + $0xdb0] sm:$0xf0]  ;;  %v5398_v10 = vld [vmem:[%s9759_s1 + $0x9d8] sm:$0xf] }
 0x1a3   :  { %v5875_v31 = vor.u32 %v6606_v24, %v5872_v15  ;;  %v6534_v35 = vld [vmem:[%s9759_s1 + $0xb54] sm:$0xf]  ;;  %3276 = vmatpush.bf16.msra.mxu0 %v5619_v30  ;;  %v4503_v24 = vor.u32 %v6267_v48, %v4502_v11  ;;  %v4214_v15 = vld [vmem:[%s9759_s1 + $0x98] sm:$0xf] }
 0x1a4   :  { %v5584_v36 = vld [vmem:[%s9759_s1 + $0xb70] sm:$0xf0]  ;;  %3302 = vmatpush.bf16.msra.mxu2 %v4343_v32  ;;  %v6259_v30 = vld [vmem:[%s9759_s1 + $0x2b4] sm:$0xf0]  ;;  %v3026_v32 = vpop.f32.mrf.mxu0 }
 0x1a5   :  { %v6598_v39 = vld [vmem:[%s9759_s1 + $0xd54] sm:$0xf]  ;;  %v5587_v50 = vor.u32 %v6534_v35, %v5584_v36  ;;  %3289 = vmatpush.bf16.msra.mxu1 %v5875_v31  ;;  %3315 = vmatpush.bf16.msra.mxu3 %v4599_v43  ;;  %v3051_v31 = vadd.f32 %v3050_v27, %v3038_v13  ;;  %v4471_v49 = vor.u32 %v6259_v30, %v4470_v29  ;;  %v6491_v11 = vld [vmem:[%s9759_s1 + $0x9f4] sm:$0xf0] }
 0x1a6   :  { %v5840_v44 = vld [vmem:[%s9759_s1 + $0xd70] sm:$0xf0]  ;;  %v6419_v27 = vld [vmem:[%s9759_s1 + $0x7b4] sm:$0xf0] }
 0x1a7   :  { %v5843_v51 = vor.u32 %v6598_v39, %v5840_v44  ;;  %v6526_v53 = vld [vmem:[%s9759_s1 + $0xb14] sm:$0xf]  ;;  %3277 = vmatpush.bf16.msra.mxu0 %v5587_v50  ;;  %v4215_v39 = vor.u32 %v6195_v26, %v4214_v15  ;;  %v8891_v46 = vadd.f32 %v3063_v28, %v3051_v31  ;;  %v3039_v47 = vpop.f32.mrf.mxu1  ;;  %v5110_v15 = vld [vmem:[%s9759_s1 + $0x798] sm:$0xf] }
 0x1a8   :  { %v5552_v54 = vld [vmem:[%s9759_s1 + $0xb30] sm:$0xf0]  ;;  %3303 = vmatpush.bf16.msra.mxu2 %v4311_v52  ;;  %v6187_v52 = vld [vmem:[%s9759_s1 + $0x74] sm:$0xf0] }
 0x1a9   :  { %v6590_v55 = vld [vmem:[%s9759_s1 + $0xd14] sm:$0xf]  ;;  %v5555_v1 = vor.u32 %v6526_v53, %v5552_v54  ;;  %3290 = vmatpush.bf16.msra.mxu1 %v5843_v51  ;;  %3316 = vmatpush.bf16.msra.mxu3 %v4567_v56  ;;  %v4182_v51 = vld [vmem:[%s9759_s1 + $0x58] sm:$0xf] }
 0x1aa   :  { %v5808_v57 = vld [vmem:[%s9759_s1 + $0xd30] sm:$0xf0]  ;;  %v4438_v53 = vld [vmem:[%s9759_s1 + $0x258] sm:$0xf]  ;;  %v4183_v59 = vor.u32 %v6187_v52, %v4182_v51 }
 0x1ab   :  { %v5811_v2 = vor.u32 %v6590_v55, %v5808_v57  ;;  %v6518_v4 = vld [vmem:[%s9759_s1 + $0xad4] sm:$0xf]  ;;  %3278 = vmatpush.bf16.msra.mxu0 %v5555_v1  ;;  %v6251_v54 = vld [vmem:[%s9759_s1 + $0x274] sm:$0xf0] }
 0x1ac   :  { %v5520_v5 = vld [vmem:[%s9759_s1 + $0xaf0] sm:$0xf0]  ;;  %3304 = vmatpush.bf16.msra.mxu2 %v4279_v3  ;;  %v4439_v63 = vor.u32 %v6251_v54, %v4438_v53  ;;  %v6179_v1 = vld [vmem:[%s9759_s1 + $0x34] sm:$0xf0] }
 0x1ad   :  { %v6582_v6 = vld [vmem:[%s9759_s1 + $0xcd4] sm:$0xf]  ;;  %v5523_v14 = vor.u32 %v6518_v4, %v5520_v5  ;;  %3291 = vmatpush.bf16.msra.mxu1 %v5811_v2  ;;  %3317 = vmatpush.bf16.msra.mxu3 %v4535_v33  ;;  %v4406_v2 = vld [vmem:[%s9759_s1 + $0x218] sm:$0xf]  ;;  %v3052_v4 = vpop.f32.mrf.mxu2  ;;  %v3065_v5 = vpop.f32.mrf.mxu3  ;;  %v4151_v13 = vor.u32 %v6179_v1, %v4150_v61 }
 0x1ae   :  { %v5776_v42 = vld [vmem:[%s9759_s1 + $0xcf0] sm:$0xf0]  ;;  %v6243_v3 = vld [vmem:[%s9759_s1 + $0x234] sm:$0xf0] }
 0x1af   :  { %v5779_v16 = vor.u32 %v6582_v6, %v5776_v42  ;;  %v6510_v12 = vld [vmem:[%s9759_s1 + $0xa94] sm:$0xf]  ;;  %3279 = vmatpush.bf16.msra.mxu0 %v5523_v14  ;;  %v4886_v6 = vld [vmem:[%s9759_s1 + $0x5d8] sm:$0xf] }
 0x1b0   :  { %v5488_v21 = vld [vmem:[%s9759_s1 + $0xab0] sm:$0xf0]  ;;  %3305 = vmatpush.bf16.msra.mxu2 %v4247_v17  ;;  %v5142_v33 = vld [vmem:[%s9759_s1 + $0x7d8] sm:$0xf]  ;;  %v4407_v17 = vor.u32 %v6243_v3, %v4406_v2  ;;  %v3076_v3 = vpop.f32.mrf.mxu0 }
 0x1b1   :  { %v6574_v23 = vld [vmem:[%s9759_s1 + $0xc94] sm:$0xf]  ;;  %v5491_v35 = vor.u32 %v6510_v12, %v5488_v21  ;;  %3292 = vmatpush.bf16.msra.mxu1 %v5779_v16  ;;  %3318 = vmatpush.bf16.msra.mxu3 %v4503_v24  ;;  %v5654_v14 = vld [vmem:[%s9759_s1 + $0xbd8] sm:$0xf]  ;;  %v4887_v12 = vor.u32 %v6363_v7, %v4886_v6  ;;  %v5143_v21 = vor.u32 %v6427_v9, %v5142_v33  ;;  %v3089_v9 = vpop.f32.mrf.mxu1 }
 0x1b2   :  { %v5744_v25 = vld [vmem:[%s9759_s1 + $0xcb0] sm:$0xf0]  ;;  %v6555_v16 = vld [vmem:[%s9759_s1 + $0xbf4] sm:$0xf0] }
 0x1b3   :  { %v5747_v36 = vor.u32 %v6574_v23, %v5744_v25  ;;  %v6502_v43 = vld [vmem:[%s9759_s1 + $0xa54] sm:$0xf]  ;;  %3280 = vmatpush.bf16.msra.mxu0 %v5491_v35  ;;  %v5399_v23 = vor.u32 %v6491_v11, %v5398_v10  ;;  %v4854_v24 = vld [vmem:[%s9759_s1 + $0x598] sm:$0xf]  ;;  %v5655_v26 = vor.u32 %v6555_v16, %v5654_v14  ;;  %v5111_v35 = vor.u32 %v6419_v27, %v5110_v15 }
 0x1b4   :  { %v5456_v44 = vld [vmem:[%s9759_s1 + $0xa70] sm:$0xf0]  ;;  %3306 = vmatpush.bf16.msra.mxu2 %v4215_v39  ;;  %v6355_v25 = vld [vmem:[%s9759_s1 + $0x5b4] sm:$0xf0] }
 0x1b5   :  { %v6566_v45 = vld [vmem:[%s9759_s1 + $0xc54] sm:$0xf]  ;;  %v5459_v55 = vor.u32 %v6502_v43, %v5456_v44  ;;  %3293 = vmatpush.bf16.msra.mxu1 %v5747_v36  ;;  %3319 = vmatpush.bf16.msra.mxu3 %v4471_v49  ;;  %v5366_v28 = vld [vmem:[%s9759_s1 + $0x998] sm:$0xf]  ;;  %v4855_v32 = vor.u32 %v6355_v25, %v4854_v24  ;;  %v3102_v15 = vpop.f32.mrf.mxu2 }
 0x1b6   :  { %v5712_v50 = vld [vmem:[%s9759_s1 + $0xc70] sm:$0xf0]  ;;  %v6483_v29 = vld [vmem:[%s9759_s1 + $0x9b4] sm:$0xf0] }
 0x1b7   :  { %v6494_v56 = vld [vmem:[%s9759_s1 + $0xa14] sm:$0xf]  ;;  %v5715_v58 = vor.u32 %v6566_v45, %v5712_v50  ;;  %3281 = vmatpush.bf16.msra.mxu0 %v5459_v55  ;;  %v5622_v30 = vld [vmem:[%s9759_s1 + $0xb98] sm:$0xf]  ;;  %v5367_v36 = vor.u32 %v6483_v29, %v5366_v28 }
 0x1b8   :  { %v5424_v57 = vld [vmem:[%s9759_s1 + $0xa30] sm:$0xf0]  ;;  %3307 = vmatpush.bf16.msra.mxu2 %v4183_v59  ;;  %v6547_v31 = vld [vmem:[%s9759_s1 + $0xbb4] sm:$0xf0] }
 0x1b9   :  { %v6558_v60 = vld [vmem:[%s9759_s1 + $0xc14] sm:$0xf]  ;;  %v5427_v42 = vor.u32 %v6494_v56, %v5424_v57  ;;  %3294 = vmatpush.bf16.msra.mxu1 %v5715_v58  ;;  %3320 = vmatpush.bf16.msra.mxu3 %v4439_v63  ;;  %v4822_v39 = vld [vmem:[%s9759_s1 + $0x558] sm:$0xf]  ;;  %v5623_v45 = vor.u32 %v6547_v31, %v5622_v30  ;;  %v3115_v31 = vpop.f32.mrf.mxu3 }
 0x1ba   :  { %v5680_v38 = vld [vmem:[%s9759_s1 + $0xc30] sm:$0xf0]  ;;  %v6347_v43 = vld [vmem:[%s9759_s1 + $0x574] sm:$0xf0] }
 0x1bb   :  { %v5683_v48 = vor.u32 %v6558_v60, %v5680_v38  ;;  %3282 = vmatpush.bf16.msra.mxu0 %v5427_v42  ;;  %v5078_v44 = vld [vmem:[%s9759_s1 + $0x758] sm:$0xf]  ;;  %v4823_v53 = vor.u32 %v6347_v43, %v4822_v39  ;;  %v3077_v42 = vadd.f32 %v3076_v3, %v8891_v46  ;;  %v3078_v43 = vpop.f32.mrf.mxu0 }
 0x1bc   :  { %3308 = vmatpush.bf16.msra.mxu2 %v4151_v13  ;;  %v6411_v47 = vld [vmem:[%s9759_s1 + $0x774] sm:$0xf0] }
 0x1bd   :  { %3295 = vmatpush.bf16.msra.mxu1 %v5683_v48  ;;  %3321 = vmatpush.bf16.msra.mxu3 %v4407_v17  ;;  %v5334_v49 = vld [vmem:[%s9759_s1 + $0x958] sm:$0xf]  ;;  %v5079_v54 = vor.u32 %v6411_v47, %v5078_v44  ;;  %v3090_v16 = vadd.f32 %v3089_v9, %v3077_v42  ;;  %v3104_v3 = vpop.f32.mrf.mxu2 }
 0x1be   :  { %3283 = vmatmul.bf16.vlgmr.msra.gmra.mxu0 %v7177_v41  ;;  %v6475_v50 = vld [vmem:[%s9759_s1 + $0x974] sm:$0xf0]  ;;  %v4536_v3 = vld [vmem:[%s9759_s1 + $0x338] sm:$0xf0] }
 0x1bf   :  { %3327 = vmatpush.bf16.msrb.mxu0 %v4887_v12  ;;  %v5590_v51 = vld [vmem:[%s9759_s1 + $0xb58] sm:$0xf]  ;;  %3309 = vmatmul.bf16.vlgmr.msra.gmra.mxu2 %v7013_v19  ;;  %v5335_v55 = vor.u32 %v6475_v50, %v5334_v49  ;;  %v3103_v30 = vadd.f32 %v3102_v15, %v3090_v16 }
 0x1c0   :  { %3353 = vmatpush.bf16.msrb.mxu2 %v5399_v23  ;;  %3296 = vmatmul.bf16.vlgmr.msra.gmra.mxu1 %v7167_v37  ;;  %v6539_v52 = vld [vmem:[%s9759_s1 + $0xb74] sm:$0xf0] }
 0x1c1   :  { %3340 = vmatpush.bf16.msrb.mxu1 %v5143_v21  ;;  %3366 = vmatpush.bf16.msrb.mxu3 %v5655_v26  ;;  %v4790_v56 = vld [vmem:[%s9759_s1 + $0x518] sm:$0xf]  ;;  %v5591_v59 = vor.u32 %v6539_v52, %v5590_v51  ;;  %v9081_v39 = vadd.f32 %v3115_v31, %v3103_v30  ;;  %v3091_v51 = vpop.f32.mrf.mxu1  ;;  %v6287_v30 = vld [vmem:[%s9759_s1 + $0x39c] sm:$0xf] }
 0x1c2   :  { %3322 = vmatmul.bf16.vlgmr.msra.gmra.mxu3 %v7017_v22  ;;  %v6339_v57 = vld [vmem:[%s9759_s1 + $0x534] sm:$0xf0]  ;;  %v4600_v31 = vld [vmem:[%s9759_s1 + $0x3b8] sm:$0xf0] }
 0x1c3   :  { %3328 = vmatpush.bf16.msrb.mxu0 %v4855_v32  ;;  %v5046_v58 = vld [vmem:[%s9759_s1 + $0x718] sm:$0xf]  ;;  %v4791_v2 = vor.u32 %v6339_v57, %v4790_v56  ;;  %v4312_v51 = vld [vmem:[%s9759_s1 + $0x178] sm:$0xf0] }
 0x1c4   :  { %3354 = vmatpush.bf16.msrb.mxu2 %v5367_v36  ;;  %v6403_v60 = vld [vmem:[%s9759_s1 + $0x734] sm:$0xf0] }
 0x1c5   :  { %3341 = vmatpush.bf16.msrb.mxu1 %v5111_v35  ;;  %3367 = vmatpush.bf16.msrb.mxu3 %v5623_v45  ;;  %v5302_v38 = vld [vmem:[%s9759_s1 + $0x918] sm:$0xf]  ;;  %v5047_v4 = vor.u32 %v6403_v60, %v5046_v58 }
 0x1c6   :  { %v6467_v61 = vld [vmem:[%s9759_s1 + $0x934] sm:$0xf0] }
 0x1c7   :  { %v5558_v63 = vld [vmem:[%s9759_s1 + $0xb18] sm:$0xf]  ;;  %3329 = vmatpush.bf16.msrb.mxu0 %v4823_v53  ;;  %v5303_v5 = vor.u32 %v6467_v61, %v5302_v38 }
 0x1c8   :  { %v6531_v1 = vld [vmem:[%s9759_s1 + $0xb34] sm:$0xf0]  ;;  %3355 = vmatpush.bf16.msrb.mxu2 %v5335_v55 }
 0x1c9   :  { %3342 = vmatpush.bf16.msrb.mxu1 %v5079_v54  ;;  %v4758_v6 = vld [vmem:[%s9759_s1 + $0x4d8] sm:$0xf]  ;;  %3368 = vmatpush.bf16.msrb.mxu3 %v5591_v59  ;;  %v5559_v10 = vor.u32 %v6531_v1, %v5558_v63 }
 0x1ca   :  { %v6331_v7 = vld [vmem:[%s9759_s1 + $0x4f4] sm:$0xf0] }
 0x1cb   :  { %v5014_v33 = vld [vmem:[%s9759_s1 + $0x6d8] sm:$0xf]  ;;  %3330 = vmatpush.bf16.msrb.mxu0 %v4791_v2  ;;  %v4759_v17 = vor.u32 %v6331_v7, %v4758_v6 }
 0x1cc   :  { %v6395_v11 = vld [vmem:[%s9759_s1 + $0x6f4] sm:$0xf0]  ;;  %3356 = vmatpush.bf16.msrb.mxu2 %v5303_v5 }
 0x1cd   :  { %v5270_v48 = vld [vmem:[%s9759_s1 + $0x8d8] sm:$0xf]  ;;  %3343 = vmatpush.bf16.msrb.mxu1 %v5047_v4  ;;  %v5015_v12 = vor.u32 %v6395_v11, %v5014_v33  ;;  %3369 = vmatpush.bf16.msrb.mxu3 %v5559_v10  ;;  %v3117_v33 = vpop.f32.mrf.mxu3  ;;  %v6231_v10 = vld [vmem:[%s9759_s1 + $0x1dc] sm:$0xf] }
 0x1ce   :  { %v6459_v13 = vld [vmem:[%s9759_s1 + $0x8f4] sm:$0xf0] }
 0x1cf   :  { %v5526_v14 = vld [vmem:[%s9759_s1 + $0xad8] sm:$0xf]  ;;  %v5271_v21 = vor.u32 %v6459_v13, %v5270_v48  ;;  %3331 = vmatpush.bf16.msrb.mxu0 %v4759_v17  ;;  %v4376_v48 = vld [vmem:[%s9759_s1 + $0x1f8] sm:$0xf0] }
 0x1d0   :  { %v6523_v46 = vld [vmem:[%s9759_s1 + $0xaf4] sm:$0xf0]  ;;  %v6295_v13 = vld [vmem:[%s9759_s1 + $0x3dc] sm:$0xf] }
 0x1d1   :  { %v4726_v23 = vld [vmem:[%s9759_s1 + $0x498] sm:$0xf]  ;;  %v5527_v26 = vor.u32 %v6523_v46, %v5526_v14  ;;  %3344 = vmatpush.bf16.msrb.mxu1 %v5015_v12  ;;  %3357 = vmatpush.bf16.msrb.mxu2 %v5271_v21  ;;  %v4632_v14 = vld [vmem:[%s9759_s1 + $0x3f8] sm:$0xf0] }
 0x1d2   :  { %v6323_v24 = vld [vmem:[%s9759_s1 + $0x4b4] sm:$0xf0]  ;;  %v6359_v17 = vld [vmem:[%s9759_s1 + $0x5dc] sm:$0xf] }
 0x1d3   :  { %v4982_v25 = vld [vmem:[%s9759_s1 + $0x698] sm:$0xf]  ;;  %v4727_v36 = vor.u32 %v6323_v24, %v4726_v23  ;;  %3370 = vmatpush.bf16.msrb.mxu3 %v5527_v26  ;;  %v4888_v12 = vld [vmem:[%s9759_s1 + $0x5f8] sm:$0xf0]  ;;  %v4379_v24 = vor.u32 %v6231_v10, %v4376_v48  ;;  %v3141_v48 = vpop.f32.mrf.mxu1 }
 0x1d4   :  { %v6387_v27 = vld [vmem:[%s9759_s1 + $0x6b4] sm:$0xf0]  ;;  %v6199_v10 = vld [vmem:[%s9759_s1 + $0xdc] sm:$0xf] }
 0x1d5   :  { %v5238_v28 = vld [vmem:[%s9759_s1 + $0x898] sm:$0xf]  ;;  %v4983_v44 = vor.u32 %v6387_v27, %v4982_v25  ;;  %3332 = vmatpush.bf16.msrb.mxu0 %v4727_v36  ;;  %v4635_v25 = vor.u32 %v6295_v13, %v4632_v14  ;;  %v6223_v27 = vld [vmem:[%s9759_s1 + $0x19c] sm:$0xf] }
 0x1d6   :  { %v6451_v29 = vld [vmem:[%s9759_s1 + $0x8b4] sm:$0xf0]  ;;  %v4248_v14 = vld [vmem:[%s9759_s1 + $0xf8] sm:$0xf0] }
 0x1d7   :  { %v5494_v32 = vld [vmem:[%s9759_s1 + $0xa98] sm:$0xf]  ;;  %v5239_v45 = vor.u32 %v6451_v29, %v5238_v28  ;;  %3345 = vmatpush.bf16.msrb.mxu1 %v4983_v44  ;;  %v4891_v28 = vor.u32 %v6359_v17, %v4888_v12  ;;  %v4344_v29 = vld [vmem:[%s9759_s1 + $0x1b8] sm:$0xf0]  ;;  %v4603_v44 = vor.u32 %v6287_v30, %v4600_v31 }
 0x1d8   :  { %v6515_v35 = vld [vmem:[%s9759_s1 + $0xab4] sm:$0xf0]  ;;  %v4347_v43 = vor.u32 %v6223_v27, %v4344_v29  ;;  %v6327_v17 = vld [vmem:[%s9759_s1 + $0x4dc] sm:$0xf] }
 0x1d9   :  { %v4694_v47 = vld [vmem:[%s9759_s1 + $0x458] sm:$0xf]  ;;  %v5495_v52 = vor.u32 %v6515_v35, %v5494_v32  ;;  %3358 = vmatpush.bf16.msrb.mxu2 %v5239_v45  ;;  %v6351_v32 = vld [vmem:[%s9759_s1 + $0x59c] sm:$0xf] }
 0x1da   :  { %v6315_v49 = vld [vmem:[%s9759_s1 + $0x474] sm:$0xf0]  ;;  %v4856_v35 = vld [vmem:[%s9759_s1 + $0x5b8] sm:$0xf0] }
 0x1db   :  { %v4950_v50 = vld [vmem:[%s9759_s1 + $0x658] sm:$0xf]  ;;  %v4695_v58 = vor.u32 %v6315_v49, %v4694_v47  ;;  %3371 = vmatpush.bf16.msrb.mxu3 %v5495_v52  ;;  %v6215_v49 = vld [vmem:[%s9759_s1 + $0x15c] sm:$0xf] }
 0x1dc   :  { %v6379_v53 = vld [vmem:[%s9759_s1 + $0x674] sm:$0xf0]  ;;  %v6279_v52 = vld [vmem:[%s9759_s1 + $0x35c] sm:$0xf] }
 0x1dd   :  { %v5206_v54 = vld [vmem:[%s9759_s1 + $0x858] sm:$0xf]  ;;  %v4951_v38 = vor.u32 %v6379_v53, %v4950_v50  ;;  %3333 = vmatpush.bf16.msrb.mxu0 %v4695_v58  ;;  %v4859_v50 = vor.u32 %v6351_v32, %v4856_v35  ;;  %v4568_v53 = vld [vmem:[%s9759_s1 + $0x378] sm:$0xf0]  ;;  %v4315_v58 = vor.u32 %v6215_v49, %v4312_v51 }
 0x1de   :  { %v6443_v55 = vld [vmem:[%s9759_s1 + $0x874] sm:$0xf0]  ;;  %v4760_v12 = vld [vmem:[%s9759_s1 + $0x4f8] sm:$0xf0] }
 0x1df   :  { %v5462_v56 = vld [vmem:[%s9759_s1 + $0xa58] sm:$0xf]  ;;  %v5207_v61 = vor.u32 %v6443_v55, %v5206_v54  ;;  %3346 = vmatpush.bf16.msrb.mxu1 %v4951_v38  ;;  %v6343_v54 = vld [vmem:[%s9759_s1 + $0x55c] sm:$0xf]  ;;  %v4763_v29 = vor.u32 %v6327_v17, %v4760_v12 }
 0x1e0   :  { %v6507_v57 = vld [vmem:[%s9759_s1 + $0xa74] sm:$0xf0]  ;;  %v4824_v55 = vld [vmem:[%s9759_s1 + $0x578] sm:$0xf0] }
 0x1e1   :  { %v4662_v59 = vld [vmem:[%s9759_s1 + $0x418] sm:$0xf]  ;;  %v5463_v4 = vor.u32 %v6507_v57, %v5462_v56  ;;  %3359 = vmatpush.bf16.msrb.mxu2 %v5207_v61  ;;  %v6207_v38 = vld [vmem:[%s9759_s1 + $0x11c] sm:$0xf]  ;;  %v478_v61 = vperm.slane %v8828_v62, 4 }
 0x1e2   :  { %v6307_v60 = vld [vmem:[%s9759_s1 + $0x434] sm:$0xf0]  ;;  %v4792_v62 = vld [vmem:[%s9759_s1 + $0x538] sm:$0xf0] }
 0x1e3   :  { %v4918_v63 = vld [vmem:[%s9759_s1 + $0x618] sm:$0xf]  ;;  %v4663_v11 = vor.u32 %v6307_v60, %v4662_v59  ;;  %3372 = vmatpush.bf16.msrb.mxu3 %v5463_v4  ;;  %v4571_v59 = vor.u32 %v6279_v52, %v4568_v53  ;;  %v6335_v4 = vld [vmem:[%s9759_s1 + $0x51c] sm:$0xf] }
 0x1e4   :  { %v6371_v1 = vld [vmem:[%s9759_s1 + $0x634] sm:$0xf0]  ;;  %v4795_v13 = vor.u32 %v6335_v4, %v4792_v62  ;;  %v6191_v27 = vld [vmem:[%s9759_s1 + $0x9c] sm:$0xf] }
 0x1e5   :  { %v5174_v2 = vld [vmem:[%s9759_s1 + $0x818] sm:$0xf]  ;;  %v4919_v46 = vor.u32 %v6371_v1, %v4918_v63  ;;  %3334 = vmatpush.bf16.msrb.mxu0 %v4663_v11  ;;  %v4827_v63 = vor.u32 %v6343_v54, %v4824_v55  ;;  %v4280_v1 = vld [vmem:[%s9759_s1 + $0x138] sm:$0xf0]  ;;  %v3143_v55 = vpop.f32.mrf.mxu1 }
 0x1e6   :  { %v6435_v5 = vld [vmem:[%s9759_s1 + $0x834] sm:$0xf0]  ;;  %v4216_v30 = vld [vmem:[%s9759_s1 + $0xb8] sm:$0xf0] }
 0x1e7   :  { %v5430_v6 = vld [vmem:[%s9759_s1 + $0xa18] sm:$0xf]  ;;  %v5175_v16 = vor.u32 %v6435_v5, %v5174_v2  ;;  %3347 = vmatpush.bf16.msrb.mxu1 %v4919_v46  ;;  %v6271_v2 = vld [vmem:[%s9759_s1 + $0x31c] sm:$0xf] }
 0x1e8   :  { %v6499_v7 = vld [vmem:[%s9759_s1 + $0xa34] sm:$0xf0]  ;;  %3335 = vmatmul.bf16.vlgmr.msrb.gmra.mxu0 %v7011_v18  ;;  %v4539_v33 = vor.u32 %v6271_v2, %v4536_v3  ;;  %v6263_v46 = vld [vmem:[%s9759_s1 + $0x2dc] sm:$0xf] }
 0x1e9   :  { %v5910_v42 = vld [vmem:[%s9759_s1 + $0xdd8] sm:$0xf]  ;;  %v5431_v21 = vor.u32 %v6499_v7, %v5430_v6  ;;  %3360 = vmatpush.bf16.msrb.mxu2 %v5175_v16  ;;  %v3128_v6 = vpop.f32.mrf.mxu0  ;;  %v4283_v7 = vor.u32 %v6207_v38, %v4280_v1  ;;  %v4504_v16 = vld [vmem:[%s9759_s1 + $0x2f8] sm:$0xf0] }
 0x1ea   :  { %v6619_v9 = vld [vmem:[%s9759_s1 + $0xdf4] sm:$0xf0]  ;;  %3348 = vmatmul.bf16.vlgmr.msrb.gmra.mxu1 %v7015_v20  ;;  %v3129_v11 = vadd.f32 %v3128_v6, %v478_v61  ;;  %v6255_v31 = vld [vmem:[%s9759_s1 + $0x29c] sm:$0xf] }
 0x1eb   :  { %v5911_v23 = vor.u32 %v6619_v9, %v5910_v42  ;;  %v5878_v15 = vld [vmem:[%s9759_s1 + $0xd98] sm:$0xf]  ;;  %3373 = vmatpush.bf16.msrb.mxu3 %v5431_v21  ;;  %3392 = vmatpush.bf16.msra.mxu1 %v4379_v24  ;;  %v4251_v24 = vor.u32 %v6199_v10, %v4248_v14  ;;  %v4472_v32 = vld [vmem:[%s9759_s1 + $0x2b8] sm:$0xf0] }
 0x1ec   :  { %v6611_v26 = vld [vmem:[%s9759_s1 + $0xdb4] sm:$0xf0]  ;;  %3361 = vmatmul.bf16.vlgmr.msrb.gmra.mxu2 %v7175_v40  ;;  %v3142_v21 = vadd.f32 %v3141_v48, %v3129_v11  ;;  %v4475_v51 = vor.u32 %v6255_v31, %v4472_v32  ;;  %v6183_v54 = vld [vmem:[%s9759_s1 + $0x5c] sm:$0xf] }
 0x1ed   :  { %3379 = vmatpush.bf16.msra.mxu0 %v5911_v23  ;;  %v5879_v36 = vor.u32 %v6611_v26, %v5878_v15  ;;  %3405 = vmatpush.bf16.msra.mxu2 %v4635_v25  ;;  %v5846_v45 = vld [vmem:[%s9759_s1 + $0xd58] sm:$0xf]  ;;  %v4507_v25 = vor.u32 %v6263_v46, %v4504_v16  ;;  %v4696_v38 = vld [vmem:[%s9759_s1 + $0x478] sm:$0xf0] }
 0x1ee   :  { %v6603_v47 = vld [vmem:[%s9759_s1 + $0xd74] sm:$0xf0]  ;;  %3374 = vmatmul.bf16.vlgmr.msrb.gmra.mxu3 %v7177_v41  ;;  %v6175_v4 = vld [vmem:[%s9759_s1 + $0x1c] sm:$0xf] }
 0x1ef   :  { %3418 = vmatpush.bf16.msra.mxu3 %v4891_v28  ;;  %v5847_v56 = vor.u32 %v6603_v47, %v5846_v45  ;;  %v5814_v57 = vld [vmem:[%s9759_s1 + $0xd18] sm:$0xf]  ;;  %3393 = vmatpush.bf16.msra.mxu1 %v4347_v43  ;;  %v3154_v28 = vpop.f32.mrf.mxu2  ;;  %v6319_v43 = vld [vmem:[%s9759_s1 + $0x49c] sm:$0xf] }
 0x1f0   :  { %v6595_v60 = vld [vmem:[%s9759_s1 + $0xd34] sm:$0xf0]  ;;  %v3155_v35 = vadd.f32 %v3154_v28, %v3142_v21  ;;  %v4152_v62 = vld [vmem:[%s9759_s1 + $0x38] sm:$0xf0] }
 0x1f1   :  { %3380 = vmatpush.bf16.msra.mxu0 %v5879_v36  ;;  %3406 = vmatpush.bf16.msra.mxu2 %v4603_v44  ;;  %v5815_v5 = vor.u32 %v6595_v60, %v5814_v57  ;;  %v5782_v42 = vld [vmem:[%s9759_s1 + $0xcd8] sm:$0xf]  ;;  %v3167_v36 = vpop.f32.mrf.mxu3  ;;  %v4728_v44 = vld [vmem:[%s9759_s1 + $0x4b8] sm:$0xf0]  ;;  %v3130_v49 = vpop.f32.mrf.mxu0  ;;  %v4155_v12 = vor.u32 %v6175_v4, %v4152_v62 }
 0x1f2   :  { %v6587_v9 = vld [vmem:[%s9759_s1 + $0xcf4] sm:$0xf0]  ;;  %v9280_v47 = vadd.f32 %v3167_v36, %v3155_v35  ;;  %v4184_v57 = vld [vmem:[%s9759_s1 + $0x78] sm:$0xf0] }
 0x1f3   :  { %3419 = vmatpush.bf16.msra.mxu3 %v4859_v50  ;;  %3394 = vmatpush.bf16.msra.mxu1 %v4315_v58  ;;  %v5783_v23 = vor.u32 %v6587_v9, %v5782_v42  ;;  %v5750_v15 = vld [vmem:[%s9759_s1 + $0xc98] sm:$0xf]  ;;  %v4219_v50 = vor.u32 %v6191_v27, %v4216_v30  ;;  %v6247_v58 = vld [vmem:[%s9759_s1 + $0x25c] sm:$0xf]  ;;  %v4187_v2 = vor.u32 %v6183_v54, %v4184_v57 }
 0x1f4   :  { %v6579_v26 = vld [vmem:[%s9759_s1 + $0xcb4] sm:$0xf0]  ;;  %v6311_v60 = vld [vmem:[%s9759_s1 + $0x45c] sm:$0xf] }
 0x1f5   :  { %3381 = vmatpush.bf16.msra.mxu0 %v5847_v56  ;;  %3407 = vmatpush.bf16.msra.mxu2 %v4571_v59  ;;  %v5751_v45 = vor.u32 %v6579_v26, %v5750_v15  ;;  %v5718_v52 = vld [vmem:[%s9759_s1 + $0xc58] sm:$0xf]  ;;  %v4731_v56 = vor.u32 %v6319_v43, %v4728_v44  ;;  %v4440_v59 = vld [vmem:[%s9759_s1 + $0x278] sm:$0xf0] }
 0x1f6   :  { %v6571_v53 = vld [vmem:[%s9759_s1 + $0xc74] sm:$0xf0]  ;;  %v4443_v3 = vor.u32 %v6247_v58, %v4440_v59  ;;  %v6303_v42 = vld [vmem:[%s9759_s1 + $0x41c] sm:$0xf] }
 0x1f7   :  { %3420 = vmatpush.bf16.msra.mxu3 %v4827_v63  ;;  %3395 = vmatpush.bf16.msra.mxu1 %v4283_v7  ;;  %v5719_v61 = vor.u32 %v6571_v53, %v5718_v52  ;;  %v5686_v63 = vld [vmem:[%s9759_s1 + $0xc18] sm:$0xf]  ;;  %v3156_v6 = vpop.f32.mrf.mxu2  ;;  %v4699_v7 = vor.u32 %v6311_v60, %v4696_v38  ;;  %v4664_v9 = vld [vmem:[%s9759_s1 + $0x438] sm:$0xf0] }
 0x1f8   :  { %v6563_v1 = vld [vmem:[%s9759_s1 + $0xc34] sm:$0xf0]  ;;  %v6423_v11 = vld [vmem:[%s9759_s1 + $0x7dc] sm:$0xf] }
 0x1f9   :  { %3382 = vmatpush.bf16.msra.mxu0 %v5815_v5  ;;  %3408 = vmatpush.bf16.msra.mxu2 %v4539_v33  ;;  %v6239_v5 = vld [vmem:[%s9759_s1 + $0x21c] sm:$0xf]  ;;  %v3169_v10 = vpop.f32.mrf.mxu3  ;;  %v5687_v14 = vor.u32 %v6563_v1, %v5686_v63  ;;  %v3180_v6 = vpop.f32.mrf.mxu0 }
 0x1fa   :  { %v4408_v33 = vld [vmem:[%s9759_s1 + $0x238] sm:$0xf0] }
 0x1fb   :  { %3421 = vmatpush.bf16.msra.mxu3 %v4795_v13  ;;  %3396 = vmatpush.bf16.msra.mxu1 %v4251_v24  ;;  %v5144_v48 = vld [vmem:[%s9759_s1 + $0x7f8] sm:$0xf0]  ;;  %v4411_v21 = vor.u32 %v6239_v5, %v4408_v33 }
 0x1fc   :  { %v6487_v13 = vld [vmem:[%s9759_s1 + $0x9dc] sm:$0xf]  ;;  %v5147_v15 = vor.u32 %v6423_v11, %v5144_v48  ;;  %v3181_v48 = vadd.f32 %v3180_v6, %v9280_v47 }
 0x1fd   :  { %3383 = vmatpush.bf16.msra.mxu0 %v5783_v23  ;;  %3409 = vmatpush.bf16.msra.mxu2 %v4507_v25  ;;  %v5400_v46 = vld [vmem:[%s9759_s1 + $0x9f8] sm:$0xf0]  ;;  %v4667_v25 = vor.u32 %v6303_v42, %v4664_v9 }
 0x1fe   :  { %v6551_v16 = vld [vmem:[%s9759_s1 + $0xbdc] sm:$0xf]  ;;  %v5403_v26 = vor.u32 %v6487_v13, %v5400_v46 }
 0x1ff   :  { %3422 = vmatpush.bf16.msra.mxu3 %v4763_v29  ;;  %3397 = vmatpush.bf16.msra.mxu1 %v4219_v50  ;;  %v5656_v17 = vld [vmem:[%s9759_s1 + $0xbf8] sm:$0xf0] }
 0x200   :  { %v6615_v23 = vld [vmem:[%s9759_s1 + $0xddc] sm:$0xf]  ;;  %v5659_v27 = vor.u32 %v6551_v16, %v5656_v17 }
 0x201   :  { %3384 = vmatpush.bf16.msra.mxu0 %v5751_v45  ;;  %3410 = vmatpush.bf16.msra.mxu2 %v4475_v51  ;;  %v5912_v24 = vld [vmem:[%s9759_s1 + $0xdf8] sm:$0xf0] }
 0x202   :  { %v6415_v28 = vld [vmem:[%s9759_s1 + $0x79c] sm:$0xf]  ;;  %v5915_v31 = vor.u32 %v6615_v23, %v5912_v24 }
 0x203   :  { %3423 = vmatpush.bf16.msra.mxu3 %v4731_v56  ;;  %3398 = vmatpush.bf16.msra.mxu1 %v4187_v2  ;;  %v5112_v29 = vld [vmem:[%s9759_s1 + $0x7b8] sm:$0xf0] }
 0x204   :  { %v6479_v30 = vld [vmem:[%s9759_s1 + $0x99c] sm:$0xf]  ;;  %v5115_v45 = vor.u32 %v6415_v28, %v5112_v29 }
 0x205   :  { %3385 = vmatpush.bf16.msra.mxu0 %v5719_v61  ;;  %3411 = vmatpush.bf16.msra.mxu2 %v4443_v3  ;;  %v5368_v32 = vld [vmem:[%s9759_s1 + $0x9b8] sm:$0xf0] }
 0x206   :  { %v6543_v35 = vld [vmem:[%s9759_s1 + $0xb9c] sm:$0xf]  ;;  %v5371_v49 = vor.u32 %v6479_v30, %v5368_v32 }
 0x207   :  { %3424 = vmatpush.bf16.msra.mxu3 %v4699_v7  ;;  %v5624_v36 = vld [vmem:[%s9759_s1 + $0xbb8] sm:$0xf0]  ;;  %3399 = vmatpush.bf16.msra.mxu1 %v4155_v12  ;;  %v3193_v7 = vpop.f32.mrf.mxu1 }
 0x208   :  { %v6607_v43 = vld [vmem:[%s9759_s1 + $0xd9c] sm:$0xf]  ;;  %v5627_v50 = vor.u32 %v6543_v35, %v5624_v36  ;;  %v3194_v12 = vadd.f32 %v3193_v7, %v3181_v48 }
 0x209   :  { %3386 = vmatpush.bf16.msra.mxu0 %v5687_v14  ;;  %3412 = vmatpush.bf16.msra.mxu2 %v4411_v21  ;;  %v5880_v44 = vld [vmem:[%s9759_s1 + $0xdb8] sm:$0xf0] }
 0x20a   :  { %v6407_v51 = vld [vmem:[%s9759_s1 + $0x75c] sm:$0xf]  ;;  %v5883_v54 = vor.u32 %v6607_v43, %v5880_v44  ;;  %3400 = vmatmul.bf16.vlgmr.msra.gmra.mxu1 %v7013_v19  ;;  %v9481_v43 = vpop.f32.mrf.mxu3 }
 0x20b   :  { %3425 = vmatpush.bf16.msra.mxu3 %v4667_v25  ;;  %3444 = vmatpush.bf16.msrb.mxu1 %v5403_v26  ;;  %v5080_v52 = vld [vmem:[%s9759_s1 + $0x778] sm:$0xf0] }
 0x20c   :  { %v6471_v53 = vld [vmem:[%s9759_s1 + $0x95c] sm:$0xf]  ;;  %3387 = vmatmul.bf16.vlgmr.msra.gmra.mxu0 %v7167_v37  ;;  %3413 = vmatmul.bf16.vlgmr.msra.gmra.mxu2 %v7017_v22  ;;  %v5083_v60 = vor.u32 %v6407_v51, %v5080_v52 }
 0x20d   :  { %3431 = vmatpush.bf16.msrb.mxu0 %v5147_v15  ;;  %3457 = vmatpush.bf16.msrb.mxu2 %v5659_v27  ;;  %v5336_v55 = vld [vmem:[%s9759_s1 + $0x978] sm:$0xf0]  ;;  %v3206_v27 = vpop.f32.mrf.mxu2 }
 0x20e   :  { %v6535_v56 = vld [vmem:[%s9759_s1 + $0xb5c] sm:$0xf]  ;;  %3426 = vmatmul.bf16.vlgmr.msra.gmra.mxu3 %v7011_v18  ;;  %v5339_v38 = vor.u32 %v6471_v53, %v5336_v55  ;;  %v9473_v32 = vadd.f32 %v3206_v27, %v3194_v12  ;;  %v6625_v12 = vld [vmem:[%s9762_s3 + $0x28] sm:$0xff] }
 0x20f   :  { %3470 = vmatpush.bf16.msrb.mxu3 %v5915_v31  ;;  %v5592_v57 = vld [vmem:[%s9759_s1 + $0xb78] sm:$0xf0]  ;;  %3445 = vmatpush.bf16.msrb.mxu1 %v5371_v49  ;;  %v3195_v49 = vpop.f32.mrf.mxu1 }
 0x210   :  { %v6599_v58 = vld [vmem:[%s9759_s1 + $0xd5c] sm:$0xf]  ;;  %v5595_v61 = vor.u32 %v6535_v56, %v5592_v57 }
 0x211   :  { %v5848_v59 = vld [vmem:[%s9759_s1 + $0xd78] sm:$0xf0]  ;;  %3432 = vmatpush.bf16.msrb.mxu0 %v5115_v45  ;;  %3458 = vmatpush.bf16.msrb.mxu2 %v5627_v50  ;;  %v3182_v45 = vpop.f32.mrf.mxu0 }
 0x212   :  { %v6399_v22 = vld [vmem:[%s9759_s1 + $0x71c] sm:$0xf]  ;;  %v5851_v1 = vor.u32 %v6599_v58, %v5848_v59  ;;  %v3221_v7 = vpop.f32.mrf.mxu3  ;;  %v6638_v45 = vld [vmem:[%s9762_s3 + $0x90] sm:$0xff] }
 0x213   :  { %v5048_v63 = vld [vmem:[%s9759_s1 + $0x738] sm:$0xf0]  ;;  %3471 = vmatpush.bf16.msrb.mxu3 %v5883_v54  ;;  %3446 = vmatpush.bf16.msrb.mxu1 %v5339_v38  ;;  %v6665_v7 = vld [vmem:[%s9762_s3 + $0x168] sm:$0xff] }
 0x214   :  { %v6463_v18 = vld [vmem:[%s9759_s1 + $0x91c] sm:$0xf]  ;;  %v5051_v5 = vor.u32 %v6399_v22, %v5048_v63 }
 0x215   :  { %v5304_v19 = vld [vmem:[%s9759_s1 + $0x938] sm:$0xf0]  ;;  %3433 = vmatpush.bf16.msrb.mxu0 %v5083_v60  ;;  %3459 = vmatpush.bf16.msrb.mxu2 %v5595_v61 }
 0x216   :  { %v6527_v2 = vld [vmem:[%s9759_s1 + $0xb1c] sm:$0xf]  ;;  %v5307_v33 = vor.u32 %v6463_v18, %v5304_v19  ;;  %v3208_v19 = vpop.f32.mrf.mxu2 }
 0x217   :  { %v5560_v3 = vld [vmem:[%s9759_s1 + $0xb38] sm:$0xf0]  ;;  %3472 = vmatpush.bf16.msrb.mxu3 %v5851_v1 }
 0x218   :  { %v6591_v4 = vld [vmem:[%s9759_s1 + $0xd1c] sm:$0xf]  ;;  %v5563_v42 = vor.u32 %v6527_v2, %v5560_v3  ;;  %3447 = vmatpush.bf16.msrb.mxu1 %v5307_v33 }
 0x219   :  { %v5816_v62 = vld [vmem:[%s9759_s1 + $0xd38] sm:$0xf0]  ;;  %3434 = vmatpush.bf16.msrb.mxu0 %v5051_v5 }
 0x21a   :  { %v6391_v9 = vld [vmem:[%s9759_s1 + $0x6dc] sm:$0xf]  ;;  %v5819_v13 = vor.u32 %v6591_v4, %v5816_v62  ;;  %3460 = vmatpush.bf16.msrb.mxu2 %v5563_v42 }
 0x21b   :  { %v5016_v10 = vld [vmem:[%s9759_s1 + $0x6f8] sm:$0xf0] }
 0x21c   :  { %v6455_v11 = vld [vmem:[%s9759_s1 + $0x8dc] sm:$0xf]  ;;  %v5019_v21 = vor.u32 %v6391_v9, %v5016_v10  ;;  %3473 = vmatpush.bf16.msrb.mxu3 %v5819_v13 }
 0x21d   :  { %v5272_v14 = vld [vmem:[%s9759_s1 + $0x8f8] sm:$0xf0] }
 0x21e   :  { %v6519_v46 = vld [vmem:[%s9759_s1 + $0xadc] sm:$0xf]  ;;  %v5275_v23 = vor.u32 %v6455_v11, %v5272_v14  ;;  %3435 = vmatpush.bf16.msrb.mxu0 %v5019_v21  ;;  %v6641_v21 = vld [vmem:[%s9762_s3 + $0xa8] sm:$0xff] }
 0x21f   :  { %v5528_v16 = vld [vmem:[%s9759_s1 + $0xaf8] sm:$0xf0] }
 0x220   :  { %v6583_v17 = vld [vmem:[%s9759_s1 + $0xcdc] sm:$0xf]  ;;  %v5531_v24 = vor.u32 %v6519_v46, %v5528_v16  ;;  %3448 = vmatpush.bf16.msrb.mxu1 %v5275_v23  ;;  %v6626_v46 = vld [vmem:[%s9762_s3 + $0x30] sm:$0xff]  ;;  %v6632_v23 = vld [vmem:[%s9762_s3 + $0x60] sm:$0xff] }
 0x221   :  { %v5784_v47 = vld [vmem:[%s9759_s1 + $0xcf8] sm:$0xf0]  ;;  %v6634_v16 = vld [vmem:[%s9762_s3 + $0x70] sm:$0xff] }
 0x222   :  { %v6383_v25 = vld [vmem:[%s9759_s1 + $0x69c] sm:$0xf]  ;;  %v5787_v28 = vor.u32 %v6583_v17, %v5784_v47  ;;  %3461 = vmatpush.bf16.msrb.mxu2 %v5531_v24  ;;  %v6642_v17 = vld [vmem:[%s9762_s3 + $0xb0] sm:$0xff]  ;;  %v6640_v24 = vld [vmem:[%s9762_s3 + $0xa0] sm:$0xff] }
 0x223   :  { %v4984_v15 = vld [vmem:[%s9759_s1 + $0x6b8] sm:$0xf0]  ;;  %v6650_v47 = vld [vmem:[%s9762_s3 + $0xf0] sm:$0xff] }
 0x224   :  { %v6447_v26 = vld [vmem:[%s9759_s1 + $0x89c] sm:$0xf]  ;;  %v4987_v44 = vor.u32 %v6383_v25, %v4984_v15  ;;  %3474 = vmatpush.bf16.msrb.mxu3 %v5787_v28  ;;  %v9582_v25 = vpop.f32.mrf.mxu1  ;;  %v6648_v15 = vld [vmem:[%s9762_s3 + $0xe0] sm:$0xff] }
 0x225   :  { %v5240_v29 = vld [vmem:[%s9759_s1 + $0x8b8] sm:$0xf0] }
 0x226   :  { %v6511_v30 = vld [vmem:[%s9759_s1 + $0xa9c] sm:$0xf]  ;;  %v5243_v50 = vor.u32 %v6447_v26, %v5240_v29  ;;  %3436 = vmatpush.bf16.msrb.mxu0 %v4987_v44  ;;  %v9596_v29 = vpop.f32.mrf.mxu2  ;;  %v6630_v44 = vld [vmem:[%s9762_s3 + $0x50] sm:$0xff] }
 0x227   :  { %v5496_v31 = vld [vmem:[%s9759_s1 + $0xab8] sm:$0xf0] }
 0x228   :  { %v6575_v35 = vld [vmem:[%s9759_s1 + $0xc9c] sm:$0xf]  ;;  %v5499_v51 = vor.u32 %v6511_v30, %v5496_v31  ;;  %3449 = vmatpush.bf16.msrb.mxu1 %v5243_v50  ;;  %v9601_v31 = vpop.f32.mrf.mxu3  ;;  %v6646_v50 = vld [vmem:[%s9762_s3 + $0xd0] sm:$0xff] }
 0x229   :  { %v5752_v36 = vld [vmem:[%s9759_s1 + $0xcb8] sm:$0xf0] }
 0x22a   :  { %v6375_v52 = vld [vmem:[%s9759_s1 + $0x65c] sm:$0xf]  ;;  %v5755_v55 = vor.u32 %v6575_v35, %v5752_v36  ;;  %3462 = vmatpush.bf16.msrb.mxu2 %v5499_v51  ;;  %v6622_v35 = vld [vmem:[%s9762_s3 + $0x10] sm:$0xff]  ;;  %v6621_v51 = vld [vmem:[%s9762_s3 + $0x8] sm:$0xff] }
 0x22b   :  { %v4952_v53 = vld [vmem:[%s9759_s1 + $0x678] sm:$0xf0] }
 0x22c   :  { %v6439_v54 = vld [vmem:[%s9759_s1 + $0x85c] sm:$0xf]  ;;  %v4955_v38 = vor.u32 %v6375_v52, %v4952_v53  ;;  %3475 = vmatpush.bf16.msrb.mxu3 %v5755_v55  ;;  %v3247_v49 = vpop.f32.mrf.mxu1  ;;  %v6629_v52 = vld [vmem:[%s9762_s3 + $0x48] sm:$0xff] }
 0x22d   :  { %v5208_v56 = vld [vmem:[%s9759_s1 + $0x878] sm:$0xf0]  ;;  %v6637_v53 = vld [vmem:[%s9762_s3 + $0x88] sm:$0xff] }
 0x22e   :  { %v6503_v57 = vld [vmem:[%s9759_s1 + $0xa5c] sm:$0xf]  ;;  %v5211_v61 = vor.u32 %v6439_v54, %v5208_v56  ;;  %3437 = vmatpush.bf16.msrb.mxu0 %v4955_v38  ;;  %v3260_v54 = vpop.f32.mrf.mxu2  ;;  %v6645_v55 = vld [vmem:[%s9762_s3 + $0xc8] sm:$0xff]  ;;  %v3484_v38 = vmax.f32 %v8434_v8, 0.0  ;;  %v3486_v8 = vmax.f32 %v9081_v39, 0.0 }
 0x22f   :  { %v5464_v58 = vld [vmem:[%s9759_s1 + $0xa78] sm:$0xf0]  ;;  %v6669_v49 = vld [vmem:[%s9762_s3 + $0x188] sm:$0xff] }
 0x230   :  { %v6567_v59 = vld [vmem:[%s9759_s1 + $0xc5c] sm:$0xf]  ;;  %v5467_v22 = vor.u32 %v6503_v57, %v5464_v58  ;;  %3450 = vmatpush.bf16.msrb.mxu1 %v5211_v61  ;;  %v3273_v56 = vpop.f32.mrf.mxu3  ;;  %v6620_v57 = vld [vmem:[%s9762_s3] sm:$0xff]  ;;  %v3483_v58 = vmax.f32 %v8066_v34, 0.0  ;;  %v3485_v61 = vmax.f32 %v8832_v0, 0.0  ;;  %v3492_v19 = vpack.c.bf16 %v3484_v38, %v3484_v38 }
 0x231   :  { %v5720_v60 = vld [vmem:[%s9759_s1 + $0xc78] sm:$0xf0] }
 0x232   :  { %v6367_v63 = vld [vmem:[%s9759_s1 + $0x61c] sm:$0xf]  ;;  %v5723_v2 = vor.u32 %v6567_v59, %v5720_v60  ;;  %3463 = vmatpush.bf16.msrb.mxu2 %v5467_v22  ;;  %v6628_v59 = vld [vmem:[%s9762_s3 + $0x40] sm:$0xff] }
 0x233   :  { %v4920_v18 = vld [vmem:[%s9759_s1 + $0x638] sm:$0xf0]  ;;  %v6636_v60 = vld [vmem:[%s9762_s3 + $0x80] sm:$0xff] }
 0x234   :  { %v6431_v1 = vld [vmem:[%s9759_s1 + $0x81c] sm:$0xf]  ;;  %v4923_v33 = vor.u32 %v6367_v63, %v4920_v18  ;;  %3476 = vmatpush.bf16.msrb.mxu3 %v5723_v2  ;;  %v9642_v22 = vld [vmem:[%s9761_s2] sm:$0xff]  ;;  %v3493_v2 = vpack.c.bf16 %v3485_v61, %v3485_v61  ;;  %v6681_v61 = vld [vmem:[%s9762_s3 + $0x1e8] sm:$0xff] }
 0x235   :  { %v5176_v3 = vld [vmem:[%s9759_s1 + $0x838] sm:$0xf0]  ;;  %v479_v34 = vperm.slane %v9642_v22, 5  ;;  %v6644_v63 = vld [vmem:[%s9762_s3 + $0xc0] sm:$0xff] }
 0x236   :  { %v6495_v4 = vld [vmem:[%s9759_s1 + $0xa1c] sm:$0xf]  ;;  %v5179_v42 = vor.u32 %v6431_v1, %v5176_v3  ;;  %3438 = vmatpush.bf16.msrb.mxu0 %v4923_v33  ;;  %v3491_v1 = vpack.c.bf16 %v3483_v58, %v3483_v58 }
 0x237   :  { %v5432_v62 = vld [vmem:[%s9759_s1 + $0xa38] sm:$0xf0]  ;;  %v3220_v3 = vadd.f32 %v9481_v43, %v479_v34 }
 0x238   :  { %v6559_v5 = vld [vmem:[%s9759_s1 + $0xc1c] sm:$0xf]  ;;  %v5435_v9 = vor.u32 %v6495_v4, %v5432_v62  ;;  %3451 = vmatpush.bf16.msrb.mxu1 %v5179_v42  ;;  %v6658_v4 = vld [vmem:[%s9762_s3 + $0x130] sm:$0xff]  ;;  %v3494_v62 = vpack.c.bf16 %v3486_v8, %v3486_v8 }
 0x239   :  { %v5688_v6 = vld [vmem:[%s9759_s1 + $0xc38] sm:$0xf0]  ;;  %3439 = vmatmul.bf16.vlgmr.msrb.gmra.mxu0 %v7015_v20  ;;  %v6633_v20 = vld [vmem:[%s9762_s3 + $0x68] sm:$0xff]  ;;  %v6674_v42 = vld [vmem:[%s9762_s3 + $0x1b0] sm:$0xff] }
 0x23a   :  { %v5691_v10 = vor.u32 %v6559_v5, %v5688_v6  ;;  %v6627_v11 = vld [vmem:[%s9762_s3 + $0x38] sm:$0xff]  ;;  %3464 = vmatpush.bf16.msrb.mxu2 %v5435_v9  ;;  %v6666_v5 = vld [vmem:[%s9762_s3 + $0x170] sm:$0xff]  ;;  %v6657_v6 = vld [vmem:[%s9762_s3 + $0x128] sm:$0xff] }
 0x23b   :  { %v6635_v48 = vld [vmem:[%s9762_s3 + $0x78] sm:$0xff]  ;;  %4015 = vmatpush.bf16.msra.mxu0 %v6627_v11  ;;  %3452 = vmatmul.bf16.vlgmr.msrb.gmra.mxu1 %v7175_v40  ;;  %v6624_v40 = vld [vmem:[%s9762_s3 + $0x20] sm:$0xff] }
 0x23c   :  { %v6643_v13 = vld [vmem:[%s9762_s3 + $0xb8] sm:$0xff]  ;;  %3477 = vmatpush.bf16.msrb.mxu3 %v5691_v10  ;;  %4028 = vmatpush.bf16.msra.mxu1 %v6635_v48  ;;  %v6656_v10 = vld [vmem:[%s9762_s3 + $0x120] sm:$0xff] }
 0x23d   :  { %v6651_v14 = vld [vmem:[%s9762_s3 + $0xf8] sm:$0xff]  ;;  %3465 = vmatmul.bf16.vlgmr.msrb.gmra.mxu2 %v7177_v41  ;;  %v9574_v41 = vpop.f32.mrf.mxu0  ;;  %v3297_v11 = vpop.f32.mrf.mxu1  ;;  %v6664_v48 = vld [vmem:[%s9762_s3 + $0x160] sm:$0xff] }
 0x23e   :  { %4041 = vmatpush.bf16.msra.mxu2 %v6643_v13  ;;  %v6623_v26 = vld [vmem:[%s9762_s3 + $0x18] sm:$0xff]  ;;  %v3233_v43 = vadd.f32 %v9574_v41, %v3220_v3  ;;  %v6662_v41 = vld [vmem:[%s9762_s3 + $0x150] sm:$0xff] }
 0x23f   :  { %3478 = vmatmul.bf16.vlgmr.msrb.gmra.mxu3 %v7167_v37  ;;  %4016 = vmatpush.bf16.msra.mxu0 %v6626_v46  ;;  %v6649_v37 = vld [vmem:[%s9762_s3 + $0xe8] sm:$0xff]  ;;  %v6631_v27 = vld [vmem:[%s9762_s3 + $0x58] sm:$0xff] }
 0x240   :  { %4054 = vmatpush.bf16.msra.mxu3 %v6651_v14  ;;  %4029 = vmatpush.bf16.msra.mxu1 %v6634_v16  ;;  %v6639_v28 = vld [vmem:[%s9762_s3 + $0x98] sm:$0xff]  ;;  %v3246_v9 = vadd.f32 %v9582_v25, %v3233_v43  ;;  %v6673_v46 = vld [vmem:[%s9762_s3 + $0x1a8] sm:$0xff] }
 0x241   :  { %v6647_v30 = vld [vmem:[%s9762_s3 + $0xd8] sm:$0xff]  ;;  %v6653_v25 = vld [vmem:[%s9762_s3 + $0x108] sm:$0xff] }
 0x242   :  { %4042 = vmatpush.bf16.msra.mxu2 %v6642_v17  ;;  %v6659_v18 = vld [vmem:[%s9762_s3 + $0x138] sm:$0xff]  ;;  %v3259_v13 = vadd.f32 %v9596_v29, %v3246_v9  ;;  %v3310_v17 = vpop.f32.mrf.mxu2  ;;  %v6677_v43 = vld [vmem:[%s9762_s3 + $0x1c8] sm:$0xff]  ;;  %v6676_v9 = vld [vmem:[%s9762_s3 + $0x1c0] sm:$0xff] }
 0x243   :  { %4017 = vmatpush.bf16.msra.mxu0 %v6625_v12  ;;  %v6667_v0 = vld [vmem:[%s9762_s3 + $0x178] sm:$0xff] }
 0x244   :  { %4055 = vmatpush.bf16.msra.mxu3 %v6650_v47  ;;  %4030 = vmatpush.bf16.msra.mxu1 %v6633_v20  ;;  %v6675_v39 = vld [vmem:[%s9762_s3 + $0x1b8] sm:$0xff]  ;;  %v6672_v47 = vld [vmem:[%s9762_s3 + $0x1a0] sm:$0xff] }
 0x245   :  { %v3234_v36 = vpop.f32.mrf.mxu0  ;;  %v6655_v14 = vld [vmem:[%s9762_s3 + $0x118] sm:$0xff]  ;;  %v3323_v12 = vpop.f32.mrf.mxu3 }
 0x246   :  { %4043 = vmatpush.bf16.msra.mxu2 %v6641_v21  ;;  %v6663_v16 = vld [vmem:[%s9762_s3 + $0x158] sm:$0xff]  ;;  %v3272_v21 = vadd.f32 %v9601_v31, %v3259_v13  ;;  %v3487_v31 = vmax.f32 %v9473_v32, 0.0 }
 0x247   :  { %4018 = vmatpush.bf16.msra.mxu0 %v6624_v40  ;;  %v3299_v40 = vpop.f32.mrf.mxu1 }
 0x248   :  { %4056 = vmatpush.bf16.msra.mxu3 %v6649_v37  ;;  %4031 = vmatpush.bf16.msra.mxu1 %v6632_v23  ;;  %v6654_v37 = vld [vmem:[%s9762_s3 + $0x110] sm:$0xff] }
 0x24a   :  { %4044 = vmatpush.bf16.msra.mxu2 %v6640_v24  ;;  %v6671_v24 = vld [vmem:[%s9762_s3 + $0x198] sm:$0xff] }
 0x24b   :  { %4019 = vmatpush.bf16.msra.mxu0 %v6623_v26 }
 0x24c   :  { %4057 = vmatpush.bf16.msra.mxu3 %v6648_v15  ;;  %4032 = vmatpush.bf16.msra.mxu1 %v6631_v27  ;;  %v6661_v15 = vld [vmem:[%s9762_s3 + $0x148] sm:$0xff]  ;;  %v3312_v27 = vpop.f32.mrf.mxu2 }
 0x24d   :  { %v3284_v33 = vpop.f32.mrf.mxu0  ;;  %v3325_v29 = vpop.f32.mrf.mxu3 }
 0x24e   :  { %4045 = vmatpush.bf16.msra.mxu2 %v6639_v28  ;;  %v3285_v23 = vadd.f32 %v3284_v33, %v3272_v21  ;;  %v6670_v28 = vld [vmem:[%s9762_s3 + $0x190] sm:$0xff] }
 0x24f   :  { %4020 = vmatpush.bf16.msra.mxu0 %v6622_v35  ;;  %v6660_v35 = vld [vmem:[%s9762_s3 + $0x140] sm:$0xff] }
 0x250   :  { %4058 = vmatpush.bf16.msra.mxu3 %v6647_v30  ;;  %4033 = vmatpush.bf16.msra.mxu1 %v6630_v44  ;;  %v3298_v26 = vadd.f32 %v3297_v11, %v3285_v23  ;;  %v6652_v30 = vld [vmem:[%s9762_s3 + $0x100] sm:$0xff]  ;;  %v3495_v44 = vpack.c.bf16 %v3487_v31, %v3487_v31 }
 0x252   :  { %4046 = vmatpush.bf16.msra.mxu2 %v6638_v45  ;;  %v3488_v36 = vmax.f32 %v3298_v26, 0.0 }
 0x253   :  { %4021 = vmatpush.bf16.msra.mxu0 %v6621_v51  ;;  %v6668_v51 = vld [vmem:[%s9762_s3 + $0x180] sm:$0xff] }
 0x254   :  { %4059 = vmatpush.bf16.msra.mxu3 %v6646_v50  ;;  %4034 = vmatpush.bf16.msra.mxu1 %v6629_v52  ;;  %v3496_v45 = vpack.c.bf16 %v3488_v36, %v3488_v36  ;;  %v480_v52 = vperm.slane %v9642_v22, 6 }
 0x255   :  { %v3286_v20 = vpop.f32.mrf.mxu0 }
 0x256   :  { %4047 = vmatpush.bf16.msra.mxu2 %v6637_v53  ;;  %v3311_v56 = vadd.f32 %v3310_v17, %v480_v52 }
 0x257   :  { %4022 = vmatpush.bf16.msra.mxu0 %v6620_v57 }
 0x258   :  { %4060 = vmatpush.bf16.msra.mxu3 %v6645_v55  ;;  %4035 = vmatpush.bf16.msra.mxu1 %v6628_v59  ;;  %v6683_v55 = vld [vmem:[%s9762_s3 + $0x1f8] sm:$0xff]  ;;  %v6682_v59 = vld [vmem:[%s9762_s3 + $0x1f0] sm:$0xff] }
 0x25a   :  { %4048 = vmatpush.bf16.msra.mxu2 %v6636_v60  ;;  %4023 = vmatmul.bf16.vlgmr.msra.gmra.mxu0 %v3491_v1  ;;  %v3324_v60 = vadd.f32 %v3323_v12, %v3311_v56  ;;  %v6679_v1 = vld [vmem:[%s9762_s3 + $0x1d8] sm:$0xff] }
 0x25b   :  { %4067 = vmatpush.bf16.msrb.mxu0 %v6659_v18  ;;  %4036 = vmatmul.bf16.vlgmr.msra.gmra.mxu1 %v3492_v19  ;;  %v6680_v18 = vld [vmem:[%s9762_s3 + $0x1e0] sm:$0xff] }
 0x25c   :  { %4061 = vmatpush.bf16.msra.mxu3 %v6644_v63  ;;  %4080 = vmatpush.bf16.msrb.mxu1 %v6667_v0 }
 0x25d   :  { %4049 = vmatmul.bf16.vlgmr.msra.gmra.mxu2 %v3493_v2 }
 0x25e   :  { %4093 = vmatpush.bf16.msrb.mxu2 %v6675_v39 }
 0x25f   :  { %4062 = vmatmul.bf16.vlgmr.msra.gmra.mxu3 %v3494_v62  ;;  %4068 = vmatpush.bf16.msrb.mxu0 %v6658_v4  ;;  %v6678_v4 = vld [vmem:[%s9762_s3 + $0x1d0] sm:$0xff] }
 0x260   :  { %4081 = vmatpush.bf16.msrb.mxu1 %v6666_v5  ;;  %4106 = vmatpush.bf16.msrb.mxu3 %v6683_v55 }
 0x262   :  { %4094 = vmatpush.bf16.msrb.mxu2 %v6674_v42 }
 0x263   :  { %4069 = vmatpush.bf16.msrb.mxu0 %v6657_v6 }
 0x264   :  { %4082 = vmatpush.bf16.msrb.mxu1 %v6665_v7  ;;  %4107 = vmatpush.bf16.msrb.mxu3 %v6682_v59 }
 0x265   :  { %v3336_v50 = vpop.f32.mrf.mxu0 }
 0x266   :  { %4095 = vmatpush.bf16.msrb.mxu2 %v6673_v46  ;;  %v3337_v63 = vadd.f32 %v3336_v50, %v3324_v60 }
 0x267   :  { %4070 = vmatpush.bf16.msrb.mxu0 %v6656_v10  ;;  %v3349_v32 = vpop.f32.mrf.mxu1 }
 0x268   :  { %4083 = vmatpush.bf16.msrb.mxu1 %v6664_v48  ;;  %4108 = vmatpush.bf16.msrb.mxu3 %v6681_v61  ;;  %v3350_v8 = vadd.f32 %v3349_v32, %v3337_v63  ;;  %v481_v48 = vperm.slane %v9642_v22, 7  ;;  %v6684_v22 = vld [vmem:[%s9763_s4] ss:$0 sm:$0xff] }
 0x26a   :  { %4096 = vmatpush.bf16.msrb.mxu2 %v6672_v47 }
 0x26b   :  { %4071 = vmatpush.bf16.msrb.mxu0 %v6655_v14 }
 0x26c   :  { %4084 = vmatpush.bf16.msrb.mxu1 %v6663_v16  ;;  %4109 = vmatpush.bf16.msrb.mxu3 %v6680_v18 }
 0x26d   :  { %v3338_v57 = vpop.f32.mrf.mxu0 }
 0x26e   :  { %4097 = vmatpush.bf16.msrb.mxu2 %v6671_v24 }
 0x26f   :  { %4072 = vmatpush.bf16.msrb.mxu0 %v6654_v37  ;;  %v3362_v53 = vpop.f32.mrf.mxu2  ;;  %v3351_v58 = vpop.f32.mrf.mxu1 }
 0x270   :  { %4085 = vmatpush.bf16.msrb.mxu1 %v6662_v41  ;;  %v3363_v0 = vadd.f32 %v3362_v53, %v3350_v8  ;;  %4110 = vmatpush.bf16.msrb.mxu3 %v6679_v1 }
 0x271   :  { %v3375_v54 = vpop.f32.mrf.mxu3 }
 0x272   :  { %4098 = vmatpush.bf16.msrb.mxu2 %v6670_v28  ;;  %v3376_v19 = vadd.f32 %v3375_v54, %v3363_v0 }
 0x273   :  { %4073 = vmatpush.bf16.msrb.mxu0 %v6653_v25 }
 0x274   :  { %4086 = vmatpush.bf16.msrb.mxu1 %v6661_v15  ;;  %4111 = vmatpush.bf16.msrb.mxu3 %v6678_v4 }
 0x276   :  { %4099 = vmatpush.bf16.msrb.mxu2 %v6669_v49 }
 0x277   :  { %4074 = vmatpush.bf16.msrb.mxu0 %v6652_v30  ;;  %v3364_v38 = vpop.f32.mrf.mxu2 }
 0x278   :  { %4087 = vmatpush.bf16.msrb.mxu1 %v6660_v35  ;;  %4112 = vmatpush.bf16.msrb.mxu3 %v6677_v43 }
 0x279   :  { %v3377_v34 = vpop.f32.mrf.mxu3 }
 0x27a   :  { %4075 = vmatmul.bf16.vlgmr.msrb.gmra.mxu0 %v3495_v44  ;;  %4100 = vmatpush.bf16.msrb.mxu2 %v6668_v51 }
 0x27b   :  { %4088 = vmatmul.bf16.vlgmr.msrb.gmra.mxu1 %v3496_v45 }
 0x27c   :  { %4113 = vmatpush.bf16.msrb.mxu3 %v6676_v9 }
 0x287   :  { %v3401_v39 = vpop.f32.mrf.mxu1 }
 0x288   :  { %v3402_v13 = vadd.f32 %v3401_v39, %v481_v48 }
 0x289   :  { %v3388_v2 = vpop.f32.mrf.mxu0 }
 0x28a   :  { %v3389_v3 = vadd.f32 %v3388_v2, %v3376_v19 }
 0x28c   :  { %v3489_v62 = vmax.f32 %v3389_v3, 0.0 }
 0x28e   :  { %v3497_v5 = vpack.c.bf16 %v3489_v62, %v3489_v62 }
 0x28f   :  { %v3414_v6 = vpop.f32.mrf.mxu2  ;;  %v3403_v42 = vpop.f32.mrf.mxu1 }
 0x290   :  { %4101 = vmatmul.bf16.vlgmr.msrb.gmra.mxu2 %v3497_v5  ;;  %v3415_v14 = vadd.f32 %v3414_v6, %v3402_v13 }
 0x291   :  { %v3427_v7 = vpop.f32.mrf.mxu3  ;;  %v3390_v33 = vpop.f32.mrf.mxu0 }
 0x292   :  { %v3428_v46 = vadd.f32 %v3427_v7, %v3415_v14 }
 0x297   :  { %v3416_v10 = vpop.f32.mrf.mxu2 }
 0x299   :  { %v3429_v11 = vpop.f32.mrf.mxu3 }
 0x2b6   :  { %v3440_v16 = vpop.f32.mrf.mxu0 }
 0x2b7   :  { %v3441_v47 = vadd.f32 %v3440_v16, %v3428_v46 }
 0x2b8   :  { %v3453_v17 = vpop.f32.mrf.mxu1 }
 0x2b9   :  { %v3454_v12 = vadd.f32 %v3453_v17, %v3441_v47 }
 0x2be   :  { %v3442_v40 = vpop.f32.mrf.mxu0 }
 0x2c0   :  { %v3466_v20 = vpop.f32.mrf.mxu2  ;;  %v3455_v41 = vpop.f32.mrf.mxu1 }
 0x2c1   :  { %v3467_v21 = vadd.f32 %v3466_v20, %v3454_v12 }
 0x2c2   :  { %v3479_v37 = vpop.f32.mrf.mxu3 }
 0x2c3   :  { %v3480_v23 = vadd.f32 %v3479_v37, %v3467_v21 }
 0x2c5   :  { %v3490_v24 = vmax.f32 %v3480_v23, 0.0 }
 0x2c7   :  { %v3498_v25 = vpack.c.bf16 %v3490_v24, %v3490_v24 }
 0x2c8   :  { %v3468_v15 = vpop.f32.mrf.mxu2 }
 0x2c9   :  { %4114 = vmatmul.bf16.vlgmr.msrb.gmra.mxu3 %v3498_v25 }
 0x2ca   :  { %v3481_v26 = vpop.f32.mrf.mxu3 }
 0x2d7   :  { %v4024_v27 = vpop.f32.mrf.mxu0 }
 0x2d8   :  { %v4025_v28 = vadd.f32 %v6684_v22, %v4024_v27  ;;  %v4037_v29 = vpop.f32.mrf.mxu1 }
 0x2da   :  { %v4038_v30 = vadd.f32 %v4037_v29, %v4025_v28 }
 0x2df   :  { %v4026_v44 = vpop.f32.mrf.mxu0 }
 0x2e0   :  { %v4050_v31 = vpop.f32.mrf.mxu2  ;;  %v4039_v45 = vpop.f32.mrf.mxu1 }
 0x2e1   :  { %v4051_v35 = vadd.f32 %v4050_v31, %v4038_v30 }
 0x2e2   :  { %v4063_v36 = vpop.f32.mrf.mxu3 }
 0x2e3   :  { %v4064_v49 = vadd.f32 %v4063_v36, %v4051_v35 }
 0x2e8   :  { %v4052_v50 = vpop.f32.mrf.mxu2 }
 0x2ea   :  { %v4065_v32 = vpop.f32.mrf.mxu3 }
 0x2f7   :  { %v4076_v51 = vpop.f32.mrf.mxu0 }
 0x2f8   :  { %v4077_v52 = vadd.f32 %v4076_v51, %v4064_v49  ;;  %v4089_v53 = vpop.f32.mrf.mxu1 }
 0x2fa   :  { %v4090_v54 = vadd.f32 %v4089_v53, %v4077_v52 }
 0x2ff   :  { %v4078_v55 = vpop.f32.mrf.mxu0 }
 0x300   :  { %v4091_v56 = vpop.f32.mrf.mxu1 }
 0x313   :  { %v4102_v57 = vpop.f32.mrf.mxu2 }
 0x314   :  { %v4103_v59 = vadd.f32 %v4102_v57, %v4090_v54 }
 0x31b   :  { %v4104_v58 = vpop.f32.mrf.mxu2 }
 0x34c   :  { %v4115_v60 = vpop.f32.mrf.mxu3 }
 0x34d   :  { %v4116_v38 = vadd.f32 %v4115_v60, %v4103_v59 }
 0x34f   :  { %4119 = vst [vmem:[%s9764_s5] sm:$0xff] %v4116_v38 }
 0x354   :  { %v4117_v61 = vpop.f32.mrf.mxu3 }

</bundles_post_ra>
